<compile_context>
chip_gen: v7x
topology: tpu7x:2x2x1
jax: 0.10.0
libtpu: 0.0.40
codegen_flags: <defaults>
</compile_context>

<pallas_src>
import functools

import jax
import jax.numpy as jnp
from jax.experimental import pallas as pl
from jax.experimental.pallas import tpu as pltpu


_K = 5            # conv kernel size (5x5)
_PQ = 5           # spatial size after pool2 (5x5)

# lane padding of the VMEM frames (>= max static lane shift read from each)
_PAD_IN = 256     # conv1 taps read up to 4*32 + 4  = 132
_PAD_C1 = 128     # pool1 taps read up to   32 + 1  =  33
_PAD_P1 = 384     # conv2 taps read up to 8*32 + 8  = 264
_PAD_C2 = 128     # pool2 taps read up to 2*32 + 2  =  66


# ------------------------------ fused kernel --------------------------------

def _lenet_kernel(x_ref, w1_ref, b1_ref, w2_ref, b2_ref,
                  wf1_ref, bf1_ref, wf2_ref, bf2_ref, wf3_ref, bf3_ref,
                  out_ref,
                  c1im, f1, f2, c2im, f3, q_ref, fcin,
                  *, bt, width, img):
    W = width
    N = bt * img                                   # lanes per batch tile
    f32, bf16 = jnp.float32, jnp.bfloat16

    # ---- conv1 (5x5, 3->16) + bias + ReLU: im2col in VMEM, ONE K=100 dot ----
    for t in range(_K * _K):
        i, j = divmod(t, _K)
        off = i * W + j
        c1im[4 * t:4 * t + 4, :] = x_ref[0, :, off:off + N]      # aligned store
    a = jnp.dot(w1_ref[...], c1im[...], preferred_element_type=f32)   # [16, N]
    a = jnp.maximum(a + b1_ref[...], 0.0)
    f1[:, :N] = a.astype(bf16)
    f1[:, N:] = jnp.zeros((f1.shape[0], f1.shape[1] - N), bf16)

    # ---- pool1: 2x2 / stride 2 max (valid results live on the stride-2 grid)
    p = jnp.maximum(jnp.maximum(f1[:, 0:N], f1[:, 1:1 + N]),
                    jnp.maximum(f1[:, W:W + N], f1[:, W + 1:W + 1 + N]))
    f2[:, :N] = p
    f2[:, N:] = jnp.zeros((f2.shape[0], f2.shape[1] - N), bf16)

    # ---- conv2 (5x5, 16->32) + bias + ReLU: dilation-2 im2col, ONE K=400 dot
    for t in range(_K * _K):
        i, j = divmod(t, _K)
        off = 2 * i * W + 2 * j
        c2im[16 * t:16 * (t + 1), :] = f2[:, off:off + N]
    a = jnp.dot(w2_ref[...], c2im[...], preferred_element_type=f32)   # [32, N]
    a = jnp.maximum(a + b2_ref[...], 0.0)
    f3[:, :N] = a.astype(bf16)
    f3[:, N:] = jnp.zeros((f3.shape[0], f3.shape[1] - N), bf16)

    # ---- pool2: 2x2 / stride 2 max on the stride-2 grid (dilation 2) ----
    q_ref[...] = jnp.maximum(
        jnp.maximum(f3[:, 0:N], f3[:, 2:2 + N]),
        jnp.maximum(f3[:, 2 * W:2 * W + N], f3[:, 2 * W + 2:2 * W + 2 + N]))

    # ---- flatten: gather the 25 valid pooled lanes per image -> [800, bt] ----
    # valid pooled values sit at lane b*img + 4*yq*W + 4*xq
    for b in range(bt):
        for t in range(_PQ * _PQ):
            yq, xq = divmod(t, _PQ)
            lane = b * img + 4 * W * yq + 4 * xq
            fcin[32 * t:32 * (t + 1), b:b + 1] = q_ref[:, lane:lane + 1]

    # ---- fc1 (single K=800 dot) -> fc2 -> fc3 ----
    h = jnp.dot(wf1_ref[...], fcin[...], preferred_element_type=f32)  # [120, bt]
    h = jnp.maximum(h + bf1_ref[...], 0.0).astype(bf16)
    h = jnp.dot(wf2_ref[...], h, preferred_element_type=f32)          # [84, bt]
    h = jnp.maximum(h + bf2_ref[...], 0.0).astype(bf16)
    out_ref[0] = jnp.dot(wf3_ref[...], h,
                         preferred_element_type=f32) + bf3_ref[...]   # [NC, bt]


# --------------------------------- wrapper ----------------------------------

def _const_spec(a):
    zeros = (0,) * a.ndim
    return pl.BlockSpec(a.shape, lambda i, _z=zeros: _z)


def lenet_forward(params, x, *, batch_tile=None):
    """x: [B, 3, 32, 32] float32 (NCHW) -> logits [B, num_classes]."""
    B, Cin, H, W = x.shape
    assert (Cin, H, W) == (3, 32, 32), "LeNet's fc1 (32*5*5) implies 3x32x32"
    NC = params["fc3_b"].shape[0]
    img = H * W

    if batch_tile is None:
        bt = 1 if B <= 8 else max(t for t in (8, 4, 2, 1) if B % t == 0)
    else:
        bt = batch_tile
    assert B % bt == 0, (B, bt)
    n_tiles = B // bt
    N = bt * img
    F_in = N + _PAD_IN

    f32, bf16 = jnp.float32, jnp.bfloat16

    # input frames: [n_tiles, 4, bt*H*W + pad] bf16 (channels padded 3->4 so
    # every bf16 im2col store in the kernel is sublane-aligned; pad is zero)
    x4 = jnp.pad(x.astype(bf16), ((0, 0), (0, 1), (0, 0), (0, 0)))
    x4 = x4.reshape(n_tiles, bt, 4, img).transpose(0, 2, 1, 3).reshape(n_tiles, 4, N)
    x_frames = jnp.pad(x4, ((0, 0), (0, 0), (0, _PAD_IN)))

    # kernel-friendly parameter layouts (tiny one-time transforms)
    w1 = jnp.pad(params["conv1_w"], ((0, 0), (0, 1), (0, 0), (0, 0)))     # [16,4,5,5]
    w1 = w1.transpose(0, 2, 3, 1).reshape(16, 4 * _K * _K).astype(bf16)   # [16,100]
    w2 = params["conv2_w"].transpose(0, 2, 3, 1)
    w2 = w2.reshape(32, 16 * _K * _K).astype(bf16)                        # [32,400]
    wf1 = params["fc1_w"].reshape(120, 32, _PQ * _PQ).transpose(0, 2, 1)
    wf1 = wf1.reshape(120, 32 * _PQ * _PQ).astype(bf16)                   # [120,800]
    wf2 = params["fc2_w"].astype(bf16)                                    # [84,120]
    wf3 = params["fc3_w"].astype(bf16)                                    # [NC,84]
    b1 = params["conv1_b"].reshape(-1, 1).astype(f32)
    b2 = params["conv2_b"].reshape(-1, 1).astype(f32)
    bf1 = params["fc1_b"].reshape(-1, 1).astype(f32)
    bf2 = params["fc2_b"].reshape(-1, 1).astype(f32)
    bf3 = params["fc3_b"].reshape(-1, 1).astype(f32)

    weights = (w1, b1, w2, b2, wf1, bf1, wf2, bf2, wf3, bf3)
    kernel = functools.partial(_lenet_kernel, bt=bt, width=W, img=img)

    out = pl.pallas_call(
        kernel,
        out_shape=jax.ShapeDtypeStruct((n_tiles, NC, bt), f32),
        grid=(n_tiles,),
        in_specs=[pl.BlockSpec((1, 4, F_in), lambda i: (i, 0, 0))]
                + [_const_spec(a) for a in weights],
        out_specs=pl.BlockSpec((1, NC, bt), lambda i: (i, 0, 0)),
        scratch_shapes=[
            pltpu.VMEM((4 * _K * _K, N), bf16),        # conv1 im2col  [100, N]
            pltpu.VMEM((16, N + _PAD_C1), bf16),       # conv1 + ReLU frame
            pltpu.VMEM((16, N + _PAD_P1), bf16),       # pool1 frame
            pltpu.VMEM((16 * _K * _K, N), bf16),       # conv2 im2col  [400, N]
            pltpu.VMEM((32, N + _PAD_C2), bf16),       # conv2 + ReLU frame
            pltpu.VMEM((32, N), bf16),                 # pool2
            pltpu.VMEM((32 * _PQ * _PQ, bt), bf16),    # flattened fc1 operand
        ],
        compiler_params=pltpu.CompilerParams(
            dimension_semantics=("parallel",),
            vmem_limit_bytes=32 * 1024 * 1024),
    )(x_frames, *weights)

    return out.transpose(0, 2, 1).reshape(B, NC)       # [B, NC]


# ------------------------------ params & reference --------------------------

def init_lenet_params(key, num_classes):
    """Deterministic, PyTorch-default-like uniform(-1/sqrt(fan_in), +) init."""
    def uni(k, shape, fan_in):
        bound = 1.0 / jnp.sqrt(jnp.float32(fan_in))
        return jax.random.uniform(k, shape, jnp.float32, -bound, bound)

    ks = jax.random.split(key, 10)
    p = {}
    p["conv1_w"] = uni(ks[0], (16, 3, 5, 5), 3 * 5 * 5)
    p["conv1_b"] = uni(ks[1], (16,), 3 * 5 * 5)
    p["conv2_w"] = uni(ks[2], (32, 16, 5, 5), 16 * 5 * 5)
    p["conv2_b"] = uni(ks[3], (32,), 16 * 5 * 5)
    p["fc1_w"] = uni(ks[4], (120, 32 * 5 * 5), 32 * 5 * 5)
    p["fc1_b"] = uni(ks[5], (120,), 32 * 5 * 5)
    p["fc2_w"] = uni(ks[6], (84, 120), 120)
    p["fc2_b"] = uni(ks[7], (84,), 120)
    p["fc3_w"] = uni(ks[8], (num_classes, 84), 84)
    p["fc3_b"] = uni(ks[9], (num_classes,), 84)
    return p


def _lenet_reference(params, x):
    """Plain-XLA f32 reference of the PyTorch forward pass."""
    dn = ("NCHW", "OIHW", "NCHW")
    y = jax.lax.conv_general_dilated(x, params["conv1_w"], (1, 1), "VALID",
                                     dimension_numbers=dn)
    y = jax.nn.relu(y + params["conv1_b"].reshape(1, -1, 1, 1))
    y = jax.lax.reduce_window(y, -jnp.inf, jax.lax.max,
                              (1, 1, 2, 2), (1, 1, 2, 2), "VALID")
    y = jax.lax.conv_general_dilated(y, params["conv2_w"], (1, 1), "VALID",
                                     dimension_numbers=dn)
    y = jax.nn.relu(y + params["conv2_b"].reshape(1, -1, 1, 1))
    y = jax.lax.reduce_window(y, -jnp.inf, jax.lax.max,
                              (1, 1, 2, 2), (1, 1, 2, 2), "VALID")
    y = y.reshape(y.shape[0], -1)
    y = jax.nn.relu(y @ params["fc1_w"].T + params["fc1_b"])
    y = jax.nn.relu(y @ params["fc2_w"].T + params["fc2_b"])
    return y @ params["fc3_w"].T + params["fc3_b"]


if __name__ == "__main__":
    num_classes = 10
    batch = 2
    key = jax.random.PRNGKey(0)
    k_param, k_x = jax.random.split(key)

    params = init_lenet_params(k_param, num_classes)
    # LeNet's fc1 (32*5*5) implies 3x32x32 input.
    x = jax.random.normal(k_x, (batch, 3, 32, 32), dtype=jnp.float32)

    logits = jax.jit(lenet_forward)(params, x)
    jax.block_until_ready(logits)

    assert logits.shape == (batch, num_classes), logits.shape
    assert logits.dtype == jnp.float32
    assert bool(jnp.all(jnp.isfinite(logits)))

    # sanity check vs. an f32 XLA reference (kernel uses bf16 operands)
    with jax.default_matmul_precision("float32"):
        ref = jax.jit(_lenet_reference)(params, x)
    scale = float(jnp.max(jnp.abs(ref))) + 1e-6
    err = float(jnp.max(jnp.abs(logits - ref)))
    assert err <= 0.10 * scale, (err, scale)

    print("KERNEL_OK")
</pallas_src>

<mosaic_0001>
module attributes {stable_mosaic.version = 11 : i64} {
  func.func @_lenet_kernel(%arg0: i32, %arg1: memref<1x4x1280xbf16, #tpu.memory_space<vmem>>, %arg2: memref<16x100xbf16, #tpu.memory_space<vmem>>, %arg3: memref<16x1xf32, #tpu.memory_space<vmem>>, %arg4: memref<32x400xbf16, #tpu.memory_space<vmem>>, %arg5: memref<32x1xf32, #tpu.memory_space<vmem>>, %arg6: memref<120x800xbf16, #tpu.memory_space<vmem>>, %arg7: memref<120x1xf32, #tpu.memory_space<vmem>>, %arg8: memref<84x120xbf16, #tpu.memory_space<vmem>>, %arg9: memref<84x1xf32, #tpu.memory_space<vmem>>, %arg10: memref<10x84xbf16, #tpu.memory_space<vmem>>, %arg11: memref<10x1xf32, #tpu.memory_space<vmem>>, %arg12: memref<1x10x1xf32, #tpu.memory_space<vmem>>, %arg13: memref<100x1024xbf16, #tpu.memory_space<vmem>>, %arg14: memref<16x1152xbf16, #tpu.memory_space<vmem>>, %arg15: memref<16x1408xbf16, #tpu.memory_space<vmem>>, %arg16: memref<400x1024xbf16, #tpu.memory_space<vmem>>, %arg17: memref<32x1152xbf16, #tpu.memory_space<vmem>>, %arg18: memref<32x1024xbf16, #tpu.memory_space<vmem>>, %arg19: memref<800x1xbf16, #tpu.memory_space<vmem>>) attributes {dimension_semantics = [#tpu.dimension_semantics<parallel>], iteration_bounds = array<i64: 2>, scalar_prefetch = 0 : i64, scratch_operands = 7 : i64, tpu.core_type = #tpu.core_type<tc>, window_params = [{transform_indices = @transform_0, window_bounds = array<i64: 1, 4, 1280>}, {pipeline_mode = #tpu.pipeline_mode<synchronous>, transform_indices = @transform_1, window_bounds = array<i64: 16, 100>}, {pipeline_mode = #tpu.pipeline_mode<synchronous>, transform_indices = @transform_2, window_bounds = array<i64: 16, 1>}, {pipeline_mode = #tpu.pipeline_mode<synchronous>, transform_indices = @transform_3, window_bounds = array<i64: 32, 400>}, {pipeline_mode = #tpu.pipeline_mode<synchronous>, transform_indices = @transform_4, window_bounds = array<i64: 32, 1>}, {pipeline_mode = #tpu.pipeline_mode<synchronous>, transform_indices = @transform_5, window_bounds = array<i64: 120, 800>}, {pipeline_mode = #tpu.pipeline_mode<synchronous>, transform_indices = @transform_6, window_bounds = array<i64: 120, 1>}, {pipeline_mode = #tpu.pipeline_mode<synchronous>, transform_indices = @transform_7, window_bounds = array<i64: 84, 120>}, {pipeline_mode = #tpu.pipeline_mode<synchronous>, transform_indices = @transform_8, window_bounds = array<i64: 84, 1>}, {pipeline_mode = #tpu.pipeline_mode<synchronous>, transform_indices = @transform_9, window_bounds = array<i64: 10, 84>}, {pipeline_mode = #tpu.pipeline_mode<synchronous>, transform_indices = @transform_10, window_bounds = array<i64: 10, 1>}, {transform_indices = @transform_11, window_bounds = array<i64: 1, 10, 1>}]} {
    %c0 = arith.constant 0 : index
    %c0_0 = arith.constant 0 : index
    %c0_1 = arith.constant 0 : index
    %0 = vector.load %arg1[%c0, %c0_0, %c0_1] : memref<1x4x1280xbf16, #tpu.memory_space<vmem>>, vector<1x4x1024xbf16>
    %1 = vector.shape_cast %0 : vector<1x4x1024xbf16> to vector<4x1024xbf16>
    %c0_2 = arith.constant 0 : index
    %c0_3 = arith.constant 0 : index
    %2 = vector.load %arg13[%c0_2, %c0_3] : memref<100x1024xbf16, #tpu.memory_space<vmem>>, vector<4x1024xbf16>
    tpu.vector_store %arg13[%c0_2, %c0_3], %1 {strides = array<i32>} : memref<100x1024xbf16, #tpu.memory_space<vmem>>, vector<4x1024xbf16>,
    %c0_4 = arith.constant 0 : index
    %c0_5 = arith.constant 0 : index
    %c1 = arith.constant 1 : index
    %3 = vector.load %arg1[%c0_4, %c0_5, %c1] : memref<1x4x1280xbf16, #tpu.memory_space<vmem>>, vector<1x4x1024xbf16>
    %4 = vector.shape_cast %3 : vector<1x4x1024xbf16> to vector<4x1024xbf16>
    %c4 = arith.constant 4 : index
    %c0_6 = arith.constant 0 : index
    %5 = vector.load %arg13[%c4, %c0_6] : memref<100x1024xbf16, #tpu.memory_space<vmem>>, vector<4x1024xbf16>
    tpu.vector_store %arg13[%c4, %c0_6], %4 {strides = array<i32>} : memref<100x1024xbf16, #tpu.memory_space<vmem>>, vector<4x1024xbf16>,
    %c0_7 = arith.constant 0 : index
    %c0_8 = arith.constant 0 : index
    %c2 = arith.constant 2 : index
    %6 = vector.load %arg1[%c0_7, %c0_8, %c2] : memref<1x4x1280xbf16, #tpu.memory_space<vmem>>, vector<1x4x1024xbf16>
    %7 = vector.shape_cast %6 : vector<1x4x1024xbf16> to vector<4x1024xbf16>
    %c8 = arith.constant 8 : index
    %c0_9 = arith.constant 0 : index
    %8 = vector.load %arg13[%c8, %c0_9] : memref<100x1024xbf16, #tpu.memory_space<vmem>>, vector<4x1024xbf16>
    tpu.vector_store %arg13[%c8, %c0_9], %7 {strides = array<i32>} : memref<100x1024xbf16, #tpu.memory_space<vmem>>, vector<4x1024xbf16>,
    %c0_10 = arith.constant 0 : index
    %c0_11 = arith.constant 0 : index
    %c3 = arith.constant 3 : index
    %9 = vector.load %arg1[%c0_10, %c0_11, %c3] : memref<1x4x1280xbf16, #tpu.memory_space<vmem>>, vector<1x4x1024xbf16>
    %10 = vector.shape_cast %9 : vector<1x4x1024xbf16> to vector<4x1024xbf16>
    %c12 = arith.constant 12 : index
    %c0_12 = arith.constant 0 : index
    %11 = vector.load %arg13[%c12, %c0_12] : memref<100x1024xbf16, #tpu.memory_space<vmem>>, vector<4x1024xbf16>
    tpu.vector_store %arg13[%c12, %c0_12], %10 {strides = array<i32>} : memref<100x1024xbf16, #tpu.memory_space<vmem>>, vector<4x1024xbf16>,
    %c0_13 = arith.constant 0 : index
    %c0_14 = arith.constant 0 : index
    %c4_15 = arith.constant 4 : index
    %12 = vector.load %arg1[%c0_13, %c0_14, %c4_15] : memref<1x4x1280xbf16, #tpu.memory_space<vmem>>, vector<1x4x1024xbf16>
    %13 = vector.shape_cast %12 : vector<1x4x1024xbf16> to vector<4x1024xbf16>
    %c16 = arith.constant 16 : index
    %c0_16 = arith.constant 0 : index
    %14 = vector.load %arg13[%c16, %c0_16] : memref<100x1024xbf16, #tpu.memory_space<vmem>>, vector<4x1024xbf16>
    tpu.vector_store %arg13[%c16, %c0_16], %13 {strides = array<i32>} : memref<100x1024xbf16, #tpu.memory_space<vmem>>, vector<4x1024xbf16>,
    %c0_17 = arith.constant 0 : index
    %c0_18 = arith.constant 0 : index
    %c32 = arith.constant 32 : index
    %15 = vector.load %arg1[%c0_17, %c0_18, %c32] : memref<1x4x1280xbf16, #tpu.memory_space<vmem>>, vector<1x4x1024xbf16>
    %16 = vector.shape_cast %15 : vector<1x4x1024xbf16> to vector<4x1024xbf16>
    %c20 = arith.constant 20 : index
    %c0_19 = arith.constant 0 : index
    %17 = vector.load %arg13[%c20, %c0_19] : memref<100x1024xbf16, #tpu.memory_space<vmem>>, vector<4x1024xbf16>
    tpu.vector_store %arg13[%c20, %c0_19], %16 {strides = array<i32>} : memref<100x1024xbf16, #tpu.memory_space<vmem>>, vector<4x1024xbf16>,
    %c0_20 = arith.constant 0 : index
    %c0_21 = arith.constant 0 : index
    %c33 = arith.constant 33 : index
    %18 = vector.load %arg1[%c0_20, %c0_21, %c33] : memref<1x4x1280xbf16, #tpu.memory_space<vmem>>, vector<1x4x1024xbf16>
    %19 = vector.shape_cast %18 : vector<1x4x1024xbf16> to vector<4x1024xbf16>
    %c24 = arith.constant 24 : index
    %c0_22 = arith.constant 0 : index
    %20 = vector.load %arg13[%c24, %c0_22] : memref<100x1024xbf16, #tpu.memory_space<vmem>>, vector<4x1024xbf16>
    tpu.vector_store %arg13[%c24, %c0_22], %19 {strides = array<i32>} : memref<100x1024xbf16, #tpu.memory_space<vmem>>, vector<4x1024xbf16>,
    %c0_23 = arith.constant 0 : index
    %c0_24 = arith.constant 0 : index
    %c34 = arith.constant 34 : index
    %21 = vector.load %arg1[%c0_23, %c0_24, %c34] : memref<1x4x1280xbf16, #tpu.memory_space<vmem>>, vector<1x4x1024xbf16>
    %22 = vector.shape_cast %21 : vector<1x4x1024xbf16> to vector<4x1024xbf16>
    %c28 = arith.constant 28 : index
    %c0_25 = arith.constant 0 : index
    %23 = vector.load %arg13[%c28, %c0_25] : memref<100x1024xbf16, #tpu.memory_space<vmem>>, vector<4x1024xbf16>
    tpu.vector_store %arg13[%c28, %c0_25], %22 {strides = array<i32>} : memref<100x1024xbf16, #tpu.memory_space<vmem>>, vector<4x1024xbf16>,
    %c0_26 = arith.constant 0 : index
    %c0_27 = arith.constant 0 : index
    %c35 = arith.constant 35 : index
    %24 = vector.load %arg1[%c0_26, %c0_27, %c35] : memref<1x4x1280xbf16, #tpu.memory_space<vmem>>, vector<1x4x1024xbf16>
    %25 = vector.shape_cast %24 : vector<1x4x1024xbf16> to vector<4x1024xbf16>
    %c32_28 = arith.constant 32 : index
    %c0_29 = arith.constant 0 : index
    %26 = vector.load %arg13[%c32_28, %c0_29] : memref<100x1024xbf16, #tpu.memory_space<vmem>>, vector<4x1024xbf16>
    tpu.vector_store %arg13[%c32_28, %c0_29], %25 {strides = array<i32>} : memref<100x1024xbf16, #tpu.memory_space<vmem>>, vector<4x1024xbf16>,
    %c0_30 = arith.constant 0 : index
    %c0_31 = arith.constant 0 : index
    %c36 = arith.constant 36 : index
    %27 = vector.load %arg1[%c0_30, %c0_31, %c36] : memref<1x4x1280xbf16, #tpu.memory_space<vmem>>, vector<1x4x1024xbf16>
    %28 = vector.shape_cast %27 : vector<1x4x1024xbf16> to vector<4x1024xbf16>
    %c36_32 = arith.constant 36 : index
    %c0_33 = arith.constant 0 : index
    %29 = vector.load %arg13[%c36_32, %c0_33] : memref<100x1024xbf16, #tpu.memory_space<vmem>>, vector<4x1024xbf16>
    tpu.vector_store %arg13[%c36_32, %c0_33], %28 {strides = array<i32>} : memref<100x1024xbf16, #tpu.memory_space<vmem>>, vector<4x1024xbf16>,
    %c0_34 = arith.constant 0 : index
    %c0_35 = arith.constant 0 : index
    %c64 = arith.constant 64 : index
    %30 = vector.load %arg1[%c0_34, %c0_35, %c64] : memref<1x4x1280xbf16, #tpu.memory_space<vmem>>, vector<1x4x1024xbf16>
    %31 = vector.shape_cast %30 : vector<1x4x1024xbf16> to vector<4x1024xbf16>
    %c40 = arith.constant 40 : index
    %c0_36 = arith.constant 0 : index
    %32 = vector.load %arg13[%c40, %c0_36] : memref<100x1024xbf16, #tpu.memory_space<vmem>>, vector<4x1024xbf16>
    tpu.vector_store %arg13[%c40, %c0_36], %31 {strides = array<i32>} : memref<100x1024xbf16, #tpu.memory_space<vmem>>, vector<4x1024xbf16>,
    %c0_37 = arith.constant 0 : index
    %c0_38 = arith.constant 0 : index
    %c65 = arith.constant 65 : index
    %33 = vector.load %arg1[%c0_37, %c0_38, %c65] : memref<1x4x1280xbf16, #tpu.memory_space<vmem>>, vector<1x4x1024xbf16>
    %34 = vector.shape_cast %33 : vector<1x4x1024xbf16> to vector<4x1024xbf16>
    %c44 = arith.constant 44 : index
    %c0_39 = arith.constant 0 : index
    %35 = vector.load %arg13[%c44, %c0_39] : memref<100x1024xbf16, #tpu.memory_space<vmem>>, vector<4x1024xbf16>
    tpu.vector_store %arg13[%c44, %c0_39], %34 {strides = array<i32>} : memref<100x1024xbf16, #tpu.memory_space<vmem>>, vector<4x1024xbf16>,
    %c0_40 = arith.constant 0 : index
    %c0_41 = arith.constant 0 : index
    %c66 = arith.constant 66 : index
    %36 = vector.load %arg1[%c0_40, %c0_41, %c66] : memref<1x4x1280xbf16, #tpu.memory_space<vmem>>, vector<1x4x1024xbf16>
    %37 = vector.shape_cast %36 : vector<1x4x1024xbf16> to vector<4x1024xbf16>
    %c48 = arith.constant 48 : index
    %c0_42 = arith.constant 0 : index
    %38 = vector.load %arg13[%c48, %c0_42] : memref<100x1024xbf16, #tpu.memory_space<vmem>>, vector<4x1024xbf16>
    tpu.vector_store %arg13[%c48, %c0_42], %37 {strides = array<i32>} : memref<100x1024xbf16, #tpu.memory_space<vmem>>, vector<4x1024xbf16>,
    %c0_43 = arith.constant 0 : index
    %c0_44 = arith.constant 0 : index
    %c67 = arith.constant 67 : index
    %39 = vector.load %arg1[%c0_43, %c0_44, %c67] : memref<1x4x1280xbf16, #tpu.memory_space<vmem>>, vector<1x4x1024xbf16>
    %40 = vector.shape_cast %39 : vector<1x4x1024xbf16> to vector<4x1024xbf16>
    %c52 = arith.constant 52 : index
    %c0_45 = arith.constant 0 : index
    %41 = vector.load %arg13[%c52, %c0_45] : memref<100x1024xbf16, #tpu.memory_space<vmem>>, vector<4x1024xbf16>
    tpu.vector_store %arg13[%c52, %c0_45], %40 {strides = array<i32>} : memref<100x1024xbf16, #tpu.memory_space<vmem>>, vector<4x1024xbf16>,
    %c0_46 = arith.constant 0 : index
    %c0_47 = arith.constant 0 : index
    %c68 = arith.constant 68 : index
    %42 = vector.load %arg1[%c0_46, %c0_47, %c68] : memref<1x4x1280xbf16, #tpu.memory_space<vmem>>, vector<1x4x1024xbf16>
    %43 = vector.shape_cast %42 : vector<1x4x1024xbf16> to vector<4x1024xbf16>
    %c56 = arith.constant 56 : index
    %c0_48 = arith.constant 0 : index
    %44 = vector.load %arg13[%c56, %c0_48] : memref<100x1024xbf16, #tpu.memory_space<vmem>>, vector<4x1024xbf16>
    tpu.vector_store %arg13[%c56, %c0_48], %43 {strides = array<i32>} : memref<100x1024xbf16, #tpu.memory_space<vmem>>, vector<4x1024xbf16>,
    %c0_49 = arith.constant 0 : index
    %c0_50 = arith.constant 0 : index
    %c96 = arith.constant 96 : index
    %45 = vector.load %arg1[%c0_49, %c0_50, %c96] : memref<1x4x1280xbf16, #tpu.memory_space<vmem>>, vector<1x4x1024xbf16>
    %46 = vector.shape_cast %45 : vector<1x4x1024xbf16> to vector<4x1024xbf16>
    %c60 = arith.constant 60 : index
    %c0_51 = arith.constant 0 : index
    %47 = vector.load %arg13[%c60, %c0_51] : memref<100x1024xbf16, #tpu.memory_space<vmem>>, vector<4x1024xbf16>
    tpu.vector_store %arg13[%c60, %c0_51], %46 {strides = array<i32>} : memref<100x1024xbf16, #tpu.memory_space<vmem>>, vector<4x1024xbf16>,
    %c0_52 = arith.constant 0 : index
    %c0_53 = arith.constant 0 : index
    %c97 = arith.constant 97 : index
    %48 = vector.load %arg1[%c0_52, %c0_53, %c97] : memref<1x4x1280xbf16, #tpu.memory_space<vmem>>, vector<1x4x1024xbf16>
    %49 = vector.shape_cast %48 : vector<1x4x1024xbf16> to vector<4x1024xbf16>
    %c64_54 = arith.constant 64 : index
    %c0_55 = arith.constant 0 : index
    %50 = vector.load %arg13[%c64_54, %c0_55] : memref<100x1024xbf16, #tpu.memory_space<vmem>>, vector<4x1024xbf16>
    tpu.vector_store %arg13[%c64_54, %c0_55], %49 {strides = array<i32>} : memref<100x1024xbf16, #tpu.memory_space<vmem>>, vector<4x1024xbf16>,
    %c0_56 = arith.constant 0 : index
    %c0_57 = arith.constant 0 : index
    %c98 = arith.constant 98 : index
    %51 = vector.load %arg1[%c0_56, %c0_57, %c98] : memref<1x4x1280xbf16, #tpu.memory_space<vmem>>, vector<1x4x1024xbf16>
    %52 = vector.shape_cast %51 : vector<1x4x1024xbf16> to vector<4x1024xbf16>
    %c68_58 = arith.constant 68 : index
    %c0_59 = arith.constant 0 : index
    %53 = vector.load %arg13[%c68_58, %c0_59] : memref<100x1024xbf16, #tpu.memory_space<vmem>>, vector<4x1024xbf16>
    tpu.vector_store %arg13[%c68_58, %c0_59], %52 {strides = array<i32>} : memref<100x1024xbf16, #tpu.memory_space<vmem>>, vector<4x1024xbf16>,
    %c0_60 = arith.constant 0 : index
    %c0_61 = arith.constant 0 : index
    %c99 = arith.constant 99 : index
    %54 = vector.load %arg1[%c0_60, %c0_61, %c99] : memref<1x4x1280xbf16, #tpu.memory_space<vmem>>, vector<1x4x1024xbf16>
    %55 = vector.shape_cast %54 : vector<1x4x1024xbf16> to vector<4x1024xbf16>
    %c72 = arith.constant 72 : index
    %c0_62 = arith.constant 0 : index
    %56 = vector.load %arg13[%c72, %c0_62] : memref<100x1024xbf16, #tpu.memory_space<vmem>>, vector<4x1024xbf16>
    tpu.vector_store %arg13[%c72, %c0_62], %55 {strides = array<i32>} : memref<100x1024xbf16, #tpu.memory_space<vmem>>, vector<4x1024xbf16>,
    %c0_63 = arith.constant 0 : index
    %c0_64 = arith.constant 0 : index
    %c100 = arith.constant 100 : index
    %57 = vector.load %arg1[%c0_63, %c0_64, %c100] : memref<1x4x1280xbf16, #tpu.memory_space<vmem>>, vector<1x4x1024xbf16>
    %58 = vector.shape_cast %57 : vector<1x4x1024xbf16> to vector<4x1024xbf16>
    %c76 = arith.constant 76 : index
    %c0_65 = arith.constant 0 : index
    %59 = vector.load %arg13[%c76, %c0_65] : memref<100x1024xbf16, #tpu.memory_space<vmem>>, vector<4x1024xbf16>
    tpu.vector_store %arg13[%c76, %c0_65], %58 {strides = array<i32>} : memref<100x1024xbf16, #tpu.memory_space<vmem>>, vector<4x1024xbf16>,
    %c0_66 = arith.constant 0 : index
    %c0_67 = arith.constant 0 : index
    %c128 = arith.constant 128 : index
    %60 = vector.load %arg1[%c0_66, %c0_67, %c128] : memref<1x4x1280xbf16, #tpu.memory_space<vmem>>, vector<1x4x1024xbf16>
    %61 = vector.shape_cast %60 : vector<1x4x1024xbf16> to vector<4x1024xbf16>
    %c80 = arith.constant 80 : index
    %c0_68 = arith.constant 0 : index
    %62 = vector.load %arg13[%c80, %c0_68] : memref<100x1024xbf16, #tpu.memory_space<vmem>>, vector<4x1024xbf16>
    tpu.vector_store %arg13[%c80, %c0_68], %61 {strides = array<i32>} : memref<100x1024xbf16, #tpu.memory_space<vmem>>, vector<4x1024xbf16>,
    %c0_69 = arith.constant 0 : index
    %c0_70 = arith.constant 0 : index
    %c129 = arith.constant 129 : index
    %63 = vector.load %arg1[%c0_69, %c0_70, %c129] : memref<1x4x1280xbf16, #tpu.memory_space<vmem>>, vector<1x4x1024xbf16>
    %64 = vector.shape_cast %63 : vector<1x4x1024xbf16> to vector<4x1024xbf16>
    %c84 = arith.constant 84 : index
    %c0_71 = arith.constant 0 : index
    %65 = vector.load %arg13[%c84, %c0_71] : memref<100x1024xbf16, #tpu.memory_space<vmem>>, vector<4x1024xbf16>
    tpu.vector_store %arg13[%c84, %c0_71], %64 {strides = array<i32>} : memref<100x1024xbf16, #tpu.memory_space<vmem>>, vector<4x1024xbf16>,
    %c0_72 = arith.constant 0 : index
    %c0_73 = arith.constant 0 : index
    %c130 = arith.constant 130 : index
    %66 = vector.load %arg1[%c0_72, %c0_73, %c130] : memref<1x4x1280xbf16, #tpu.memory_space<vmem>>, vector<1x4x1024xbf16>
    %67 = vector.shape_cast %66 : vector<1x4x1024xbf16> to vector<4x1024xbf16>
    %c88 = arith.constant 88 : index
    %c0_74 = arith.constant 0 : index
    %68 = vector.load %arg13[%c88, %c0_74] : memref<100x1024xbf16, #tpu.memory_space<vmem>>, vector<4x1024xbf16>
    tpu.vector_store %arg13[%c88, %c0_74], %67 {strides = array<i32>} : memref<100x1024xbf16, #tpu.memory_space<vmem>>, vector<4x1024xbf16>,
    %c0_75 = arith.constant 0 : index
    %c0_76 = arith.constant 0 : index
    %c131 = arith.constant 131 : index
    %69 = vector.load %arg1[%c0_75, %c0_76, %c131] : memref<1x4x1280xbf16, #tpu.memory_space<vmem>>, vector<1x4x1024xbf16>
    %70 = vector.shape_cast %69 : vector<1x4x1024xbf16> to vector<4x1024xbf16>
    %c92 = arith.constant 92 : index
    %c0_77 = arith.constant 0 : index
    %71 = vector.load %arg13[%c92, %c0_77] : memref<100x1024xbf16, #tpu.memory_space<vmem>>, vector<4x1024xbf16>
    tpu.vector_store %arg13[%c92, %c0_77], %70 {strides = array<i32>} : memref<100x1024xbf16, #tpu.memory_space<vmem>>, vector<4x1024xbf16>,
    %c0_78 = arith.constant 0 : index
    %c0_79 = arith.constant 0 : index
    %c132 = arith.constant 132 : index
    %72 = vector.load %arg1[%c0_78, %c0_79, %c132] : memref<1x4x1280xbf16, #tpu.memory_space<vmem>>, vector<1x4x1024xbf16>
    %73 = vector.shape_cast %72 : vector<1x4x1024xbf16> to vector<4x1024xbf16>
    %c96_80 = arith.constant 96 : index
    %c0_81 = arith.constant 0 : index
    %74 = vector.load %arg13[%c96_80, %c0_81] : memref<100x1024xbf16, #tpu.memory_space<vmem>>, vector<4x1024xbf16>
    tpu.vector_store %arg13[%c96_80, %c0_81], %73 {strides = array<i32>} : memref<100x1024xbf16, #tpu.memory_space<vmem>>, vector<4x1024xbf16>,
    %c0_82 = arith.constant 0 : index
    %c0_83 = arith.constant 0 : index
    %75 = vector.load %arg2[%c0_82, %c0_83] : memref<16x100xbf16, #tpu.memory_space<vmem>>, vector<16x100xbf16>
    %c0_84 = arith.constant 0 : index
    %c0_85 = arith.constant 0 : index
    %76 = vector.load %arg13[%c0_84, %c0_85] : memref<100x1024xbf16, #tpu.memory_space<vmem>>, vector<100x1024xbf16>
    %cst = arith.constant dense<0.000000e+00> : vector<16x1024xf32>
    %77 = tpu.matmul %75, %76, %cst {dimension_numbers = #tpu.dot_dimension_numbers<[1], [0], [0], [1], [0, 0, 1, 1], [], []>} : vector<16x100xbf16>, vector<100x1024xbf16>, vector<16x1024xf32> -> vector<16x1024xf32>
    %c0_86 = arith.constant 0 : index
    %c0_87 = arith.constant 0 : index
    %78 = vector.load %arg3[%c0_86, %c0_87] : memref<16x1xf32, #tpu.memory_space<vmem>>, vector<16x1xf32>
    %79 = vector.broadcast %78 : vector<16x1xf32> to vector<16x1024xf32>
    %80 = arith.addf %77, %79 : vector<16x1024xf32>
    %cst_88 = arith.constant 0.000000e+00 : f32
    %81 = vector.broadcast %cst_88 : f32 to vector<16x1024xf32>
    %82 = arith.maximumf %80, %81 : vector<16x1024xf32>
    %83 = arith.truncf %82 : vector<16x1024xf32> to vector<16x1024xbf16>
    %c0_89 = arith.constant 0 : index
    %c0_90 = arith.constant 0 : index
    %84 = vector.load %arg14[%c0_89, %c0_90] : memref<16x1152xbf16, #tpu.memory_space<vmem>>, vector<16x1024xbf16>
    tpu.vector_store %arg14[%c0_89, %c0_90], %83 {strides = array<i32>} : memref<16x1152xbf16, #tpu.memory_space<vmem>>, vector<16x1024xbf16>,
    %cst_91 = arith.constant 0.000000e+00 : bf16
    %85 = vector.broadcast %cst_91 : bf16 to vector<16x128xbf16>
    %c0_92 = arith.constant 0 : index
    %c1024 = arith.constant 1024 : index
    %86 = vector.load %arg14[%c0_92, %c1024] : memref<16x1152xbf16, #tpu.memory_space<vmem>>, vector<16x128xbf16>
    tpu.vector_store %arg14[%c0_92, %c1024], %85 {strides = array<i32>} : memref<16x1152xbf16, #tpu.memory_space<vmem>>, vector<16x128xbf16>,
    %c0_93 = arith.constant 0 : index
    %c0_94 = arith.constant 0 : index
    %87 = vector.load %arg14[%c0_93, %c0_94] : memref<16x1152xbf16, #tpu.memory_space<vmem>>, vector<16x1024xbf16>
    %c0_95 = arith.constant 0 : index
    %c1_96 = arith.constant 1 : index
    %88 = vector.load %arg14[%c0_95, %c1_96] : memref<16x1152xbf16, #tpu.memory_space<vmem>>, vector<16x1024xbf16>
    %89 = arith.maximumf %87, %88 : vector<16x1024xbf16>
    %c0_97 = arith.constant 0 : index
    %c32_98 = arith.constant 32 : index
    %90 = vector.load %arg14[%c0_97, %c32_98] : memref<16x1152xbf16, #tpu.memory_space<vmem>>, vector<16x1024xbf16>
    %c0_99 = arith.constant 0 : index
    %c33_100 = arith.constant 33 : index
    %91 = vector.load %arg14[%c0_99, %c33_100] : memref<16x1152xbf16, #tpu.memory_space<vmem>>, vector<16x1024xbf16>
    %92 = arith.maximumf %90, %91 : vector<16x1024xbf16>
    %93 = arith.maximumf %89, %92 : vector<16x1024xbf16>
    %c0_101 = arith.constant 0 : index
    %c0_102 = arith.constant 0 : index
    %94 = vector.load %arg15[%c0_101, %c0_102] : memref<16x1408xbf16, #tpu.memory_space<vmem>>, vector<16x1024xbf16>
    tpu.vector_store %arg15[%c0_101, %c0_102], %93 {strides = array<i32>} : memref<16x1408xbf16, #tpu.memory_space<vmem>>, vector<16x1024xbf16>,
    %cst_103 = arith.constant 0.000000e+00 : bf16
    %95 = vector.broadcast %cst_103 : bf16 to vector<16x384xbf16>
    %c0_104 = arith.constant 0 : index
    %c1024_105 = arith.constant 1024 : index
    %96 = vector.load %arg15[%c0_104, %c1024_105] : memref<16x1408xbf16, #tpu.memory_space<vmem>>, vector<16x384xbf16>
    tpu.vector_store %arg15[%c0_104, %c1024_105], %95 {strides = array<i32>} : memref<16x1408xbf16, #tpu.memory_space<vmem>>, vector<16x384xbf16>,
    %c0_106 = arith.constant 0 : index
    %c0_107 = arith.constant 0 : index
    %97 = vector.load %arg15[%c0_106, %c0_107] : memref<16x1408xbf16, #tpu.memory_space<vmem>>, vector<16x1024xbf16>
    %c0_108 = arith.constant 0 : index
    %c0_109 = arith.constant 0 : index
    %98 = vector.load %arg16[%c0_108, %c0_109] : memref<400x1024xbf16, #tpu.memory_space<vmem>>, vector<16x1024xbf16>
    tpu.vector_store %arg16[%c0_108, %c0_109], %97 {strides = array<i32>} : memref<400x1024xbf16, #tpu.memory_space<vmem>>, vector<16x1024xbf16>,
    %c0_110 = arith.constant 0 : index
    %c2_111 = arith.constant 2 : index
    %99 = vector.load %arg15[%c0_110, %c2_111] : memref<16x1408xbf16, #tpu.memory_space<vmem>>, vector<16x1024xbf16>
    %c16_112 = arith.constant 16 : index
    %c0_113 = arith.constant 0 : index
    %100 = vector.load %arg16[%c16_112, %c0_113] : memref<400x1024xbf16, #tpu.memory_space<vmem>>, vector<16x1024xbf16>
    tpu.vector_store %arg16[%c16_112, %c0_113], %99 {strides = array<i32>} : memref<400x1024xbf16, #tpu.memory_space<vmem>>, vector<16x1024xbf16>,
    %c0_114 = arith.constant 0 : index
    %c4_115 = arith.constant 4 : index
    %101 = vector.load %arg15[%c0_114, %c4_115] : memref<16x1408xbf16, #tpu.memory_space<vmem>>, vector<16x1024xbf16>
    %c32_116 = arith.constant 32 : index
    %c0_117 = arith.constant 0 : index
    %102 = vector.load %arg16[%c32_116, %c0_117] : memref<400x1024xbf16, #tpu.memory_space<vmem>>, vector<16x1024xbf16>
    tpu.vector_store %arg16[%c32_116, %c0_117], %101 {strides = array<i32>} : memref<400x1024xbf16, #tpu.memory_space<vmem>>, vector<16x1024xbf16>,
    %c0_118 = arith.constant 0 : index
    %c6 = arith.constant 6 : index
    %103 = vector.load %arg15[%c0_118, %c6] : memref<16x1408xbf16, #tpu.memory_space<vmem>>, vector<16x1024xbf16>
    %c48_119 = arith.constant 48 : index
    %c0_120 = arith.constant 0 : index
    %104 = vector.load %arg16[%c48_119, %c0_120] : memref<400x1024xbf16, #tpu.memory_space<vmem>>, vector<16x1024xbf16>
    tpu.vector_store %arg16[%c48_119, %c0_120], %103 {strides = array<i32>} : memref<400x1024xbf16, #tpu.memory_space<vmem>>, vector<16x1024xbf16>,
    %c0_121 = arith.constant 0 : index
    %c8_122 = arith.constant 8 : index
    %105 = vector.load %arg15[%c0_121, %c8_122] : memref<16x1408xbf16, #tpu.memory_space<vmem>>, vector<16x1024xbf16>
    %c64_123 = arith.constant 64 : index
    %c0_124 = arith.constant 0 : index
    %106 = vector.load %arg16[%c64_123, %c0_124] : memref<400x1024xbf16, #tpu.memory_space<vmem>>, vector<16x1024xbf16>
    tpu.vector_store %arg16[%c64_123, %c0_124], %105 {strides = array<i32>} : memref<400x1024xbf16, #tpu.memory_space<vmem>>, vector<16x1024xbf16>,
    %c0_125 = arith.constant 0 : index
    %c64_126 = arith.constant 64 : index
    %107 = vector.load %arg15[%c0_125, %c64_126] : memref<16x1408xbf16, #tpu.memory_space<vmem>>, vector<16x1024xbf16>
    %c80_127 = arith.constant 80 : index
    %c0_128 = arith.constant 0 : index
    %108 = vector.load %arg16[%c80_127, %c0_128] : memref<400x1024xbf16, #tpu.memory_space<vmem>>, vector<16x1024xbf16>
    tpu.vector_store %arg16[%c80_127, %c0_128], %107 {strides = array<i32>} : memref<400x1024xbf16, #tpu.memory_space<vmem>>, vector<16x1024xbf16>,
    %c0_129 = arith.constant 0 : index
    %c66_130 = arith.constant 66 : index
    %109 = vector.load %arg15[%c0_129, %c66_130] : memref<16x1408xbf16, #tpu.memory_space<vmem>>, vector<16x1024xbf16>
    %c96_131 = arith.constant 96 : index
    %c0_132 = arith.constant 0 : index
    %110 = vector.load %arg16[%c96_131, %c0_132] : memref<400x1024xbf16, #tpu.memory_space<vmem>>, vector<16x1024xbf16>
    tpu.vector_store %arg16[%c96_131, %c0_132], %109 {strides = array<i32>} : memref<400x1024xbf16, #tpu.memory_space<vmem>>, vector<16x1024xbf16>,
    %c0_133 = arith.constant 0 : index
    %c68_134 = arith.constant 68 : index
    %111 = vector.load %arg15[%c0_133, %c68_134] : memref<16x1408xbf16, #tpu.memory_space<vmem>>, vector<16x1024xbf16>
    %c112 = arith.constant 112 : index
    %c0_135 = arith.constant 0 : index
    %112 = vector.load %arg16[%c112, %c0_135] : memref<400x1024xbf16, #tpu.memory_space<vmem>>, vector<16x1024xbf16>
    tpu.vector_store %arg16[%c112, %c0_135], %111 {strides = array<i32>} : memref<400x1024xbf16, #tpu.memory_space<vmem>>, vector<16x1024xbf16>,
    %c0_136 = arith.constant 0 : index
    %c70 = arith.constant 70 : index
    %113 = vector.load %arg15[%c0_136, %c70] : memref<16x1408xbf16, #tpu.memory_space<vmem>>, vector<16x1024xbf16>
    %c128_137 = arith.constant 128 : index
    %c0_138 = arith.constant 0 : index
    %114 = vector.load %arg16[%c128_137, %c0_138] : memref<400x1024xbf16, #tpu.memory_space<vmem>>, vector<16x1024xbf16>
    tpu.vector_store %arg16[%c128_137, %c0_138], %113 {strides = array<i32>} : memref<400x1024xbf16, #tpu.memory_space<vmem>>, vector<16x1024xbf16>,
    %c0_139 = arith.constant 0 : index
    %c72_140 = arith.constant 72 : index
    %115 = vector.load %arg15[%c0_139, %c72_140] : memref<16x1408xbf16, #tpu.memory_space<vmem>>, vector<16x1024xbf16>
    %c144 = arith.constant 144 : index
    %c0_141 = arith.constant 0 : index
    %116 = vector.load %arg16[%c144, %c0_141] : memref<400x1024xbf16, #tpu.memory_space<vmem>>, vector<16x1024xbf16>
    tpu.vector_store %arg16[%c144, %c0_141], %115 {strides = array<i32>} : memref<400x1024xbf16, #tpu.memory_space<vmem>>, vector<16x1024xbf16>,
    %c0_142 = arith.constant 0 : index
    %c128_143 = arith.constant 128 : index
    %117 = vector.load %arg15[%c0_142, %c128_143] : memref<16x1408xbf16, #tpu.memory_space<vmem>>, vector<16x1024xbf16>
    %c160 = arith.constant 160 : index
    %c0_144 = arith.constant 0 : index
    %118 = vector.load %arg16[%c160, %c0_144] : memref<400x1024xbf16, #tpu.memory_space<vmem>>, vector<16x1024xbf16>
    tpu.vector_store %arg16[%c160, %c0_144], %117 {strides = array<i32>} : memref<400x1024xbf16, #tpu.memory_space<vmem>>, vector<16x1024xbf16>,
    %c0_145 = arith.constant 0 : index
    %c130_146 = arith.constant 130 : index
    %119 = vector.load %arg15[%c0_145, %c130_146] : memref<16x1408xbf16, #tpu.memory_space<vmem>>, vector<16x1024xbf16>
    %c176 = arith.constant 176 : index
    %c0_147 = arith.constant 0 : index
    %120 = vector.load %arg16[%c176, %c0_147] : memref<400x1024xbf16, #tpu.memory_space<vmem>>, vector<16x1024xbf16>
    tpu.vector_store %arg16[%c176, %c0_147], %119 {strides = array<i32>} : memref<400x1024xbf16, #tpu.memory_space<vmem>>, vector<16x1024xbf16>,
    %c0_148 = arith.constant 0 : index
    %c132_149 = arith.constant 132 : index
    %121 = vector.load %arg15[%c0_148, %c132_149] : memref<16x1408xbf16, #tpu.memory_space<vmem>>, vector<16x1024xbf16>
    %c192 = arith.constant 192 : index
    %c0_150 = arith.constant 0 : index
    %122 = vector.load %arg16[%c192, %c0_150] : memref<400x1024xbf16, #tpu.memory_space<vmem>>, vector<16x1024xbf16>
    tpu.vector_store %arg16[%c192, %c0_150], %121 {strides = array<i32>} : memref<400x1024xbf16, #tpu.memory_space<vmem>>, vector<16x1024xbf16>,
    %c0_151 = arith.constant 0 : index
    %c134 = arith.constant 134 : index
    %123 = vector.load %arg15[%c0_151, %c134] : memref<16x1408xbf16, #tpu.memory_space<vmem>>, vector<16x1024xbf16>
    %c208 = arith.constant 208 : index
    %c0_152 = arith.constant 0 : index
    %124 = vector.load %arg16[%c208, %c0_152] : memref<400x1024xbf16, #tpu.memory_space<vmem>>, vector<16x1024xbf16>
    tpu.vector_store %arg16[%c208, %c0_152], %123 {strides = array<i32>} : memref<400x1024xbf16, #tpu.memory_space<vmem>>, vector<16x1024xbf16>,
    %c0_153 = arith.constant 0 : index
    %c136 = arith.constant 136 : index
    %125 = vector.load %arg15[%c0_153, %c136] : memref<16x1408xbf16, #tpu.memory_space<vmem>>, vector<16x1024xbf16>
    %c224 = arith.constant 224 : index
    %c0_154 = arith.constant 0 : index
    %126 = vector.load %arg16[%c224, %c0_154] : memref<400x1024xbf16, #tpu.memory_space<vmem>>, vector<16x1024xbf16>
    tpu.vector_store %arg16[%c224, %c0_154], %125 {strides = array<i32>} : memref<400x1024xbf16, #tpu.memory_space<vmem>>, vector<16x1024xbf16>,
    %c0_155 = arith.constant 0 : index
    %c192_156 = arith.constant 192 : index
    %127 = vector.load %arg15[%c0_155, %c192_156] : memref<16x1408xbf16, #tpu.memory_space<vmem>>, vector<16x1024xbf16>
    %c240 = arith.constant 240 : index
    %c0_157 = arith.constant 0 : index
    %128 = vector.load %arg16[%c240, %c0_157] : memref<400x1024xbf16, #tpu.memory_space<vmem>>, vector<16x1024xbf16>
    tpu.vector_store %arg16[%c240, %c0_157], %127 {strides = array<i32>} : memref<400x1024xbf16, #tpu.memory_space<vmem>>, vector<16x1024xbf16>,
    %c0_158 = arith.constant 0 : index
    %c194 = arith.constant 194 : index
    %129 = vector.load %arg15[%c0_158, %c194] : memref<16x1408xbf16, #tpu.memory_space<vmem>>, vector<16x1024xbf16>
    %c256 = arith.constant 256 : index
    %c0_159 = arith.constant 0 : index
    %130 = vector.load %arg16[%c256, %c0_159] : memref<400x1024xbf16, #tpu.memory_space<vmem>>, vector<16x1024xbf16>
    tpu.vector_store %arg16[%c256, %c0_159], %129 {strides = array<i32>} : memref<400x1024xbf16, #tpu.memory_space<vmem>>, vector<16x1024xbf16>,
    %c0_160 = arith.constant 0 : index
    %c196 = arith.constant 196 : index
    %131 = vector.load %arg15[%c0_160, %c196] : memref<16x1408xbf16, #tpu.memory_space<vmem>>, vector<16x1024xbf16>
    %c272 = arith.constant 272 : index
    %c0_161 = arith.constant 0 : index
    %132 = vector.load %arg16[%c272, %c0_161] : memref<400x1024xbf16, #tpu.memory_space<vmem>>, vector<16x1024xbf16>
    tpu.vector_store %arg16[%c272, %c0_161], %131 {strides = array<i32>} : memref<400x1024xbf16, #tpu.memory_space<vmem>>, vector<16x1024xbf16>,
    %c0_162 = arith.constant 0 : index
    %c198 = arith.constant 198 : index
    %133 = vector.load %arg15[%c0_162, %c198] : memref<16x1408xbf16, #tpu.memory_space<vmem>>, vector<16x1024xbf16>
    %c288 = arith.constant 288 : index
    %c0_163 = arith.constant 0 : index
    %134 = vector.load %arg16[%c288, %c0_163] : memref<400x1024xbf16, #tpu.memory_space<vmem>>, vector<16x1024xbf16>
    tpu.vector_store %arg16[%c288, %c0_163], %133 {strides = array<i32>} : memref<400x1024xbf16, #tpu.memory_space<vmem>>, vector<16x1024xbf16>,
    %c0_164 = arith.constant 0 : index
    %c200 = arith.constant 200 : index
    %135 = vector.load %arg15[%c0_164, %c200] : memref<16x1408xbf16, #tpu.memory_space<vmem>>, vector<16x1024xbf16>
    %c304 = arith.constant 304 : index
    %c0_165 = arith.constant 0 : index
    %136 = vector.load %arg16[%c304, %c0_165] : memref<400x1024xbf16, #tpu.memory_space<vmem>>, vector<16x1024xbf16>
    tpu.vector_store %arg16[%c304, %c0_165], %135 {strides = array<i32>} : memref<400x1024xbf16, #tpu.memory_space<vmem>>, vector<16x1024xbf16>,
    %c0_166 = arith.constant 0 : index
    %c256_167 = arith.constant 256 : index
    %137 = vector.load %arg15[%c0_166, %c256_167] : memref<16x1408xbf16, #tpu.memory_space<vmem>>, vector<16x1024xbf16>
    %c320 = arith.constant 320 : index
    %c0_168 = arith.constant 0 : index
    %138 = vector.load %arg16[%c320, %c0_168] : memref<400x1024xbf16, #tpu.memory_space<vmem>>, vector<16x1024xbf16>
    tpu.vector_store %arg16[%c320, %c0_168], %137 {strides = array<i32>} : memref<400x1024xbf16, #tpu.memory_space<vmem>>, vector<16x1024xbf16>,
    %c0_169 = arith.constant 0 : index
    %c258 = arith.constant 258 : index
    %139 = vector.load %arg15[%c0_169, %c258] : memref<16x1408xbf16, #tpu.memory_space<vmem>>, vector<16x1024xbf16>
    %c336 = arith.constant 336 : index
    %c0_170 = arith.constant 0 : index
    %140 = vector.load %arg16[%c336, %c0_170] : memref<400x1024xbf16, #tpu.memory_space<vmem>>, vector<16x1024xbf16>
    tpu.vector_store %arg16[%c336, %c0_170], %139 {strides = array<i32>} : memref<400x1024xbf16, #tpu.memory_space<vmem>>, vector<16x1024xbf16>,
    %c0_171 = arith.constant 0 : index
    %c260 = arith.constant 260 : index
    %141 = vector.load %arg15[%c0_171, %c260] : memref<16x1408xbf16, #tpu.memory_space<vmem>>, vector<16x1024xbf16>
    %c352 = arith.constant 352 : index
    %c0_172 = arith.constant 0 : index
    %142 = vector.load %arg16[%c352, %c0_172] : memref<400x1024xbf16, #tpu.memory_space<vmem>>, vector<16x1024xbf16>
    tpu.vector_store %arg16[%c352, %c0_172], %141 {strides = array<i32>} : memref<400x1024xbf16, #tpu.memory_space<vmem>>, vector<16x1024xbf16>,
    %c0_173 = arith.constant 0 : index
    %c262 = arith.constant 262 : index
    %143 = vector.load %arg15[%c0_173, %c262] : memref<16x1408xbf16, #tpu.memory_space<vmem>>, vector<16x1024xbf16>
    %c368 = arith.constant 368 : index
    %c0_174 = arith.constant 0 : index
    %144 = vector.load %arg16[%c368, %c0_174] : memref<400x1024xbf16, #tpu.memory_space<vmem>>, vector<16x1024xbf16>
    tpu.vector_store %arg16[%c368, %c0_174], %143 {strides = array<i32>} : memref<400x1024xbf16, #tpu.memory_space<vmem>>, vector<16x1024xbf16>,
    %c0_175 = arith.constant 0 : index
    %c264 = arith.constant 264 : index
    %145 = vector.load %arg15[%c0_175, %c264] : memref<16x1408xbf16, #tpu.memory_space<vmem>>, vector<16x1024xbf16>
    %c384 = arith.constant 384 : index
    %c0_176 = arith.constant 0 : index
    %146 = vector.load %arg16[%c384, %c0_176] : memref<400x1024xbf16, #tpu.memory_space<vmem>>, vector<16x1024xbf16>
    tpu.vector_store %arg16[%c384, %c0_176], %145 {strides = array<i32>} : memref<400x1024xbf16, #tpu.memory_space<vmem>>, vector<16x1024xbf16>,
    %c0_177 = arith.constant 0 : index
    %c0_178 = arith.constant 0 : index
    %147 = vector.load %arg4[%c0_177, %c0_178] : memref<32x400xbf16, #tpu.memory_space<vmem>>, vector<32x400xbf16>
    %c0_179 = arith.constant 0 : index
    %c0_180 = arith.constant 0 : index
    %148 = vector.load %arg16[%c0_179, %c0_180] : memref<400x1024xbf16, #tpu.memory_space<vmem>>, vector<400x1024xbf16>
    %cst_181 = arith.constant dense<0.000000e+00> : vector<32x1024xf32>
    %149 = tpu.matmul %147, %148, %cst_181 {dimension_numbers = #tpu.dot_dimension_numbers<[1], [0], [0], [1], [0, 0, 1, 1], [], []>} : vector<32x400xbf16>, vector<400x1024xbf16>, vector<32x1024xf32> -> vector<32x1024xf32>
    %c0_182 = arith.constant 0 : index
    %c0_183 = arith.constant 0 : index
    %150 = vector.load %arg5[%c0_182, %c0_183] : memref<32x1xf32, #tpu.memory_space<vmem>>, vector<32x1xf32>
    %151 = vector.broadcast %150 : vector<32x1xf32> to vector<32x1024xf32>
    %152 = arith.addf %149, %151 : vector<32x1024xf32>
    %cst_184 = arith.constant 0.000000e+00 : f32
    %153 = vector.broadcast %cst_184 : f32 to vector<32x1024xf32>
    %154 = arith.maximumf %152, %153 : vector<32x1024xf32>
    %155 = arith.truncf %154 : vector<32x1024xf32> to vector<32x1024xbf16>
    %c0_185 = arith.constant 0 : index
    %c0_186 = arith.constant 0 : index
    %156 = vector.load %arg17[%c0_185, %c0_186] : memref<32x1152xbf16, #tpu.memory_space<vmem>>, vector<32x1024xbf16>
    tpu.vector_store %arg17[%c0_185, %c0_186], %155 {strides = array<i32>} : memref<32x1152xbf16, #tpu.memory_space<vmem>>, vector<32x1024xbf16>,
    %cst_187 = arith.constant 0.000000e+00 : bf16
    %157 = vector.broadcast %cst_187 : bf16 to vector<32x128xbf16>
    %c0_188 = arith.constant 0 : index
    %c1024_189 = arith.constant 1024 : index
    %158 = vector.load %arg17[%c0_188, %c1024_189] : memref<32x1152xbf16, #tpu.memory_space<vmem>>, vector<32x128xbf16>
    tpu.vector_store %arg17[%c0_188, %c1024_189], %157 {strides = array<i32>} : memref<32x1152xbf16, #tpu.memory_space<vmem>>, vector<32x128xbf16>,
    %c0_190 = arith.constant 0 : index
    %c0_191 = arith.constant 0 : index
    %159 = vector.load %arg17[%c0_190, %c0_191] : memref<32x1152xbf16, #tpu.memory_space<vmem>>, vector<32x1024xbf16>
    %c0_192 = arith.constant 0 : index
    %c2_193 = arith.constant 2 : index
    %160 = vector.load %arg17[%c0_192, %c2_193] : memref<32x1152xbf16, #tpu.memory_space<vmem>>, vector<32x1024xbf16>
    %161 = arith.maximumf %159, %160 : vector<32x1024xbf16>
    %c0_194 = arith.constant 0 : index
    %c64_195 = arith.constant 64 : index
    %162 = vector.load %arg17[%c0_194, %c64_195] : memref<32x1152xbf16, #tpu.memory_space<vmem>>, vector<32x1024xbf16>
    %c0_196 = arith.constant 0 : index
    %c66_197 = arith.constant 66 : index
    %163 = vector.load %arg17[%c0_196, %c66_197] : memref<32x1152xbf16, #tpu.memory_space<vmem>>, vector<32x1024xbf16>
    %164 = arith.maximumf %162, %163 : vector<32x1024xbf16>
    %165 = arith.maximumf %161, %164 : vector<32x1024xbf16>
    %c0_198 = arith.constant 0 : index
    %c0_199 = arith.constant 0 : index
    %166 = vector.load %arg18[%c0_198, %c0_199] : memref<32x1024xbf16, #tpu.memory_space<vmem>>, vector<32x1024xbf16>
    tpu.vector_store %arg18[%c0_198, %c0_199], %165 {strides = array<i32>} : memref<32x1024xbf16, #tpu.memory_space<vmem>>, vector<32x1024xbf16>,
    %c0_200 = arith.constant 0 : index
    %c0_201 = arith.constant 0 : index
    %167 = vector.load %arg18[%c0_200, %c0_201] : memref<32x1024xbf16, #tpu.memory_space<vmem>>, vector<32x1xbf16>
    %c0_202 = arith.constant 0 : index
    %c0_203 = arith.constant 0 : index
    %168 = vector.load %arg19[%c0_202, %c0_203] : memref<800x1xbf16, #tpu.memory_space<vmem>>, vector<32x1xbf16>
    tpu.vector_store %arg19[%c0_202, %c0_203], %167 {strides = array<i32>} : memref<800x1xbf16, #tpu.memory_space<vmem>>, vector<32x1xbf16>,
    %c0_204 = arith.constant 0 : index
    %c4_205 = arith.constant 4 : index
    %169 = vector.load %arg18[%c0_204, %c4_205] : memref<32x1024xbf16, #tpu.memory_space<vmem>>, vector<32x1xbf16>
    %c32_206 = arith.constant 32 : index
    %c0_207 = arith.constant 0 : index
    %170 = vector.load %arg19[%c32_206, %c0_207] : memref<800x1xbf16, #tpu.memory_space<vmem>>, vector<32x1xbf16>
    tpu.vector_store %arg19[%c32_206, %c0_207], %169 {strides = array<i32>} : memref<800x1xbf16, #tpu.memory_space<vmem>>, vector<32x1xbf16>,
    %c0_208 = arith.constant 0 : index
    %c8_209 = arith.constant 8 : index
    %171 = vector.load %arg18[%c0_208, %c8_209] : memref<32x1024xbf16, #tpu.memory_space<vmem>>, vector<32x1xbf16>
    %c64_210 = arith.constant 64 : index
    %c0_211 = arith.constant 0 : index
    %172 = vector.load %arg19[%c64_210, %c0_211] : memref<800x1xbf16, #tpu.memory_space<vmem>>, vector<32x1xbf16>
    tpu.vector_store %arg19[%c64_210, %c0_211], %171 {strides = array<i32>} : memref<800x1xbf16, #tpu.memory_space<vmem>>, vector<32x1xbf16>,
    %c0_212 = arith.constant 0 : index
    %c12_213 = arith.constant 12 : index
    %173 = vector.load %arg18[%c0_212, %c12_213] : memref<32x1024xbf16, #tpu.memory_space<vmem>>, vector<32x1xbf16>
    %c96_214 = arith.constant 96 : index
    %c0_215 = arith.constant 0 : index
    %174 = vector.load %arg19[%c96_214, %c0_215] : memref<800x1xbf16, #tpu.memory_space<vmem>>, vector<32x1xbf16>
    tpu.vector_store %arg19[%c96_214, %c0_215], %173 {strides = array<i32>} : memref<800x1xbf16, #tpu.memory_space<vmem>>, vector<32x1xbf16>,
    %c0_216 = arith.constant 0 : index
    %c16_217 = arith.constant 16 : index
    %175 = vector.load %arg18[%c0_216, %c16_217] : memref<32x1024xbf16, #tpu.memory_space<vmem>>, vector<32x1xbf16>
    %c128_218 = arith.constant 128 : index
    %c0_219 = arith.constant 0 : index
    %176 = vector.load %arg19[%c128_218, %c0_219] : memref<800x1xbf16, #tpu.memory_space<vmem>>, vector<32x1xbf16>
    tpu.vector_store %arg19[%c128_218, %c0_219], %175 {strides = array<i32>} : memref<800x1xbf16, #tpu.memory_space<vmem>>, vector<32x1xbf16>,
    %c0_220 = arith.constant 0 : index
    %c128_221 = arith.constant 128 : index
    %177 = vector.load %arg18[%c0_220, %c128_221] : memref<32x1024xbf16, #tpu.memory_space<vmem>>, vector<32x1xbf16>
    %c160_222 = arith.constant 160 : index
    %c0_223 = arith.constant 0 : index
    %178 = vector.load %arg19[%c160_222, %c0_223] : memref<800x1xbf16, #tpu.memory_space<vmem>>, vector<32x1xbf16>
    tpu.vector_store %arg19[%c160_222, %c0_223], %177 {strides = array<i32>} : memref<800x1xbf16, #tpu.memory_space<vmem>>, vector<32x1xbf16>,
    %c0_224 = arith.constant 0 : index
    %c132_225 = arith.constant 132 : index
    %179 = vector.load %arg18[%c0_224, %c132_225] : memref<32x1024xbf16, #tpu.memory_space<vmem>>, vector<32x1xbf16>
    %c192_226 = arith.constant 192 : index
    %c0_227 = arith.constant 0 : index
    %180 = vector.load %arg19[%c192_226, %c0_227] : memref<800x1xbf16, #tpu.memory_space<vmem>>, vector<32x1xbf16>
    tpu.vector_store %arg19[%c192_226, %c0_227], %179 {strides = array<i32>} : memref<800x1xbf16, #tpu.memory_space<vmem>>, vector<32x1xbf16>,
    %c0_228 = arith.constant 0 : index
    %c136_229 = arith.constant 136 : index
    %181 = vector.load %arg18[%c0_228, %c136_229] : memref<32x1024xbf16, #tpu.memory_space<vmem>>, vector<32x1xbf16>
    %c224_230 = arith.constant 224 : index
    %c0_231 = arith.constant 0 : index
    %182 = vector.load %arg19[%c224_230, %c0_231] : memref<800x1xbf16, #tpu.memory_space<vmem>>, vector<32x1xbf16>
    tpu.vector_store %arg19[%c224_230, %c0_231], %181 {strides = array<i32>} : memref<800x1xbf16, #tpu.memory_space<vmem>>, vector<32x1xbf16>,
    %c0_232 = arith.constant 0 : index
    %c140 = arith.constant 140 : index
    %183 = vector.load %arg18[%c0_232, %c140] : memref<32x1024xbf16, #tpu.memory_space<vmem>>, vector<32x1xbf16>
    %c256_233 = arith.constant 256 : index
    %c0_234 = arith.constant 0 : index
    %184 = vector.load %arg19[%c256_233, %c0_234] : memref<800x1xbf16, #tpu.memory_space<vmem>>, vector<32x1xbf16>
    tpu.vector_store %arg19[%c256_233, %c0_234], %183 {strides = array<i32>} : memref<800x1xbf16, #tpu.memory_space<vmem>>, vector<32x1xbf16>,
    %c0_235 = arith.constant 0 : index
    %c144_236 = arith.constant 144 : index
    %185 = vector.load %arg18[%c0_235, %c144_236] : memref<32x1024xbf16, #tpu.memory_space<vmem>>, vector<32x1xbf16>
    %c288_237 = arith.constant 288 : index
    %c0_238 = arith.constant 0 : index
    %186 = vector.load %arg19[%c288_237, %c0_238] : memref<800x1xbf16, #tpu.memory_space<vmem>>, vector<32x1xbf16>
    tpu.vector_store %arg19[%c288_237, %c0_238], %185 {strides = array<i32>} : memref<800x1xbf16, #tpu.memory_space<vmem>>, vector<32x1xbf16>,
    %c0_239 = arith.constant 0 : index
    %c256_240 = arith.constant 256 : index
    %187 = vector.load %arg18[%c0_239, %c256_240] : memref<32x1024xbf16, #tpu.memory_space<vmem>>, vector<32x1xbf16>
    %c320_241 = arith.constant 320 : index
    %c0_242 = arith.constant 0 : index
    %188 = vector.load %arg19[%c320_241, %c0_242] : memref<800x1xbf16, #tpu.memory_space<vmem>>, vector<32x1xbf16>
    tpu.vector_store %arg19[%c320_241, %c0_242], %187 {strides = array<i32>} : memref<800x1xbf16, #tpu.memory_space<vmem>>, vector<32x1xbf16>,
    %c0_243 = arith.constant 0 : index
    %c260_244 = arith.constant 260 : index
    %189 = vector.load %arg18[%c0_243, %c260_244] : memref<32x1024xbf16, #tpu.memory_space<vmem>>, vector<32x1xbf16>
    %c352_245 = arith.constant 352 : index
    %c0_246 = arith.constant 0 : index
    %190 = vector.load %arg19[%c352_245, %c0_246] : memref<800x1xbf16, #tpu.memory_space<vmem>>, vector<32x1xbf16>
    tpu.vector_store %arg19[%c352_245, %c0_246], %189 {strides = array<i32>} : memref<800x1xbf16, #tpu.memory_space<vmem>>, vector<32x1xbf16>,
    %c0_247 = arith.constant 0 : index
    %c264_248 = arith.constant 264 : index
    %191 = vector.load %arg18[%c0_247, %c264_248] : memref<32x1024xbf16, #tpu.memory_space<vmem>>, vector<32x1xbf16>
    %c384_249 = arith.constant 384 : index
    %c0_250 = arith.constant 0 : index
    %192 = vector.load %arg19[%c384_249, %c0_250] : memref<800x1xbf16, #tpu.memory_space<vmem>>, vector<32x1xbf16>
    tpu.vector_store %arg19[%c384_249, %c0_250], %191 {strides = array<i32>} : memref<800x1xbf16, #tpu.memory_space<vmem>>, vector<32x1xbf16>,
    %c0_251 = arith.constant 0 : index
    %c268 = arith.constant 268 : index
    %193 = vector.load %arg18[%c0_251, %c268] : memref<32x1024xbf16, #tpu.memory_space<vmem>>, vector<32x1xbf16>
    %c416 = arith.constant 416 : index
    %c0_252 = arith.constant 0 : index
    %194 = vector.load %arg19[%c416, %c0_252] : memref<800x1xbf16, #tpu.memory_space<vmem>>, vector<32x1xbf16>
    tpu.vector_store %arg19[%c416, %c0_252], %193 {strides = array<i32>} : memref<800x1xbf16, #tpu.memory_space<vmem>>, vector<32x1xbf16>,
    %c0_253 = arith.constant 0 : index
    %c272_254 = arith.constant 272 : index
    %195 = vector.load %arg18[%c0_253, %c272_254] : memref<32x1024xbf16, #tpu.memory_space<vmem>>, vector<32x1xbf16>
    %c448 = arith.constant 448 : index
    %c0_255 = arith.constant 0 : index
    %196 = vector.load %arg19[%c448, %c0_255] : memref<800x1xbf16, #tpu.memory_space<vmem>>, vector<32x1xbf16>
    tpu.vector_store %arg19[%c448, %c0_255], %195 {strides = array<i32>} : memref<800x1xbf16, #tpu.memory_space<vmem>>, vector<32x1xbf16>,
    %c0_256 = arith.constant 0 : index
    %c384_257 = arith.constant 384 : index
    %197 = vector.load %arg18[%c0_256, %c384_257] : memref<32x1024xbf16, #tpu.memory_space<vmem>>, vector<32x1xbf16>
    %c480 = arith.constant 480 : index
    %c0_258 = arith.constant 0 : index
    %198 = vector.load %arg19[%c480, %c0_258] : memref<800x1xbf16, #tpu.memory_space<vmem>>, vector<32x1xbf16>
    tpu.vector_store %arg19[%c480, %c0_258], %197 {strides = array<i32>} : memref<800x1xbf16, #tpu.memory_space<vmem>>, vector<32x1xbf16>,
    %c0_259 = arith.constant 0 : index
    %c388 = arith.constant 388 : index
    %199 = vector.load %arg18[%c0_259, %c388] : memref<32x1024xbf16, #tpu.memory_space<vmem>>, vector<32x1xbf16>
    %c512 = arith.constant 512 : index
    %c0_260 = arith.constant 0 : index
    %200 = vector.load %arg19[%c512, %c0_260] : memref<800x1xbf16, #tpu.memory_space<vmem>>, vector<32x1xbf16>
    tpu.vector_store %arg19[%c512, %c0_260], %199 {strides = array<i32>} : memref<800x1xbf16, #tpu.memory_space<vmem>>, vector<32x1xbf16>,
    %c0_261 = arith.constant 0 : index
    %c392 = arith.constant 392 : index
    %201 = vector.load %arg18[%c0_261, %c392] : memref<32x1024xbf16, #tpu.memory_space<vmem>>, vector<32x1xbf16>
    %c544 = arith.constant 544 : index
    %c0_262 = arith.constant 0 : index
    %202 = vector.load %arg19[%c544, %c0_262] : memref<800x1xbf16, #tpu.memory_space<vmem>>, vector<32x1xbf16>
    tpu.vector_store %arg19[%c544, %c0_262], %201 {strides = array<i32>} : memref<800x1xbf16, #tpu.memory_space<vmem>>, vector<32x1xbf16>,
    %c0_263 = arith.constant 0 : index
    %c396 = arith.constant 396 : index
    %203 = vector.load %arg18[%c0_263, %c396] : memref<32x1024xbf16, #tpu.memory_space<vmem>>, vector<32x1xbf16>
    %c576 = arith.constant 576 : index
    %c0_264 = arith.constant 0 : index
    %204 = vector.load %arg19[%c576, %c0_264] : memref<800x1xbf16, #tpu.memory_space<vmem>>, vector<32x1xbf16>
    tpu.vector_store %arg19[%c576, %c0_264], %203 {strides = array<i32>} : memref<800x1xbf16, #tpu.memory_space<vmem>>, vector<32x1xbf16>,
    %c0_265 = arith.constant 0 : index
    %c400 = arith.constant 400 : index
    %205 = vector.load %arg18[%c0_265, %c400] : memref<32x1024xbf16, #tpu.memory_space<vmem>>, vector<32x1xbf16>
    %c608 = arith.constant 608 : index
    %c0_266 = arith.constant 0 : index
    %206 = vector.load %arg19[%c608, %c0_266] : memref<800x1xbf16, #tpu.memory_space<vmem>>, vector<32x1xbf16>
    tpu.vector_store %arg19[%c608, %c0_266], %205 {strides = array<i32>} : memref<800x1xbf16, #tpu.memory_space<vmem>>, vector<32x1xbf16>,
    %c0_267 = arith.constant 0 : index
    %c512_268 = arith.constant 512 : index
    %207 = vector.load %arg18[%c0_267, %c512_268] : memref<32x1024xbf16, #tpu.memory_space<vmem>>, vector<32x1xbf16>
    %c640 = arith.constant 640 : index
    %c0_269 = arith.constant 0 : index
    %208 = vector.load %arg19[%c640, %c0_269] : memref<800x1xbf16, #tpu.memory_space<vmem>>, vector<32x1xbf16>
    tpu.vector_store %arg19[%c640, %c0_269], %207 {strides = array<i32>} : memref<800x1xbf16, #tpu.memory_space<vmem>>, vector<32x1xbf16>,
    %c0_270 = arith.constant 0 : index
    %c516 = arith.constant 516 : index
    %209 = vector.load %arg18[%c0_270, %c516] : memref<32x1024xbf16, #tpu.memory_space<vmem>>, vector<32x1xbf16>
    %c672 = arith.constant 672 : index
    %c0_271 = arith.constant 0 : index
    %210 = vector.load %arg19[%c672, %c0_271] : memref<800x1xbf16, #tpu.memory_space<vmem>>, vector<32x1xbf16>
    tpu.vector_store %arg19[%c672, %c0_271], %209 {strides = array<i32>} : memref<800x1xbf16, #tpu.memory_space<vmem>>, vector<32x1xbf16>,
    %c0_272 = arith.constant 0 : index
    %c520 = arith.constant 520 : index
    %211 = vector.load %arg18[%c0_272, %c520] : memref<32x1024xbf16, #tpu.memory_space<vmem>>, vector<32x1xbf16>
    %c704 = arith.constant 704 : index
    %c0_273 = arith.constant 0 : index
    %212 = vector.load %arg19[%c704, %c0_273] : memref<800x1xbf16, #tpu.memory_space<vmem>>, vector<32x1xbf16>
    tpu.vector_store %arg19[%c704, %c0_273], %211 {strides = array<i32>} : memref<800x1xbf16, #tpu.memory_space<vmem>>, vector<32x1xbf16>,
    %c0_274 = arith.constant 0 : index
    %c524 = arith.constant 524 : index
    %213 = vector.load %arg18[%c0_274, %c524] : memref<32x1024xbf16, #tpu.memory_space<vmem>>, vector<32x1xbf16>
    %c736 = arith.constant 736 : index
    %c0_275 = arith.constant 0 : index
    %214 = vector.load %arg19[%c736, %c0_275] : memref<800x1xbf16, #tpu.memory_space<vmem>>, vector<32x1xbf16>
    tpu.vector_store %arg19[%c736, %c0_275], %213 {strides = array<i32>} : memref<800x1xbf16, #tpu.memory_space<vmem>>, vector<32x1xbf16>,
    %c0_276 = arith.constant 0 : index
    %c528 = arith.constant 528 : index
    %215 = vector.load %arg18[%c0_276, %c528] : memref<32x1024xbf16, #tpu.memory_space<vmem>>, vector<32x1xbf16>
    %c768 = arith.constant 768 : index
    %c0_277 = arith.constant 0 : index
    %216 = vector.load %arg19[%c768, %c0_277] : memref<800x1xbf16, #tpu.memory_space<vmem>>, vector<32x1xbf16>
    tpu.vector_store %arg19[%c768, %c0_277], %215 {strides = array<i32>} : memref<800x1xbf16, #tpu.memory_space<vmem>>, vector<32x1xbf16>,
    %c0_278 = arith.constant 0 : index
    %c0_279 = arith.constant 0 : index
    %217 = vector.load %arg6[%c0_278, %c0_279] : memref<120x800xbf16, #tpu.memory_space<vmem>>, vector<120x800xbf16>
    %c0_280 = arith.constant 0 : index
    %c0_281 = arith.constant 0 : index
    %218 = vector.load %arg19[%c0_280, %c0_281] : memref<800x1xbf16, #tpu.memory_space<vmem>>, vector<800x1xbf16>
    %cst_282 = arith.constant dense<0.000000e+00> : vector<120x1xf32>
    %219 = tpu.matmul %217, %218, %cst_282 {dimension_numbers = #tpu.dot_dimension_numbers<[1], [0], [0], [1], [0, 0, 1, 1], [], []>} : vector<120x800xbf16>, vector<800x1xbf16>, vector<120x1xf32> -> vector<120x1xf32>
    %c0_283 = arith.constant 0 : index
    %c0_284 = arith.constant 0 : index
    %220 = vector.load %arg7[%c0_283, %c0_284] : memref<120x1xf32, #tpu.memory_space<vmem>>, vector<120x1xf32>
    %221 = arith.addf %219, %220 : vector<120x1xf32>
    %cst_285 = arith.constant 0.000000e+00 : f32
    %222 = vector.broadcast %cst_285 : f32 to vector<120x1xf32>
    %223 = arith.maximumf %221, %222 : vector<120x1xf32>
    %224 = arith.truncf %223 : vector<120x1xf32> to vector<120x1xbf16>
    %c0_286 = arith.constant 0 : index
    %c0_287 = arith.constant 0 : index
    %225 = vector.load %arg8[%c0_286, %c0_287] : memref<84x120xbf16, #tpu.memory_space<vmem>>, vector<84x120xbf16>
    %cst_288 = arith.constant dense<0.000000e+00> : vector<84x1xf32>
    %226 = tpu.matmul %225, %224, %cst_288 {dimension_numbers = #tpu.dot_dimension_numbers<[1], [0], [0], [1], [0, 0, 1, 1], [], []>} : vector<84x120xbf16>, vector<120x1xbf16>, vector<84x1xf32> -> vector<84x1xf32>
    %c0_289 = arith.constant 0 : index
    %c0_290 = arith.constant 0 : index
    %227 = vector.load %arg9[%c0_289, %c0_290] : memref<84x1xf32, #tpu.memory_space<vmem>>, vector<84x1xf32>
    %228 = arith.addf %226, %227 : vector<84x1xf32>
    %cst_291 = arith.constant 0.000000e+00 : f32
    %229 = vector.broadcast %cst_291 : f32 to vector<84x1xf32>
    %230 = arith.maximumf %228, %229 : vector<84x1xf32>
    %231 = arith.truncf %230 : vector<84x1xf32> to vector<84x1xbf16>
    %c0_292 = arith.constant 0 : index
    %c0_293 = arith.constant 0 : index
    %232 = vector.load %arg10[%c0_292, %c0_293] : memref<10x84xbf16, #tpu.memory_space<vmem>>, vector<10x84xbf16>
    %cst_294 = arith.constant dense<0.000000e+00> : vector<10x1xf32>
    %233 = tpu.matmul %232, %231, %cst_294 {dimension_numbers = #tpu.dot_dimension_numbers<[1], [0], [0], [1], [0, 0, 1, 1], [], []>} : vector<10x84xbf16>, vector<84x1xbf16>, vector<10x1xf32> -> vector<10x1xf32>
    %c0_295 = arith.constant 0 : index
    %c0_296 = arith.constant 0 : index
    %234 = vector.load %arg11[%c0_295, %c0_296] : memref<10x1xf32, #tpu.memory_space<vmem>>, vector<10x1xf32>
    %235 = arith.addf %233, %234 : vector<10x1xf32>
    %c0_297 = arith.constant 0 : index
    %c0_298 = arith.constant 0 : index
    %c0_299 = arith.constant 0 : index
    %236 = vector.load %arg12[%c0_297, %c0_298, %c0_299] : memref<1x10x1xf32, #tpu.memory_space<vmem>>, vector<1x10x1xf32>
    %237 = vector.shape_cast %236 : vector<1x10x1xf32> to vector<10x1xf32>
    %238 = vector.shape_cast %235 : vector<10x1xf32> to vector<1x10x1xf32>
    tpu.vector_store %arg12[%c0_297, %c0_298, %c0_299], %238 {strides = array<i32>} : memref<1x10x1xf32, #tpu.memory_space<vmem>>, vector<1x10x1xf32>,
    return
  }
  func.func @transform_0(%arg0: i32) -> (i32, i32, i32) {
    %c0_i32 = arith.constant 0 : i32
    %c0_i32_0 = arith.constant 0 : i32
    %c0_i32_1 = arith.constant 0 : i32
    return %arg0, %c0_i32, %c0_i32_0 : i32, i32, i32
  }
  func.func @transform_1(%arg0: i32) -> (i32, i32) {
    %c0_i32 = arith.constant 0 : i32
    %c0_i32_0 = arith.constant 0 : i32
    %c0_i32_1 = arith.constant 0 : i32
    return %c0_i32, %c0_i32_0 : i32, i32
  }
  func.func @transform_2(%arg0: i32) -> (i32, i32) {
    %c0_i32 = arith.constant 0 : i32
    %c0_i32_0 = arith.constant 0 : i32
    %c0_i32_1 = arith.constant 0 : i32
    return %c0_i32, %c0_i32_0 : i32, i32
  }
  func.func @transform_3(%arg0: i32) -> (i32, i32) {
    %c0_i32 = arith.constant 0 : i32
    %c0_i32_0 = arith.constant 0 : i32
    %c0_i32_1 = arith.constant 0 : i32
    return %c0_i32, %c0_i32_0 : i32, i32
  }
  func.func @transform_4(%arg0: i32) -> (i32, i32) {
    %c0_i32 = arith.constant 0 : i32
    %c0_i32_0 = arith.constant 0 : i32
    %c0_i32_1 = arith.constant 0 : i32
    return %c0_i32, %c0_i32_0 : i32, i32
  }
  func.func @transform_5(%arg0: i32) -> (i32, i32) {
    %c0_i32 = arith.constant 0 : i32
    %c0_i32_0 = arith.constant 0 : i32
    %c0_i32_1 = arith.constant 0 : i32
    return %c0_i32, %c0_i32_0 : i32, i32
  }
  func.func @transform_6(%arg0: i32) -> (i32, i32) {
    %c0_i32 = arith.constant 0 : i32
    %c0_i32_0 = arith.constant 0 : i32
    %c0_i32_1 = arith.constant 0 : i32
    return %c0_i32, %c0_i32_0 : i32, i32
  }
  func.func @transform_7(%arg0: i32) -> (i32, i32) {
    %c0_i32 = arith.constant 0 : i32
    %c0_i32_0 = arith.constant 0 : i32
    %c0_i32_1 = arith.constant 0 : i32
    return %c0_i32, %c0_i32_0 : i32, i32
  }
  func.func @transform_8(%arg0: i32) -> (i32, i32) {
    %c0_i32 = arith.constant 0 : i32
    %c0_i32_0 = arith.constant 0 : i32
    %c0_i32_1 = arith.constant 0 : i32
    return %c0_i32, %c0_i32_0 : i32, i32
  }
  func.func @transform_9(%arg0: i32) -> (i32, i32) {
    %c0_i32 = arith.constant 0 : i32
    %c0_i32_0 = arith.constant 0 : i32
    %c0_i32_1 = arith.constant 0 : i32
    return %c0_i32, %c0_i32_0 : i32, i32
  }
  func.func @transform_10(%arg0: i32) -> (i32, i32) {
    %c0_i32 = arith.constant 0 : i32
    %c0_i32_0 = arith.constant 0 : i32
    %c0_i32_1 = arith.constant 0 : i32
    return %c0_i32, %c0_i32_0 : i32, i32
  }
  func.func @transform_11(%arg0: i32) -> (i32, i32, i32) {
    %c0_i32 = arith.constant 0 : i32
    %c0_i32_0 = arith.constant 0 : i32
    %c0_i32_1 = arith.constant 0 : i32
    return %arg0, %c0_i32, %c0_i32_0 : i32, i32, i32
  }
}

</mosaic_0001>

<bundles_post_ra>
// kernel: lenet_forward.1
= control target key start
LH: loop header
LB: loop body
LE: loop exit
PB: predicated region body
PF: predicated region fallthrough
CT: control target
= control target key end

     0   :  { %s7553_s17 = smov 0   ;;  %s10267_s0 = inlined_call_operand.vmem [shape: bf16[2,4,1280], index: 0, kind: input, shape index: {}]   ;;  %s10268_s1 = inlined_call_operand.vmem [shape: bf16[16,100], index: 1, kind: input, shape index: {}]   ;;  %s10269_s2 = inlined_call_operand.vmem [shape: f32[16,1], index: 2, kind: input, shape index: {}]   ;;  %s10270_s3 = inlined_call_operand.vmem [shape: bf16[32,400], index: 3, kind: input, shape index: {}]   ;;  %s10271_s4 = inlined_call_operand.vmem [shape: f32[32,1], index: 4, kind: input, shape index: {}]   ;;  %s10272_s5 = inlined_call_operand.vmem [shape: bf16[120,800], index: 5, kind: input, shape index: {}]   ;;  %s10273_s6 = inlined_call_operand.vmem [shape: f32[120,1], index: 6, kind: input, shape index: {}]   ;;  %s10274_s7 = inlined_call_operand.vmem [shape: bf16[84,120], index: 7, kind: input, shape index: {}]   ;;  %s10275_s8 = inlined_call_operand.vmem [shape: f32[84,1], index: 8, kind: input, shape index: {}]   ;;  %s10276_s9 = inlined_call_operand.vmem [shape: bf16[10,84], index: 9, kind: input, shape index: {}]   ;;  %s10277_s10 = inlined_call_operand.vmem [shape: f32[10,1], index: 10, kind: input, shape index: {}]   ;;  %s10278_s11 = inlined_call_operand.vmem [shape: f32[2,10,1], index: 11, kind: output, shape index: {}]  }
   0x1 LB: > { %s6696_s18 = sadd.s32 4294967295, %s7462_s17   ;;  %p6700_p0 = scmp.ge.s32.totalorder %s7462_s17, 1  ;;  %s7462_s17 = sphi %s7553_s17, %s21_s17  }
   0x2   : > { %p337_p1 = scmp.lt.s32.totalorder %s7462_s17, 3 }
   0x4   : > { %p338_p2 = pnand %p6700_p0, %p337_p1 }
   0x5   : > { %p377_p3 = scmp.lt.s32.totalorder (!%p338_p2), %s6696_s18, 1  ;;  %v440_v0 = vlaneseq (!%p338_p2)  ;;  %v7464_v1 = vmov (!%p338_p2), 1983009808   ;;  %s7465_s23 = smov (!%p338_p2), 126   ;;  %v7484_v24 = vmov (!%p338_p2), 0   ;;  %vm489_vm0 = vcmask (!%p338_p2), 1043456  }
   0x6   : > { %341 = sbr.rel (%p338_p2) target bundleno = 2657 (0xa61), region = 64  ;;  %v438_v2 = vunpack.c.l.s4 (!%p338_p2), %v7464_v1  ;;  %s7466_s24 = smov (!%p338_p2), 127   ;;  %2598 = vmatprep.mubr.bf16.mxu0 (!%p338_p2), %v7484_v24  ;;  %2641 = vmatprep.mubr.bf16.mxu1 (!%p338_p2), %v7484_v24  ;;  %vm566_vm1 = vcmask (!%p338_p2), 1031168   ;;  %vm10296_vm2 = vcmask (!%p338_p2), 1039360   ;;  %vm717_vm3 = vcmask (!%p338_p2), 1014784  }
   0x7   : > { %v441_v3 = vshrl.u32 (!%p338_p2), %v440_v0, 7  ;;  %s7467_s25 = smov (!%p338_p2), 125   ;;  %s7468_s26 = smov (!%p338_p2), 124   ;;  %7272 = vset.pattern.permute.xlu0 (!%p338_p2), %v7484_v24  ;;  %7271 = vset.pattern.permute.xlu1 (!%p338_p2), %v7484_v24  ;;  %vm642_vm4 = vcmask (!%p338_p2), 1022976   ;;  %vm793_vm5 = vcmask (!%p338_p2), 785408   ;;  %vm868_vm6 = vcmask (!%p338_p2), 777216  }
   0x8   : > { %v439_v4 = vunpack.c.0.s8 (!%p338_p2), %v438_v2  ;;  %s7469_s27 = smov (!%p338_p2), 96   ;;  %s7470_s28 = smov (!%p338_p2), 95   ;;  %vm944_vm7 = vcmask (!%p338_p2), 769024   ;;  %vm1019_vm8 = vcmask (!%p338_p2), 760832   ;;  %vm10298_vm9 = vcmask (!%p338_p2), 752640  }
   0x9   : > { %s7471_s29 = smov (!%p338_p2), 94   ;;  %s7472_s30 = smov (!%p338_p2), 93   ;;  %vm1170_vm10 = vcmask (!%p338_p2), 523264   ;;  %vm10297_vm11 = vcmask (!%p338_p2), 515072   ;;  %vm1321_vm12 = vcmask (!%p338_p2), 506880   ;;  %vm1397_vm13 = vcmask (!%p338_p2), 498688  }
   0xa   : > { %v7564_v5 = vsub.s32 (!%p338_p2), %v439_v4, %v441_v3  ;;  %s10285_s12 = smov (!%p338_p2), 92   ;;  %s10287_s13 = smov (!%p338_p2), 64   ;;  %vm10289_vm14 = vcmask (!%p338_p2), 490496   ;;  %vm10290_vm15 = vcmask (!%p338_p2), 261120  }
   0xb   : > { %s10286_s14 = smov (!%p338_p2), 63   ;;  %s10279_s15 = smov (!%p338_p2), 62  }
   0xc   : > { %s10281_s16 = smov (!%p338_p2), 61   ;;  %s7479_s20 = smov (!%p338_p2), 32  }
   0xd   : > { %s10357_s18 = smov (!%p377_p3, %s6696_s18), 1  ;;  %s7480_s21 = smov 31  }
   0xe   : > { %s7233_s19 = smul.u32 20, %s10357_s18 }
  0x10   : > { %s7569_s22 = scalar_lea.vmem %s10267_s0, %s7233_s19  ;;  %s10283_s19 = smov 60  }
  0x11   : > { %v507_v6 = vld [vmem:[%s7569_s22] sm:$0xff]  ;;  %v7576_v8 = vld [vmem:[%s7569_s22 + $0x8] sm:$0xff] }
  0x12   : > { %v7573_v7 = vld [vmem:[%s7569_s22 + $0x2] sm:$0xff]  ;;  %v7579_v9 = vrot.slane %v507_v6, %v7564_v5  ;;  %6704 = vst.sshfl [vmem:[#allocation2] sm:$0xf pattern:$0x76325410] %v507_v6  ;;  %v7585_v10 = vcombine.high %v507_v6, %v507_v6  ;;  %v436_v11 = vcombine.low %v507_v6, %v507_v6  ;;  %v451_v19 = vcombine.low %v7576_v8, %v7576_v8 }
  0x13   : > { %6717 = vst.sshfl [vmem:[#allocation2 + $0x140] sm:$0xf pattern:$0x76325410] %v7573_v7  ;;  %v1914_v14 = vcombine.low %v7573_v7, %v7573_v7  ;;  %v1928_v15 = vrot.slane %v7573_v7, %v7564_v5  ;;  %v7652_v17 = vcombine.high %v7573_v7, %v7573_v7  ;;  %v7669_v20 = vrot.slane %v7576_v8, %v7564_v5 }
  0x14   : > { %6706 = vst.sshfl [vmem:[#allocation2 + $0x10] sm:$0xf pattern:$0x76325410] %v7576_v8  ;;  %550 = vrot.lane.b32.xlu1 %v7579_v9, %s7465_s23  ;;  %476 = vrot.lane.b32.xlu0 %v7579_v9, %s7466_s24  ;;  %v527_v12 = vrot.slane %v7585_v10, %v7564_v5  ;;  %v443_v13 = vrot.slane %v436_v11, %v7564_v5 }
  0x15   : > { %v1921_v16 = vrot.slane %v1914_v14, %v7564_v5  ;;  %v2003_v18 = vrot.slane %v7652_v17, %v7564_v5  ;;  %6705 = vst.sshfl [vmem:[#allocation2 + $0x8] sm:$0xf pattern:$0x76325410] %v7585_v10  ;;  %v7672_v21 = vrot.slane %v451_v19, %v7564_v5  ;;  %v7680_v22 = vcombine.high %v7576_v8, %v7576_v8 }
  0x16   : > { %6718 = vst.sshfl [vmem:[#allocation2 + $0x148] sm:$0xf pattern:$0x76325410] %v7652_v17 }
  0x17   : > { %v7688_v23 = vrot.slane %v7680_v22, %v7564_v5  ;;  %6707 = vst.sshfl [vmem:[#allocation2 + $0x18] sm:$0xf pattern:$0x76325410] %v7680_v22 }
  0x18   : > { %628 = vrot.lane.b32.xlu1 %v7579_v9, %s7467_s25  ;;  %701 = vrot.lane.b32.xlu0 %v7579_v9, %s7468_s26 }
  0x1c   : > { %552 = vrot.lane.b32.xlu1 %v527_v12, %s7465_s23  ;;  %474 = vrot.lane.b32.xlu0 %v443_v13, %s7466_s24 }
  0x20   : > { %703 = vrot.lane.b32.xlu1 %v527_v12, %s7468_s26  ;;  %626 = vrot.lane.b32.xlu0 %v443_v13, %s7467_s25 }
  0x24   : > { %779 = vrot.lane.b32.xlu1 %v7579_v9, %s7469_s27  ;;  %777 = vrot.lane.b32.xlu0 %v443_v13, %s7469_s27 }
  0x28   : > { %854 = vrot.lane.b32.xlu1 %v527_v12, %s7470_s28  ;;  %852 = vrot.lane.b32.xlu0 %v7579_v9, %s7470_s28 }
  0x2c   : > { %930 = vrot.lane.b32.xlu1 %v7579_v9, %s7471_s29  ;;  %928 = vrot.lane.b32.xlu0 %v443_v13, %s7471_s29 }
  0x30   : > { %1005 = vrot.lane.b32.xlu1 %v527_v12, %s7472_s30  ;;  %1003 = vrot.lane.b32.xlu0 %v7579_v9, %s7472_s30 }
  0x34   : > { %1081 = vrot.lane.b32.xlu1 %v7579_v9, %s10285_s12  ;;  %1079 = vrot.lane.b32.xlu0 %v443_v13, %s10285_s12 }
  0x38   : > { %1156 = vrot.lane.b32.xlu1 %v527_v12, %s10287_s13  ;;  %1154 = vrot.lane.b32.xlu0 %v7579_v9, %s10287_s13 }
  0x3c   : > { %1232 = vrot.lane.b32.xlu1 %v7579_v9, %s10286_s14  ;;  %1230 = vrot.lane.b32.xlu0 %v443_v13, %s10286_s14 }
  0x40   : > { %1307 = vrot.lane.b32.xlu1 %v527_v12, %s10279_s15  ;;  %1305 = vrot.lane.b32.xlu0 %v7579_v9, %s10279_s15  ;;  %s7481_s15 = smov 30  }
  0x44   : > { %1383 = vrot.lane.b32.xlu1 %v7579_v9, %s10281_s16  ;;  %1381 = vrot.lane.b32.xlu0 %v443_v13, %s10281_s16  ;;  %s7482_s16 = smov 29  }
  0x48   : > { %1458 = vrot.lane.b32.xlu1 %v527_v12, %s10283_s19  ;;  %1456 = vrot.lane.b32.xlu0 %v7579_v9, %s10283_s19  ;;  %s7483_s19 = smov 28  }
  0x4c   : > { %1534 = vrot.lane.b32.xlu1 %v7579_v9, %s7479_s20  ;;  %1532 = vrot.lane.b32.xlu0 %v443_v13, %s7479_s20 }
  0x50   : > { %1609 = vrot.lane.b32.xlu1 %v527_v12, %s7480_s21  ;;  %1607 = vrot.lane.b32.xlu0 %v7579_v9, %s7480_s21 }
  0x54   : > { %1685 = vrot.lane.b32.xlu1 %v7579_v9, %s7481_s15  ;;  %1683 = vrot.lane.b32.xlu0 %v443_v13, %s7481_s15 }
  0x58   : > { %1760 = vrot.lane.b32.xlu1 %v527_v12, %s7482_s16  ;;  %1758 = vrot.lane.b32.xlu0 %v7579_v9, %s7482_s16 }
  0x5c   : > { %1836 = vrot.lane.b32.xlu1 %v7579_v9, %s7483_s19  ;;  %1834 = vrot.lane.b32.xlu0 %v443_v13, %s7483_s19 }
  0x60   : > { %1954 = vrot.lane.b32.xlu1 %v1928_v15, %s7466_s24  ;;  %1952 = vrot.lane.b32.xlu0 %v1921_v16, %s7466_s24 }
  0x64   : > { %2028 = vrot.lane.b32.xlu1 %v2003_v18, %s7465_s23  ;;  %2026 = vrot.lane.b32.xlu0 %v1928_v15, %s7465_s23 }
  0x68   : > { %2103 = vrot.lane.b32.xlu1 %v1928_v15, %s7467_s25  ;;  %2101 = vrot.lane.b32.xlu0 %v1921_v16, %s7467_s25 }
  0x6c   : > { %2177 = vrot.lane.b32.xlu1 %v2003_v18, %s7468_s26  ;;  %2175 = vrot.lane.b32.xlu0 %v1928_v15, %s7468_s26 }
  0x70   : > { %554 = vrot.lane.b32.xlu1 %v7669_v20, %s7465_s23  ;;  %478 = vrot.lane.b32.xlu0 %v7672_v21, %s7466_s24 }
  0x74   : > { %480 = vrot.lane.b32.xlu1 %v7669_v20, %s7466_s24  ;;  %630 = vrot.lane.b32.xlu0 %v7672_v21, %s7467_s25 }
  0x78   : > { %632 = vrot.lane.b32.xlu1 %v7669_v20, %s7467_s25  ;;  %556 = vrot.lane.b32.xlu0 %v7688_v23, %s7465_s23 }
  0x7c   : > { %781 = vrot.lane.b32.xlu1 %v7672_v21, %s7469_s27  ;;  %705 = vrot.lane.b32.xlu0 %v7669_v20, %s7468_s26 }
  0x80   : > { %932 = vrot.lane.b32.xlu1 %v7672_v21, %s7471_s29  ;;  %856 = vrot.lane.b32.xlu0 %v7669_v20, %s7470_s28 }
  0x84   : > { %783 = vrot.lane.b32.xlu1 %v7669_v20, %s7469_s27  ;;  %707 = vrot.lane.b32.xlu0 %v7688_v23, %s7468_s26 }
  0x86   : > { %v551_v25 = vpop.permute.xlu1 %550  ;;  %v7710_v26 = vpop.permute.xlu0 %476 }
  0x87   : > { %v560_v29 = vrot.slane %v551_v25, 4  ;;  %v485_v32 = vrot.slane %v7710_v26, 4 }
  0x88   : > { %934 = vrot.lane.b32.xlu1 %v7669_v20, %s7471_s29  ;;  %858 = vrot.lane.b32.xlu0 %v7688_v23, %s7470_s28 }
  0x8a   : > { %v7716_v27 = vpop.permute.xlu1 %628  ;;  %v702_v28 = vpop.permute.xlu0 %701 }
  0x8b   : > { %v637_v35 = vrot.slane %v7716_v27, 4  ;;  %v711_v42 = vrot.slane %v702_v28, 4 }
  0x8c   : > { %1083 = vrot.lane.b32.xlu1 %v7672_v21, %s10285_s12  ;;  %1007 = vrot.lane.b32.xlu0 %v7669_v20, %s7472_s30 }
  0x8e   : > { %v7722_v30 = vpop.permute.xlu1 %552  ;;  %v475_v31 = vpop.permute.xlu0 %474 }
  0x8f   : > { %v561_v33 = vrot.slane %v7722_v30, 4  ;;  %v484_v34 = vrot.slane %v475_v31, 4 }
  0x90   : > { %1234 = vrot.lane.b32.xlu1 %v7672_v21, %s10286_s14  ;;  %1158 = vrot.lane.b32.xlu0 %v7669_v20, %s10287_s13 }
  0x91   : > { %v565_v36 = vsel %vm489_vm0, %v560_v29, %v561_v33  ;;  %v490_v37 = vsel %vm489_vm0, %v484_v34, %v485_v32 }
  0x92   : > { %v567_v38 = vsel %vm566_vm1, %v551_v25, %v565_v36  ;;  %v492_v39 = vsel %vm10296_vm2, %v475_v31, %v490_v37  ;;  %v7739_v40 = vpop.permute.xlu1 %703  ;;  %v627_v41 = vpop.permute.xlu0 %626 }
  0x93   : > { %578 = vst [vmem:[#allocation2 + $0x20] sm:$0x33] %v567_v38  ;;  %503 = vst [vmem:[#allocation2] sm:$0xcc] %v492_v39  ;;  %v712_v43 = vrot.slane %v7739_v40, 4  ;;  %v636_v44 = vrot.slane %v627_v41, 4 }
  0x94   : > { %1085 = vrot.lane.b32.xlu1 %v7669_v20, %s10285_s12  ;;  %1009 = vrot.lane.b32.xlu0 %v7688_v23, %s7472_s30  ;;  %s10299_s12 = smov 61  }
  0x95   : > { %v716_v45 = vsel %vm489_vm0, %v711_v42, %v712_v43  ;;  %v641_v46 = vsel %vm489_vm0, %v636_v44, %v637_v35 }
  0x96   : > { %v718_v47 = vsel %vm717_vm3, %v702_v28, %v716_v45  ;;  %v643_v48 = vsel %vm642_vm4, %v627_v41, %v641_v46  ;;  %v7754_v49 = vpop.permute.xlu1 %779  ;;  %v778_v50 = vpop.permute.xlu0 %777 }
  0x97   : > { %729 = vst [vmem:[#allocation2 + $0x40] sm:$0x33] %v718_v47  ;;  %654 = vst [vmem:[#allocation2 + $0x20] sm:$0xcc] %v643_v48  ;;  %v788_v51 = vrot.slane %v7754_v49, 4  ;;  %v787_v52 = vrot.slane %v778_v50, 4 }
  0x98   : > { %1236 = vrot.lane.b32.xlu1 %v7669_v20, %s10286_s14  ;;  %1160 = vrot.lane.b32.xlu0 %v7688_v23, %s10287_s13  ;;  %s10300_s14 = smov 62   ;;  %s10301_s13 = smov 60  }
  0x99   : > { %v792_v53 = vsel %vm489_vm0, %v787_v52, %v788_v51 }
  0x9a   : > { %v794_v54 = vsel %vm793_vm5, %v778_v50, %v792_v53  ;;  %v7765_v55 = vpop.permute.xlu1 %854  ;;  %v853_v56 = vpop.permute.xlu0 %852  ;;  %v2208_v63 = vld [vmem:[#allocation2] sm:$0xff]  ;;  %v1984_v50 = vld [vmem:[%s7569_s22 + $0xa] sm:$0xff] }
  0x9b   : > { %805 = vst [vmem:[#allocation2 + $0x40] sm:$0xcc] %v794_v54  ;;  %v863_v57 = vrot.slane %v7765_v55, 4  ;;  %v862_v58 = vrot.slane %v853_v56, 4 }
  0x9c   : > { %1385 = vrot.lane.b32.xlu1 %v7672_v21, %s10299_s12  ;;  %1309 = vrot.lane.b32.xlu0 %v7669_v20, %s10300_s14 }
  0x9d   : > { %v867_v59 = vsel %vm489_vm0, %v862_v58, %v863_v57 }
  0x9e   : > { %v869_v60 = vsel %vm868_vm6, %v853_v56, %v867_v59  ;;  %v7776_v61 = vpop.permute.xlu1 %930  ;;  %v929_v62 = vpop.permute.xlu0 %928  ;;  %v2212_v0 = vld [vmem:[#allocation2 + $0x20] sm:$0xff] }
  0x9f   : > { %880 = vst [vmem:[#allocation2 + $0x60] sm:$0x33] %v869_v60  ;;  %v939_v1 = vrot.slane %v7776_v61, 4  ;;  %v938_v2 = vrot.slane %v929_v62, 4  ;;  %v6725_v3 = vcombine.high %v2208_v63, %v2212_v0  ;;  %v6724_v4 = vcombine.low %v2208_v63, %v2212_v0  ;;  %v7847_v0 = vld [vmem:[%s7569_s22 + $0xa] sm:$0xff] }
  0xa0   : > { %1536 = vrot.lane.b32.xlu1 %v7672_v21, %s7479_s20  ;;  %1460 = vrot.lane.b32.xlu0 %v7669_v20, %s10301_s13  ;;  %6719 = vst.sshfl [vmem:[#allocation2 + $0x150] sm:$0xf pattern:$0x76325410] %v7847_v0 }
  0xa1   : > { %v943_v6 = vsel %vm489_vm0, %v938_v2, %v939_v1  ;;  %2566 = vmatprep.subr.bf16.mxu0 %v6725_v3  ;;  %v2011_v3 = vrot.slane %v1984_v50, %v7564_v5 }
  0xa2   : > { %v945_v7 = vsel %vm944_vm7, %v929_v62, %v943_v6  ;;  %v7787_v8 = vpop.permute.xlu1 %1005  ;;  %v1004_v9 = vpop.permute.xlu0 %1003  ;;  %2567 = vmatpush1.bf16.msra.mxu0 %v6724_v4  ;;  %v2216_v31 = vld [vmem:[#allocation2 + $0x40] sm:$0xff] }
  0xa3   : > { %956 = vst [vmem:[#allocation2 + $0x60] sm:$0xcc] %v945_v7  ;;  %v1014_v10 = vrot.slane %v7787_v8, 4  ;;  %v1013_v11 = vrot.slane %v1004_v9, 4 }
  0xa4   : > { %1387 = vrot.lane.b32.xlu1 %v7669_v20, %s10299_s12  ;;  %1311 = vrot.lane.b32.xlu0 %v7688_v23, %s10300_s14 }
  0xa5   : > { %v1018_v12 = vsel %vm489_vm0, %v1013_v11, %v1014_v10 }
  0xa6   : > { %v1020_v13 = vsel %vm1019_vm8, %v1004_v9, %v1018_v12  ;;  %v7798_v14 = vpop.permute.xlu1 %1081  ;;  %v1080_v15 = vpop.permute.xlu0 %1079 }
  0xa7   : > { %1031 = vst [vmem:[#allocation2 + $0x80] sm:$0x33] %v1020_v13  ;;  %v1090_v16 = vrot.slane %v7798_v14, 4  ;;  %v1089_v18 = vrot.slane %v1080_v15, 4 }
  0xa8   : > { %1538 = vrot.lane.b32.xlu1 %v7669_v20, %s7479_s20  ;;  %1462 = vrot.lane.b32.xlu0 %v7688_v23, %s10301_s13 }
  0xa9   : > { %v1094_v19 = vsel %vm489_vm0, %v1089_v18, %v1090_v16 }
  0xaa   : > { %v1096_v25 = vsel %vm10298_vm9, %v1080_v15, %v1094_v19  ;;  %v7809_v28 = vpop.permute.xlu1 %1156  ;;  %v1155_v29 = vpop.permute.xlu0 %1154  ;;  %v2220_v34 = vld [vmem:[#allocation2 + $0x60] sm:$0xff]  ;;  %v2004_v19 = vcombine.high %v1984_v50, %v1984_v50 }
  0xab   : > { %1107 = vst [vmem:[#allocation2 + $0x80] sm:$0xcc] %v1096_v25  ;;  %v1165_v36 = vrot.slane %v7809_v28, 4  ;;  %v1164_v37 = vrot.slane %v1155_v29, 4  ;;  %v6733_v38 = vcombine.high %v2216_v31, %v2220_v34  ;;  %v6732_v39 = vcombine.low %v2216_v31, %v2220_v34 }
  0xac   : > { %1687 = vrot.lane.b32.xlu1 %v7672_v21, %s7481_s15  ;;  %1611 = vrot.lane.b32.xlu0 %v7669_v20, %s7480_s21 }
  0xad   : > { %v1169_v41 = vsel %vm489_vm0, %v1164_v37, %v1165_v36  ;;  %2568 = vmatprep.subr.bf16.mxu0 %v6733_v38 }
  0xae   : > { %v1171_v42 = vsel %vm1170_vm10, %v1155_v29, %v1169_v41  ;;  %v7820_v44 = vpop.permute.xlu1 %1232  ;;  %v1231_v45 = vpop.permute.xlu0 %1230  ;;  %2569 = vmatpush1.bf16.msra.mxu0 %v6732_v39  ;;  %v2018_v39 = vrot.slane %v2004_v19, %v7564_v5 }
  0xaf   : > { %1182 = vst [vmem:[#allocation2 + $0xa0] sm:$0x33] %v1171_v42  ;;  %v1241_v46 = vrot.slane %v7820_v44, 4  ;;  %v1240_v47 = vrot.slane %v1231_v45, 4 }
  0xb0   : > { %1838 = vrot.lane.b32.xlu1 %v7672_v21, %s7483_s19  ;;  %1762 = vrot.lane.b32.xlu0 %v7669_v20, %s7482_s16  ;;  %v1929_v21 = vcombine.low %v1984_v50, %v1984_v50 }
  0xb1   : > { %v1245_v48 = vsel %vm489_vm0, %v1240_v47, %v1241_v46 }
  0xb2   : > { %v1247_v52 = vsel %vm10297_vm11, %v1231_v45, %v1245_v48  ;;  %v7832_v53 = vpop.permute.xlu1 %1307  ;;  %v1306_v54 = vpop.permute.xlu0 %1305  ;;  %v1936_v4 = vrot.slane %v1929_v21, %v7564_v5  ;;  %v2224_v12 = vld [vmem:[#allocation2 + $0x80] sm:$0xff] }
  0xb3   : > { %1258 = vst [vmem:[#allocation2 + $0xa0] sm:$0xcc] %v1247_v52  ;;  %v1316_v56 = vrot.slane %v7832_v53, 4  ;;  %v1315_v58 = vrot.slane %v1306_v54, 4 }
  0xb4   : > { %1689 = vrot.lane.b32.xlu1 %v7669_v20, %s7481_s15  ;;  %1613 = vrot.lane.b32.xlu0 %v7688_v23, %s7480_s21  ;;  %v7346_v52 = vld [vmem:[%s7569_s22 + $0x10] ss:$0 sps:$4 sm:$0x33]  }
  0xb5   : > { %v1320_v59 = vsel %vm489_vm0, %v1315_v58, %v1316_v56  ;;  %v473_v22 = vrot.slane %v7346_v52, %v7564_v5  ;;  %v7349_v52 = vld [vmem:[%s7569_s22 + $0x10] ss:$0 sps:$4 sm:$0x33]  }
  0xb6   : > { %v1322_v60 = vsel %vm1321_vm12, %v1306_v54, %v1320_v59  ;;  %v7844_v62 = vpop.permute.xlu1 %1383  ;;  %v1382_v63 = vpop.permute.xlu0 %1381 }
  0xb7   : > { %1333 = vst [vmem:[#allocation2 + $0xc0] sm:$0x33] %v1322_v60  ;;  %v1392_v17 = vrot.slane %v7844_v62, 4  ;;  %v1391_v2 = vrot.slane %v1382_v63, 4 }
  0xb8   : > { %1840 = vrot.lane.b32.xlu1 %v7669_v20, %s7483_s19  ;;  %1764 = vrot.lane.b32.xlu0 %v7688_v23, %s7482_s16 }
  0xb9   : > { %v1396_v6 = vsel %vm489_vm0, %v1391_v2, %v1392_v17  ;;  %v7347_v2 = vld [vmem:[%s7569_s22 + $0x10] ss:$0 sps:$4 sm:$0x33]  }
  0xba   : > { %v1398_v7 = vsel %vm1397_vm13, %v1382_v63, %v1396_v6  ;;  %v7861_v9 = vpop.permute.xlu1 %1458  ;;  %v1457_v11 = vpop.permute.xlu0 %1456  ;;  %v2228_v13 = vld [vmem:[#allocation2 + $0xa0] sm:$0xff]  ;;  %v7902_v6 = vld.sshfl [vmem:[%s7569_s22 + $0x10] sm:$0x3 pattern:$0x76325410] }
  0xbb   : > { %1409 = vst [vmem:[#allocation2 + $0xc0] sm:$0xcc] %v1398_v7  ;;  %v1467_v20 = vrot.slane %v7861_v9, 4  ;;  %v1466_v23 = vrot.slane %v1457_v11, 4  ;;  %v6741_v15 = vcombine.high %v2224_v12, %v2228_v13  ;;  %v6740_v18 = vcombine.low %v2224_v12, %v2228_v13 }
  0xbc   : > { %2030 = vrot.lane.b32.xlu1 %v2011_v3, %s7465_s23  ;;  %1956 = vrot.lane.b32.xlu0 %v1936_v4, %s7466_s24 }
  0xbd   : > { %v1471_v25 = vsel %vm489_vm0, %v1466_v23, %v1467_v20  ;;  %2570 = vmatprep.subr.bf16.mxu0 %v6741_v15 }
  0xbe   : > { %v1473_v29 = vsel %vm10289_vm14, %v1457_v11, %v1471_v25  ;;  %v7870_v31 = vpop.permute.xlu1 %1534  ;;  %v1533_v34 = vpop.permute.xlu0 %1532  ;;  %2571 = vmatpush1.bf16.msra.mxu0 %v6740_v18  ;;  %vm10291_vm14 = vcmask 252928   ;;  %v625_v25 = vrot.slane %v7347_v2, %v7564_v5 }
  0xbf   : > { %1484 = vst [vmem:[#allocation2 + $0xe0] sm:$0x33] %v1473_v29  ;;  %v1543_v37 = vrot.slane %v7870_v31, 4  ;;  %v1542_v38 = vrot.slane %v1533_v34, 4 }
  0xc0   : > { %1958 = vrot.lane.b32.xlu1 %v2011_v3, %s7466_s24  ;;  %2105 = vrot.lane.b32.xlu0 %v1936_v4, %s7467_s25  ;;  %v7348_v29 = vld [vmem:[%s7569_s22 + $0x10] ss:$0 sps:$4 sm:$0x33]  }
  0xc1   : > { %v1547_v41 = vsel %vm489_vm0, %v1542_v38, %v1543_v37 }
  0xc2   : > { %v1549_v42 = vsel %vm10290_vm15, %v1533_v34, %v1547_v41  ;;  %v7880_v45 = vpop.permute.xlu1 %1609  ;;  %v1608_v47 = vpop.permute.xlu0 %1607  ;;  %vm10292_vm15 = vcmask 244736   ;;  %v2232_v13 = vld [vmem:[#allocation2 + $0xc0] sm:$0xff] }
  0xc3   : > { %1560 = vst [vmem:[#allocation2 + $0xe0] sm:$0xcc] %v1549_v42  ;;  %v1618_v48 = vrot.slane %v7880_v45, 4  ;;  %v1617_v50 = vrot.slane %v1608_v47, 4 }
  0xc4   : > { %2107 = vrot.lane.b32.xlu1 %v2011_v3, %s7467_s25  ;;  %2032 = vrot.lane.b32.xlu0 %v2018_v39, %s7465_s23 }
  0xc5   : > { %v1622_v54 = vsel %vm489_vm0, %v1617_v50, %v1618_v48  ;;  %v776_v50 = vrot.slane %v7348_v29, %v7564_v5  ;;  %v7351_v29 = vld [vmem:[%s7569_s22 + $0x10] ss:$0 sps:$4 sm:$0x33]  }
  0xc6   : > { %v1624_v58 = vsel %vm10291_vm14, %v1608_v47, %v1622_v54  ;;  %v7891_v21 = vpop.permute.xlu1 %1685  ;;  %v1684_v59 = vpop.permute.xlu0 %1683  ;;  %vm10295_vm14 = vcmask 236544  }
  0xc7   : > { %1635 = vst [vmem:[#allocation2 + $0x100] sm:$0x33] %v1624_v58  ;;  %v1694_v60 = vrot.slane %v7891_v21, 4  ;;  %v1693_v63 = vrot.slane %v1684_v59, 4 }
  0xc8   : > { %2181 = vrot.lane.b32.xlu1 %v2018_v39, %s7468_s26  ;;  %2179 = vrot.lane.b32.xlu0 %v2011_v3, %s7468_s26 }
  0xc9   : > { %v1698_v4 = vsel %vm489_vm0, %v1693_v63, %v1694_v60 }
  0xca   : > { %v1700_v7 = vsel %vm10292_vm15, %v1684_v59, %v1698_v4  ;;  %v7905_v11 = vpop.permute.xlu1 %1760  ;;  %v1759_v12 = vpop.permute.xlu0 %1758  ;;  %v2236_v23 = vld [vmem:[#allocation2 + $0xe0] sm:$0xff]  ;;  %vm1850_vm15 = vcmask 228352   ;;  %v927_v4 = vrot.slane %v7349_v52, %v7564_v5 }
  0xcb   : > { %1711 = vst [vmem:[#allocation2 + $0x100] sm:$0xcc] %v1700_v7  ;;  %v1769_v3 = vrot.slane %v7905_v11, 4  ;;  %v1768_v15 = vrot.slane %v1759_v12, 4  ;;  %v6749_v18 = vcombine.high %v2232_v13, %v2236_v23  ;;  %v6748_v19 = vcombine.low %v2232_v13, %v2236_v23 }
  0xcc   : > { %558 = vrot.lane.b32.xlu1 %v7902_v6, %s7465_s23  ;;  %482 = vrot.lane.b32.xlu0 %v473_v22, %s7466_s24  ;;  %v7350_v7 = vld [vmem:[%s7569_s22 + $0x10] ss:$0 sps:$4 sm:$0x33]  }
  0xcd   : > { %v1773_v34 = vsel %vm489_vm0, %v1768_v15, %v1769_v3  ;;  %2572 = vmatprep.subr.bf16.mxu0 %v6749_v18 }
  0xce   : > { %v1775_v38 = vsel %vm10295_vm14, %v1759_v12, %v1773_v34  ;;  %v7917_v39 = vpop.permute.xlu1 %1836  ;;  %v1835_v41 = vpop.permute.xlu0 %1834  ;;  %2573 = vmatpush1.bf16.msra.mxu0 %v6748_v19  ;;  %vm2541_vm14 = vcmask 1041408  }
  0xcf   : > { %1786 = vst [vmem:[#allocation2 + $0x120] sm:$0x33] %v1775_v38  ;;  %v1845_v42 = vrot.slane %v7917_v39, 4  ;;  %v1844_v47 = vrot.slane %v1835_v41, 4 }
  0xd0   : > { %709 = vrot.lane.b32.xlu1 %v7902_v6, %s7468_s26  ;;  %634 = vrot.lane.b32.xlu0 %v625_v25, %s7467_s25  ;;  %v1078_v25 = vrot.slane %v7350_v7, %v7564_v5  ;;  %v7352_v7 = vld [vmem:[%s7569_s22 + $0x10] ss:$0 sps:$4 sm:$0x33]  }
  0xd1   : > { %v1849_v54 = vsel %vm489_vm0, %v1844_v47, %v1845_v42 }
  0xd2   : > { %v1851_v58 = vsel %vm1850_vm15, %v1835_v41, %v1849_v54  ;;  %v7929_v59 = vpop.permute.xlu1 %1954  ;;  %v1953_v63 = vpop.permute.xlu0 %1952 }
  0xd3   : > { %1862 = vst [vmem:[#allocation2 + $0x120] sm:$0xcc] %v1851_v58  ;;  %v1963_v22 = vrot.slane %v7929_v59, 4  ;;  %v1962_v2 = vrot.slane %v1953_v63, 4 }
  0xd4   : > { %860 = vrot.lane.b32.xlu1 %v7902_v6, %s7470_s28  ;;  %785 = vrot.lane.b32.xlu0 %v776_v50, %s7469_s27  ;;  %v2240_v50 = vld [vmem:[#allocation2 + $0x100] sm:$0xff]  ;;  %s10302_s28 = smov 64  }
  0xd5   : > { %v1967_v12 = vsel %vm489_vm0, %v1962_v2, %v1963_v22 }
  0xd6   : > { %v1968_v13 = vsel %vm10296_vm2, %v1953_v63, %v1967_v12  ;;  %v7941_v23 = vpop.permute.xlu1 %2028  ;;  %v2027_v15 = vpop.permute.xlu0 %2026 }
  0xd7   : > { %1979 = vst [vmem:[#allocation2 + $0x140] sm:$0xcc] %v1968_v13  ;;  %v2037_v18 = vrot.slane %v7941_v23, 4  ;;  %v2036_v19 = vrot.slane %v2027_v15, 4 }
  0xd8   : > { %1011 = vrot.lane.b32.xlu1 %v7902_v6, %s7472_s30  ;;  %936 = vrot.lane.b32.xlu0 %v927_v4, %s7471_s29  ;;  %s10303_s29 = smov 92   ;;  %v1229_v4 = vrot.slane %v7351_v29, %v7564_v5  ;;  %s10304_s30 = smov 63   ;;  %v7353_v29 = vld [vmem:[%s7569_s22 + $0x10] ss:$0 sps:$4 sm:$0x33]  }
  0xd9   : > { %v2041_v34 = vsel %vm489_vm0, %v2036_v19, %v2037_v18 }
  0xda   : > { %v2042_v38 = vsel %vm566_vm1, %v2027_v15, %v2041_v34  ;;  %v7953_v41 = vpop.permute.xlu1 %2103  ;;  %v2102_v47 = vpop.permute.xlu0 %2101  ;;  %v2244_v52 = vld [vmem:[#allocation2 + $0x120] sm:$0xff] }
  0xdb   : > { %2053 = vst [vmem:[#allocation2 + $0x160] sm:$0x33] %v2042_v38  ;;  %v10294_v54 = vrot.slane %v7953_v41, 4  ;;  %v2111_v58 = vrot.slane %v2102_v47, 4  ;;  %v6757_v63 = vcombine.high %v2240_v50, %v2244_v52  ;;  %v6756_v2 = vcombine.low %v2240_v50, %v2244_v52 }
  0xdc   : > { %1162 = vrot.lane.b32.xlu1 %v7902_v6, %s10302_s28  ;;  %1087 = vrot.lane.b32.xlu0 %v1078_v25, %s10303_s29  ;;  %v1380_v25 = vrot.slane %v7352_v7, %v7564_v5  ;;  %v7354_v7 = vld [vmem:[%s7569_s22 + $0x10] ss:$0 sps:$4 sm:$0x33]   ;;  %s7487_s29 = smov 58  }
  0xdd   : > { %v2116_v12 = vsel %vm489_vm0, %v2111_v58, %v10294_v54  ;;  %2574 = vmatprep.subr.bf16.mxu0 %v6757_v63 }
  0xde   : > { %v2117_v13 = vsel %vm642_vm4, %v2102_v47, %v2116_v12  ;;  %v7965_v15 = vpop.permute.xlu1 %2177  ;;  %v2176_v19 = vpop.permute.xlu0 %2175  ;;  %2575 = vmatpush1.bf16.msra.mxu0 %v6756_v2 }
  0xdf   : > { %2128 = vst [vmem:[#allocation2 + $0x160] sm:$0xcc] %v2117_v13  ;;  %v10293_v34 = vrot.slane %v7965_v15, 4  ;;  %v2185_v38 = vrot.slane %v2176_v19, 4 }
  0xe0   : > { %1313 = vrot.lane.b32.xlu1 %v7902_v6, %s10300_s14  ;;  %1238 = vrot.lane.b32.xlu0 %v1229_v4, %s10304_s30  ;;  %v1531_v4 = vrot.slane %v7353_v29, %v7564_v5  ;;  %s7488_s30 = smov 56  }
  0xe1   : > { %v2190_v47 = vsel %vm489_vm0, %v2185_v38, %v10293_v34 }
  0xe2   : > { %v2191_v50 = vsel %vm717_vm3, %v2176_v19, %v2190_v47  ;;  %v555_v52 = vpop.permute.xlu1 %554  ;;  %v479_v58 = vpop.permute.xlu0 %478  ;;  %v2248_v47 = vld [vmem:[#allocation2 + $0x140] sm:$0xff] }
  0xe3   : > { %2202 = vst [vmem:[#allocation2 + $0x180] sm:$0x33] %v2191_v50  ;;  %v562_v63 = vrot.slane %v555_v52, 4  ;;  %v486_v2 = vrot.slane %v479_v58, 4 }
  0xe4   : > { %1464 = vrot.lane.b32.xlu1 %v7902_v6, %s10301_s13  ;;  %1389 = vrot.lane.b32.xlu0 %v1380_v25, %s10299_s12 }
  0xe5   : > { %v568_v12 = vsel %vm489_vm0, %v561_v33, %v562_v63  ;;  %v493_v13 = vsel %vm489_vm0, %v485_v32, %v486_v2 }
  0xe6   : > { %v569_v19 = vsel %vm566_vm1, %v7722_v30, %v568_v12  ;;  %v494_v38 = vsel %vm10296_vm2, %v7710_v26, %v493_v13  ;;  %v7992_v25 = vpop.permute.xlu1 %480  ;;  %v631_v29 = vpop.permute.xlu0 %630  ;;  %v2252_v50 = vld [vmem:[#allocation2 + $0x160] sm:$0xff]  ;;  %v1682_v30 = vrot.slane %v7354_v7, %v7564_v5  ;;  %v7357_v26 = vld [vmem:[%s7569_s22 + $0x12] ss:$0 sps:$4 sm:$0x33]  }
  0xe7   : > { %579 = vst [vmem:[#allocation2 + $0x28] sm:$0x33] %v569_v19  ;;  %504 = vst [vmem:[#allocation2 + $0x8] sm:$0xcc] %v494_v38  ;;  %v487_v33 = vrot.slane %v7992_v25, 4  ;;  %v638_v34 = vrot.slane %v631_v29, 4  ;;  %v6765_v54 = vcombine.high %v2248_v47, %v2252_v50  ;;  %v6764_v32 = vcombine.low %v2248_v47, %v2252_v50 }
  0xe8   : > { %1615 = vrot.lane.b32.xlu1 %v7902_v6, %s7480_s21  ;;  %1540 = vrot.lane.b32.xlu0 %v1531_v4, %s7479_s20  ;;  %v7358_v12 = vld [vmem:[%s7569_s22 + $0x10] ss:$0 sps:$4 sm:$0x33]   ;;  %s7485_s20 = smov 122   ;;  %s7486_s21 = smov 120  }
  0xe9   : > { %v495_v13 = vsel %vm489_vm0, %v486_v2, %v487_v33  ;;  %v644_v19 = vsel %vm489_vm0, %v637_v35, %v638_v34  ;;  %2576 = vmatprep.subr.bf16.mxu0 %v6765_v54  ;;  %v1885_v2 = vcombine.high %v7847_v0, %v7847_v0 }
  0xea   : > { %v496_v38 = vsel %vm10296_vm2, %v479_v58, %v495_v13  ;;  %v645_v47 = vsel %vm642_vm4, %v7716_v27, %v644_v19  ;;  %v8010_v50 = vpop.permute.xlu1 %632  ;;  %v8012_v4 = vpop.permute.xlu0 %556  ;;  %2577 = vmatpush1.bf16.msra.mxu0 %v6764_v32  ;;  %v2256_v7 = vld [vmem:[#allocation2 + $0x180] sm:$0x33]  ;;  %v1951_v27 = vrot.slane %v7357_v26, %v7564_v5  ;;  %v1833_v32 = vrot.slane %v7358_v12, %v7564_v5  ;;  %v7359_v19 = vld [vmem:[%s7569_s22 + $0x12] ss:$0 sps:$4 sm:$0x33]  }
  0xeb   : > { %505 = vst [vmem:[#allocation2 + $0x10] sm:$0xcc] %v496_v38  ;;  %655 = vst [vmem:[#allocation2 + $0x28] sm:$0xcc] %v645_v47  ;;  %v639_v35 = vrot.slane %v8010_v50, 4  ;;  %v563_v54 = vrot.slane %v8012_v4, 4  ;;  %v6773_v58 = vcombine.high %v2256_v7, %v2256_v7  ;;  %v6772_v13 = vcombine.low %v2256_v7, %v2256_v7 }
  0xec   : > { %1766 = vrot.lane.b32.xlu1 %v7902_v6, %s7482_s16  ;;  %1691 = vrot.lane.b32.xlu0 %v1682_v30, %s7481_s15  ;;  %6720 = vst.sshfl [vmem:[#allocation2 + $0x158] sm:$0xf pattern:$0x76325410] %v1885_v2  ;;  %v8035_v30 = vld [vmem:[%s10268_s1] sm:$0xff]   ;;  %vm2537_vm2 = vcmask 818176   ;;  %v2100_v2 = vrot.slane %v7359_v19, %v7564_v5 }
  0xed   : > { %v646_v0 = vsel %vm489_vm0, %v638_v34, %v639_v35  ;;  %v570_v38 = vsel %vm489_vm0, %v562_v63, %v563_v54  ;;  %6780 = vmatprep.subr.msk.bf16.mxu0 %vm2541_vm14, %v6773_v58  ;;  %v2543_v6 = vsel %vm2541_vm14, %v6772_v13, 0  ;;  %v6721_v58 = vld.sshfl [vmem:[%s7569_s22 + $0x12] sm:$0x3 pattern:$0x76325410] }
  0xee   : > { %v647_v26 = vsel %vm642_vm4, %v631_v29, %v646_v0  ;;  %v571_v12 = vsel %vm566_vm1, %v555_v52, %v570_v38  ;;  %v782_v47 = vpop.permute.xlu1 %781  ;;  %v706_v34 = vpop.permute.xlu0 %705  ;;  %2579 = vmatpush1.bf16.msra.mxu0 %v2543_v6  ;;  %v2209_v19 = vld [vmem:[#allocation2 + $0x8] sm:$0xff] }
  0xef   : > { %656 = vst [vmem:[#allocation2 + $0x30] sm:$0xcc] %v647_v26  ;;  %580 = vst [vmem:[#allocation2 + $0x30] sm:$0x33] %v571_v12  ;;  %v789_v63 = vrot.slane %v782_v47, 4  ;;  %v713_v7 = vrot.slane %v706_v34, 4 }
  0xf0   : > { %1960 = vrot.lane.b32.xlu1 %v1951_v27, %s7466_s24  ;;  %1842 = vrot.lane.b32.xlu0 %v1833_v32, %s7483_s19 }
  0xf1   : > { %v795_v29 = vsel %vm489_vm0, %v788_v51, %v789_v63  ;;  %v719_v52 = vsel %vm489_vm0, %v712_v43, %v713_v7  ;;  %6781 = vmatmul.mubr.msk.bf16.vlgmr.msra.gmra.mrb[0].mxu0 %vm2537_vm2, %v8035_v30 }
  0xf2   : > { %v796_v13 = vsel %vm793_vm5, %v7754_v49, %v795_v29  ;;  %v720_v27 = vsel %vm717_vm3, %v7739_v40, %v719_v52  ;;  %v933_v32 = vpop.permute.xlu1 %932  ;;  %v857_v5 = vpop.permute.xlu0 %856  ;;  %v2213_v0 = vld [vmem:[#allocation2 + $0x28] sm:$0xff]  ;;  %2684 = vmatprep.mubr.bf16.mxu0 %v7484_v24  ;;  %v2210_v52 = vld [vmem:[#allocation2 + $0x10] sm:$0xff] }
  0xf3   : > { %806 = vst [vmem:[#allocation2 + $0x48] sm:$0xcc] %v796_v13  ;;  %730 = vst [vmem:[#allocation2 + $0x48] sm:$0x33] %v720_v27  ;;  %v940_v51 = vrot.slane %v933_v32, 4  ;;  %v864_v43 = vrot.slane %v857_v5, 4  ;;  %v6727_v38 = vcombine.high %v2209_v19, %v2213_v0  ;;  %v6726_v6 = vcombine.low %v2209_v19, %v2213_v0 }
  0xf4   : > { %2109 = vrot.lane.b32.xlu1 %v2100_v2, %s7467_s25  ;;  %2034 = vrot.lane.b32.xlu0 %v6721_v58, %s7465_s23  ;;  %s7490_s25 = smov 116  }
  0xf5   : > { %v946_v40 = vsel %vm489_vm0, %v939_v1, %v940_v51  ;;  %v870_v49 = vsel %vm489_vm0, %v863_v57, %v864_v43  ;;  %2609 = vmatprep.subr.bf16.mxu1 %v6727_v38 }
  0xf6   : > { %v947_v26 = vsel %vm944_vm7, %v7776_v61, %v946_v40  ;;  %v871_v12 = vsel %vm868_vm6, %v7765_v55, %v870_v49  ;;  %v8068_v29 = vpop.permute.xlu1 %783  ;;  %v8070_v2 = vpop.permute.xlu0 %707  ;;  %2610 = vmatpush1.bf16.msra.mxu1 %v6726_v6  ;;  %v2214_v13 = vld [vmem:[#allocation2 + $0x30] sm:$0xff] }
  0xf7   : > { %957 = vst [vmem:[#allocation2 + $0x68] sm:$0xcc] %v947_v26  ;;  %881 = vst [vmem:[#allocation2 + $0x68] sm:$0x33] %v871_v12  ;;  %v790_v1 = vrot.slane %v8068_v29, 4  ;;  %v714_v57 = vrot.slane %v8070_v2, 4  ;;  %v6728_v27 = vcombine.low %v2210_v52, %v2214_v13  ;;  %v6729_v19 = vcombine.high %v2210_v52, %v2214_v13 }
  0xf8   : > { %2183 = vrot.lane.b32.xlu0 %v6721_v58, %s7468_s26  ;;  %v2260_v58 = vld [vmem:[%s10269_s2] sm:$0xff] }
  0xf9   : > { %v797_v55 = vsel %vm489_vm0, %v789_v63, %v790_v1  ;;  %v721_v61 = vsel %vm489_vm0, %v713_v7, %v714_v57  ;;  %2652 = vmatprep.subr.bf16.mxu0 %v6729_v19  ;;  %v2261_v63 = vld [vmem:[%s10269_s2 + $0x8] sm:$0xff]  ;;  %2264 = vperm.xlu1 %7271, %v2260_v58  }
  0xfa   : > { %v798_v0 = vsel %vm793_vm5, %v782_v47, %v797_v55  ;;  %v722_v38 = vsel %vm717_vm3, %v706_v34, %v721_v61  ;;  %v8083_v6 = vpop.permute.xlu1 %934  ;;  %v8085_v40 = vpop.permute.xlu0 %858  ;;  %2653 = vmatpush1.bf16.msra.mxu0 %v6728_v27  ;;  %v2217_v27 = vld [vmem:[#allocation2 + $0x48] sm:$0xff] }
  0xfb   : > { %807 = vst [vmem:[#allocation2 + $0x50] sm:$0xcc] %v798_v0  ;;  %731 = vst [vmem:[#allocation2 + $0x50] sm:$0x33] %v722_v38  ;;  %v941_v7 = vrot.slane %v8083_v6, 4  ;;  %v865_v47 = vrot.slane %v8085_v40, 4 }
  0xfc   : > { %2269 = vperm.xlu0 %7272, %v2261_v63  }
  0xfd   : > { %v948_v34 = vsel %vm489_vm0, %v940_v51, %v941_v7  ;;  %v872_v49 = vsel %vm489_vm0, %v864_v43, %v865_v47 }
  0xfe   : > { %v949_v26 = vsel %vm944_vm7, %v933_v32, %v948_v34  ;;  %v873_v12 = vsel %vm868_vm6, %v857_v5, %v872_v49  ;;  %v1084_v52 = vpop.permute.xlu1 %1083  ;;  %v1008_v13 = vpop.permute.xlu0 %1007  ;;  %v2221_v19 = vld [vmem:[#allocation2 + $0x68] sm:$0xff] }
  0xff   : > { %958 = vst [vmem:[#allocation2 + $0x70] sm:$0xcc] %v949_v26  ;;  %882 = vst [vmem:[#allocation2 + $0x70] sm:$0x33] %v873_v12  ;;  %v1091_v55 = vrot.slane %v1084_v52, 4  ;;  %v1015_v61 = vrot.slane %v1008_v13, 4  ;;  %v6735_v0 = vcombine.high %v2217_v27, %v2221_v19  ;;  %v6734_v38 = vcombine.low %v2217_v27, %v2221_v19 }
 0x100   : > { %2813 = vrot.lane.b32.xlu0 %v7484_v24, %s7466_s24 }
 0x101   : > { %v1097_v51 = vsel %vm489_vm0, %v1090_v16, %v1091_v55  ;;  %v1021_v32 = vsel %vm489_vm0, %v1014_v10, %v1015_v61  ;;  %2611 = vmatprep.subr.bf16.mxu1 %v6735_v0 }
 0x102   : > { %v1098_v5 = vsel %vm10298_vm9, %v7798_v14, %v1097_v51  ;;  %v1022_v43 = vsel %vm1019_vm8, %v7787_v8, %v1021_v32  ;;  %v1235_v58 = vpop.permute.xlu1 %1234  ;;  %v1159_v63 = vpop.permute.xlu0 %1158  ;;  %2612 = vmatpush1.bf16.msra.mxu1 %v6734_v38  ;;  %v2218_v27 = vld [vmem:[#allocation2 + $0x50] sm:$0xff] }
 0x103   : > { %1108 = vst [vmem:[#allocation2 + $0x88] sm:$0xcc] %v1098_v5  ;;  %1032 = vst [vmem:[#allocation2 + $0x88] sm:$0x33] %v1022_v43  ;;  %v1242_v34 = vrot.slane %v1235_v58, 4  ;;  %v1166_v49 = vrot.slane %v1159_v63, 4 }
 0x105   : > { %v1248_v16 = vsel %vm489_vm0, %v1241_v46, %v1242_v34  ;;  %v1172_v10 = vsel %vm489_vm0, %v1165_v36, %v1166_v49 }
 0x106   : > { %v1249_v14 = vsel %vm10297_vm11, %v7820_v44, %v1248_v16  ;;  %v1173_v8 = vsel %vm1170_vm10, %v7809_v28, %v1172_v10  ;;  %v8125_v26 = vpop.permute.xlu1 %1085  ;;  %v8127_v12 = vpop.permute.xlu0 %1009  ;;  %v2222_v19 = vld [vmem:[#allocation2 + $0x70] sm:$0xff] }
 0x107   : > { %1259 = vst [vmem:[#allocation2 + $0xa8] sm:$0xcc] %v1249_v14  ;;  %1183 = vst [vmem:[#allocation2 + $0xa8] sm:$0x33] %v1173_v8  ;;  %v1092_v46 = vrot.slane %v8125_v26, 4  ;;  %v1016_v0 = vrot.slane %v8127_v12, 4  ;;  %v6736_v38 = vcombine.low %v2218_v27, %v2222_v19  ;;  %v6737_v36 = vcombine.high %v2218_v27, %v2222_v19 }
 0x109   : > { %v1099_v44 = vsel %vm489_vm0, %v1091_v55, %v1092_v46  ;;  %v1023_v28 = vsel %vm489_vm0, %v1015_v61, %v1016_v0  ;;  %2654 = vmatprep.subr.bf16.mxu0 %v6737_v36 }
 0x10a   : > { %v1100_v51 = vsel %vm10298_vm9, %v1084_v52, %v1099_v44  ;;  %v1024_v32 = vsel %vm1019_vm8, %v1008_v13, %v1023_v28  ;;  %v8139_v5 = vpop.permute.xlu1 %1236  ;;  %v8141_v43 = vpop.permute.xlu0 %1160  ;;  %2655 = vmatpush1.bf16.msra.mxu0 %v6736_v38  ;;  %v2225_v27 = vld [vmem:[#allocation2 + $0x88] sm:$0xff]  ;;  %vm10306_vm9 = vcmask 490496  }
 0x10b   : > { %1109 = vst [vmem:[#allocation2 + $0x90] sm:$0xcc] %v1100_v51  ;;  %1033 = vst [vmem:[#allocation2 + $0x90] sm:$0x33] %v1024_v32  ;;  %v1243_v16 = vrot.slane %v8139_v5, 4  ;;  %v1167_v55 = vrot.slane %v8141_v43, 4 }
 0x10d   : > { %v1250_v61 = vsel %vm489_vm0, %v1242_v34, %v1243_v16  ;;  %v1174_v52 = vsel %vm489_vm0, %v1166_v49, %v1167_v55 }
 0x10e   : > { %v1251_v13 = vsel %vm10297_vm11, %v1235_v58, %v1250_v61  ;;  %v1175_v10 = vsel %vm1170_vm10, %v1159_v63, %v1174_v52  ;;  %v1386_v14 = vpop.permute.xlu1 %1385  ;;  %v1310_v8 = vpop.permute.xlu0 %1309  ;;  %v2229_v19 = vld [vmem:[#allocation2 + $0xa8] sm:$0xff]  ;;  %vm10305_vm11 = vcmask 261120  }
 0x10f   : > { %1260 = vst [vmem:[#allocation2 + $0xb0] sm:$0xcc] %v1251_v13  ;;  %1184 = vst [vmem:[#allocation2 + $0xb0] sm:$0x33] %v1175_v10  ;;  %v1393_v38 = vrot.slane %v1386_v14, 4  ;;  %v1317_v36 = vrot.slane %v1310_v8, 4  ;;  %v6743_v44 = vcombine.high %v2225_v27, %v2229_v19  ;;  %v6742_v28 = vcombine.low %v2225_v27, %v2229_v19 }
 0x111   : > { %v1399_v34 = vsel %vm489_vm0, %v1392_v17, %v1393_v38  ;;  %v1323_v58 = vsel %vm489_vm0, %v1316_v56, %v1317_v36  ;;  %2613 = vmatprep.subr.bf16.mxu1 %v6743_v44 }
 0x112   : > { %v1400_v63 = vsel %vm1397_vm13, %v7844_v62, %v1399_v34  ;;  %v1324_v49 = vsel %vm1321_vm12, %v7832_v53, %v1323_v58  ;;  %v1537_v51 = vpop.permute.xlu1 %1536  ;;  %v1461_v32 = vpop.permute.xlu0 %1460  ;;  %2614 = vmatpush1.bf16.msra.mxu1 %v6742_v28  ;;  %v2226_v27 = vld [vmem:[#allocation2 + $0x90] sm:$0xff] }
 0x113   : > { %1410 = vst [vmem:[#allocation2 + $0xc8] sm:$0xcc] %v1400_v63  ;;  %1334 = vst [vmem:[#allocation2 + $0xc8] sm:$0x33] %v1324_v49  ;;  %v1544_v61 = vrot.slane %v1537_v51, 4  ;;  %v1468_v52 = vrot.slane %v1461_v32, 4 }
 0x115   : > { %v1550_v17 = vsel %vm489_vm0, %v1543_v37, %v1544_v61  ;;  %v1474_v56 = vsel %vm489_vm0, %v1467_v20, %v1468_v52 }
 0x116   : > { %v1551_v62 = vsel %vm10305_vm11, %v7870_v31, %v1550_v17  ;;  %v1475_v53 = vsel %vm10306_vm9, %v7861_v9, %v1474_v56  ;;  %v8173_v13 = vpop.permute.xlu1 %1387  ;;  %v8175_v10 = vpop.permute.xlu0 %1311  ;;  %v2230_v19 = vld [vmem:[#allocation2 + $0xb0] sm:$0xff]  ;;  %vm10307_vm9 = vmmov %vm10305_vm11  ;;  %vm10308_vm11 = vcmask 490496  }
 0x117   : > { %1561 = vst [vmem:[#allocation2 + $0xe8] sm:$0xcc] %v1551_v62  ;;  %1485 = vst [vmem:[#allocation2 + $0xe8] sm:$0x33] %v1475_v53  ;;  %v1394_v37 = vrot.slane %v8173_v13, 4  ;;  %v1318_v44 = vrot.slane %v8175_v10, 4  ;;  %v6744_v28 = vcombine.low %v2226_v27, %v2230_v19  ;;  %v6745_v20 = vcombine.high %v2226_v27, %v2230_v19 }
 0x119   : > { %v1401_v31 = vsel %vm489_vm0, %v1393_v38, %v1394_v37  ;;  %v1325_v9 = vsel %vm489_vm0, %v1317_v36, %v1318_v44  ;;  %2656 = vmatprep.subr.bf16.mxu0 %v6745_v20 }
 0x11a   : > { %v1402_v34 = vsel %vm1397_vm13, %v1386_v14, %v1401_v31  ;;  %v1326_v58 = vsel %vm1321_vm12, %v1310_v8, %v1325_v9  ;;  %v8187_v63 = vpop.permute.xlu1 %1538  ;;  %v8189_v49 = vpop.permute.xlu0 %1462  ;;  %2657 = vmatpush1.bf16.msra.mxu0 %v6744_v28  ;;  %v2233_v27 = vld [vmem:[#allocation2 + $0xc8] sm:$0xff] }
 0x11b   : > { %1411 = vst [vmem:[#allocation2 + $0xd0] sm:$0xcc] %v1402_v34  ;;  %1335 = vst [vmem:[#allocation2 + $0xd0] sm:$0x33] %v1326_v58  ;;  %v1545_v17 = vrot.slane %v8187_v63, 4  ;;  %v1469_v38 = vrot.slane %v8189_v49, 4 }
 0x11d   : > { %v1552_v36 = vsel %vm489_vm0, %v1544_v61, %v1545_v17  ;;  %v1476_v14 = vsel %vm489_vm0, %v1468_v52, %v1469_v38 }
 0x11e   : > { %v1553_v8 = vsel %vm10307_vm9, %v1537_v51, %v1552_v36  ;;  %v1477_v56 = vsel %vm10308_vm11, %v1461_v32, %v1476_v14  ;;  %v1688_v62 = vpop.permute.xlu1 %1687  ;;  %v1612_v53 = vpop.permute.xlu0 %1611  ;;  %v2237_v19 = vld [vmem:[#allocation2 + $0xe8] sm:$0xff]  ;;  %vm10309_vm9 = vcmask 244736   ;;  %vm10310_vm11 = vcmask 252928  }
 0x11f   : > { %1562 = vst [vmem:[#allocation2 + $0xf0] sm:$0xcc] %v1553_v8  ;;  %1486 = vst [vmem:[#allocation2 + $0xf0] sm:$0x33] %v1477_v56  ;;  %v1695_v28 = vrot.slane %v1688_v62, 4  ;;  %v1619_v20 = vrot.slane %v1612_v53, 4  ;;  %v6751_v31 = vcombine.high %v2233_v27, %v2237_v19  ;;  %v6750_v9 = vcombine.low %v2233_v27, %v2237_v19 }
 0x121   : > { %v1701_v61 = vsel %vm489_vm0, %v1694_v60, %v1695_v28  ;;  %v1625_v51 = vsel %vm489_vm0, %v1618_v48, %v1619_v20  ;;  %2615 = vmatprep.subr.bf16.mxu1 %v6751_v31 }
 0x122   : > { %v1702_v32 = vsel %vm10309_vm9, %v7891_v21, %v1701_v61  ;;  %v1626_v52 = vsel %vm10310_vm11, %v7880_v45, %v1625_v51  ;;  %v1839_v34 = vpop.permute.xlu1 %1838  ;;  %v1763_v58 = vpop.permute.xlu0 %1762  ;;  %2616 = vmatpush1.bf16.msra.mxu1 %v6750_v9  ;;  %vm10311_vm9 = vcmask 236544   ;;  %v2234_v27 = vld [vmem:[#allocation2 + $0xd0] sm:$0xff]  ;;  %vm10312_vm11 = vcmask 244736  }
 0x123   : > { %1712 = vst [vmem:[#allocation2 + $0x108] sm:$0xcc] %v1702_v32  ;;  %1636 = vst [vmem:[#allocation2 + $0x108] sm:$0x33] %v1626_v52  ;;  %v1846_v36 = vrot.slane %v1839_v34, 4  ;;  %v1770_v14 = vrot.slane %v1763_v58, 4 }
 0x125   : > { %v1852_v60 = vsel %vm489_vm0, %v1845_v42, %v1846_v36  ;;  %v1776_v48 = vsel %vm489_vm0, %v1769_v3, %v1770_v14 }
 0x126   : > { %v1853_v21 = vsel %vm1850_vm15, %v7917_v39, %v1852_v60  ;;  %v1777_v45 = vsel %vm10311_vm9, %v7905_v11, %v1776_v48  ;;  %v8221_v8 = vpop.permute.xlu1 %1689  ;;  %v8223_v56 = vpop.permute.xlu0 %1613  ;;  %v2238_v19 = vld [vmem:[#allocation2 + $0xf0] sm:$0xff]  ;;  %vm10313_vm9 = vcmask 252928  }
 0x127   : > { %1863 = vst [vmem:[#allocation2 + $0x128] sm:$0xcc] %v1853_v21  ;;  %1787 = vst [vmem:[#allocation2 + $0x128] sm:$0x33] %v1777_v45  ;;  %v1696_v42 = vrot.slane %v8221_v8, 4  ;;  %v1620_v31 = vrot.slane %v8223_v56, 4  ;;  %v6752_v9 = vcombine.low %v2234_v27, %v2238_v19  ;;  %v6753_v3 = vcombine.high %v2234_v27, %v2238_v19 }
 0x129   : > { %v1703_v39 = vsel %vm489_vm0, %v1695_v28, %v1696_v42  ;;  %v1627_v11 = vsel %vm489_vm0, %v1619_v20, %v1620_v31  ;;  %2658 = vmatprep.subr.bf16.mxu0 %v6753_v3 }
 0x12a   : > { %v1704_v61 = vsel %vm10312_vm11, %v1688_v62, %v1703_v39  ;;  %v1628_v51 = vsel %vm10313_vm9, %v1612_v53, %v1627_v11  ;;  %v8235_v32 = vpop.permute.xlu1 %1840  ;;  %v8237_v52 = vpop.permute.xlu0 %1764  ;;  %2659 = vmatpush1.bf16.msra.mxu0 %v6752_v9  ;;  %vm10314_vm11 = vcmask 236544   ;;  %v2241_v27 = vld [vmem:[#allocation2 + $0x108] sm:$0xff]  ;;  %vm10315_vm9 = vcmask 1039360  }
 0x12b   : > { %1713 = vst [vmem:[#allocation2 + $0x110] sm:$0xcc] %v1704_v61  ;;  %1637 = vst [vmem:[#allocation2 + $0x110] sm:$0x33] %v1628_v51  ;;  %v1847_v60 = vrot.slane %v8235_v32, 4  ;;  %v1771_v28 = vrot.slane %v8237_v52, 4 }
 0x12d   : > { %v1854_v20 = vsel %vm489_vm0, %v1846_v36, %v1847_v60  ;;  %v1778_v62 = vsel %vm489_vm0, %v1770_v14, %v1771_v28 }
 0x12e   : > { %v1855_v53 = vsel %vm1850_vm15, %v1839_v34, %v1854_v20  ;;  %v1779_v48 = vsel %vm10314_vm11, %v1763_v58, %v1778_v62  ;;  %v2031_v21 = vpop.permute.xlu1 %2030  ;;  %v1957_v45 = vpop.permute.xlu0 %1956  ;;  %v2245_v19 = vld [vmem:[#allocation2 + $0x128] sm:$0xff]  ;;  %v10316_v62 = vrot.slane %v7953_v41, 4  ;;  %vm10317_vm11 = vmmov %vm10315_vm9 }
 0x12f   : > { %1864 = vst [vmem:[#allocation2 + $0x130] sm:$0xcc] %v1855_v53  ;;  %1788 = vst [vmem:[#allocation2 + $0x130] sm:$0x33] %v1779_v48  ;;  %v2038_v9 = vrot.slane %v2031_v21, 4  ;;  %v1964_v3 = vrot.slane %v1957_v45, 4  ;;  %v6759_v39 = vcombine.high %v2241_v27, %v2245_v19  ;;  %v6758_v11 = vcombine.low %v2241_v27, %v2245_v19 }
 0x131   : > { %v2043_v36 = vsel %vm489_vm0, %v2037_v18, %v2038_v9  ;;  %v1969_v34 = vsel %vm489_vm0, %v1963_v22, %v1964_v3  ;;  %2617 = vmatprep.subr.bf16.mxu1 %v6759_v39 }
 0x132   : > { %v2044_v58 = vsel %vm566_vm1, %v7941_v23, %v2043_v36  ;;  %v1970_v14 = vsel %vm10315_vm9, %v7929_v59, %v1969_v34  ;;  %v8259_v61 = vpop.permute.xlu1 %1958  ;;  %v2106_v51 = vpop.permute.xlu0 %2105  ;;  %2618 = vmatpush1.bf16.msra.mxu1 %v6758_v11  ;;  %v2242_v19 = vld [vmem:[#allocation2 + $0x110] sm:$0xff] }
 0x133   : > { %2054 = vst [vmem:[#allocation2 + $0x168] sm:$0x33] %v2044_v58  ;;  %1980 = vst [vmem:[#allocation2 + $0x148] sm:$0xcc] %v1970_v14  ;;  %v1965_v20 = vrot.slane %v8259_v61, 4  ;;  %v2113_v18 = vrot.slane %v2106_v51, 4 }
 0x135   : > { %v1971_v22 = vsel %vm489_vm0, %v1964_v3, %v1965_v20  ;;  %v2118_v23 = vsel %vm489_vm0, %v10316_v62, %v2113_v18 }
 0x136   : > { %v1972_v53 = vsel %vm10317_vm11, %v1957_v45, %v1971_v22  ;;  %v2119_v59 = vsel %vm642_vm4, %v7953_v41, %v2118_v23  ;;  %v8271_v48 = vpop.permute.xlu1 %2107  ;;  %v8273_v27 = vpop.permute.xlu0 %2032  ;;  %v2246_v39 = vld [vmem:[#allocation2 + $0x130] sm:$0xff]  ;;  %vm10322_vm11 = vcmask 252928  }
 0x137   : > { %1981 = vst [vmem:[#allocation2 + $0x150] sm:$0xcc] %v1972_v53  ;;  %2129 = vst [vmem:[#allocation2 + $0x168] sm:$0xcc] %v2119_v59  ;;  %v2114_v11 = vrot.slane %v8271_v48, 4  ;;  %v2039_v3 = vrot.slane %v8273_v27, 4  ;;  %v6760_v36 = vcombine.low %v2242_v19, %v2246_v39  ;;  %v6761_v34 = vcombine.high %v2242_v19, %v2246_v39 }
 0x139   : > { %v2120_v45 = vsel %vm489_vm0, %v2113_v18, %v2114_v11  ;;  %v2045_v41 = vsel %vm489_vm0, %v2038_v9, %v2039_v3  ;;  %2660 = vmatprep.subr.bf16.mxu0 %v6761_v34  ;;  %v10318_v18 = vrot.slane %v7965_v15, 4 }
 0x13a   : > { %v2121_v58 = vsel %vm642_vm4, %v2106_v51, %v2120_v45  ;;  %v2046_v14 = vsel %vm566_vm1, %v2031_v21, %v2045_v41  ;;  %v8285_v22 = vpop.permute.xlu1 %2181  ;;  %v2180_v62 = vpop.permute.xlu0 %2179  ;;  %2661 = vmatpush1.bf16.msra.mxu0 %v6760_v36  ;;  %v2249_v36 = vld [vmem:[#allocation2 + $0x148] sm:$0xff] }
 0x13b   : > { %2130 = vst [vmem:[#allocation2 + $0x170] sm:$0xcc] %v2121_v58  ;;  %2055 = vst [vmem:[#allocation2 + $0x170] sm:$0x33] %v2046_v14  ;;  %v2188_v23 = vrot.slane %v8285_v22, 4  ;;  %v2187_v53 = vrot.slane %v2180_v62, 4 }
 0x13d   : > { %v2192_v59 = vsel %vm489_vm0, %v10318_v18, %v2187_v53  ;;  %v2194_v9 = vsel %vm489_vm0, %v2187_v53, %v2188_v23 }
 0x13e   : > { %v2193_v21 = vsel %vm717_vm3, %v7965_v15, %v2192_v59  ;;  %v2195_v51 = vsel %vm717_vm3, %v2180_v62, %v2194_v9  ;;  %v559_v19 = vpop.permute.xlu1 %558  ;;  %v483_v39 = vpop.permute.xlu0 %482  ;;  %v2253_v34 = vld [vmem:[#allocation2 + $0x168] sm:$0xff] }
 0x13f   : > { %2203 = vst [vmem:[#allocation2 + $0x188] sm:$0x33] %v2193_v21  ;;  %2204 = vst [vmem:[#allocation2 + $0x190] sm:$0x33] %v2195_v51  ;;  %v564_v45 = vrot.slane %v559_v19, 4  ;;  %v488_v41 = vrot.slane %v483_v39, 4  ;;  %v6767_v58 = vcombine.high %v2249_v36, %v2253_v34  ;;  %v6766_v14 = vcombine.low %v2249_v36, %v2253_v34 }
 0x140   : > { %v2250_v21 = vld [vmem:[#allocation2 + $0x150] sm:$0xff] }
 0x141   : > { %v572_v18 = vsel %vm489_vm0, %v563_v54, %v564_v45  ;;  %v497_v15 = vsel %vm489_vm0, %v487_v33, %v488_v41  ;;  %2619 = vmatprep.subr.bf16.mxu1 %v6767_v58 }
 0x142   : > { %v573_v62 = vsel %vm566_vm1, %v8012_v4, %v572_v18  ;;  %v498_v53 = vsel %vm10315_vm9, %v7992_v25, %v497_v15  ;;  %v710_v59 = vpop.permute.xlu1 %709  ;;  %v635_v9 = vpop.permute.xlu0 %634  ;;  %2620 = vmatpush1.bf16.msra.mxu1 %v6766_v14  ;;  %v2254_v51 = vld [vmem:[#allocation2 + $0x170] sm:$0xff]  ;;  %vm10324_vm9 = vcmask 236544  }
 0x143   : > { %581 = vst [vmem:[#allocation2 + $0x38] sm:$0x33] %v573_v62  ;;  %506 = vst [vmem:[#allocation2 + $0x18] sm:$0xcc] %v498_v53  ;;  %v715_v19 = vrot.slane %v710_v59, 4  ;;  %v640_v54 = vrot.slane %v635_v9, 4  ;;  %v6768_v39 = vcombine.low %v2250_v21, %v2254_v51  ;;  %v6769_v36 = vcombine.high %v2250_v21, %v2254_v51 }
 0x145   : > { %v723_v33 = vsel %vm489_vm0, %v714_v57, %v715_v19  ;;  %v648_v4 = vsel %vm489_vm0, %v639_v35, %v640_v54  ;;  %2662 = vmatprep.subr.bf16.mxu0 %v6769_v36 }
 0x146   : > { %v724_v25 = vsel %vm717_vm3, %v8070_v2, %v723_v33  ;;  %v649_v34 = vsel %vm642_vm4, %v8010_v50, %v648_v4  ;;  %v861_v45 = vpop.permute.xlu1 %860  ;;  %v786_v41 = vpop.permute.xlu0 %785  ;;  %2663 = vmatpush1.bf16.msra.mxu0 %v6768_v39  ;;  %v2257_v58 = vld [vmem:[#allocation2 + $0x188] sm:$0x33]  ;;  %v2258_v14 = vld [vmem:[#allocation2 + $0x190] sm:$0x33] }
 0x147   : > { %732 = vst [vmem:[#allocation2 + $0x58] sm:$0x33] %v724_v25  ;;  %657 = vst [vmem:[#allocation2 + $0x38] sm:$0xcc] %v649_v34  ;;  %v866_v18 = vrot.slane %v861_v45, 4  ;;  %v791_v57 = vrot.slane %v786_v41, 4  ;;  %v6775_v15 = vcombine.high %v2257_v58, %v2257_v58  ;;  %v6777_v62 = vcombine.high %v2258_v14, %v2258_v14 }
 0x148   : > { %v6774_v53 = vcombine.low %v2257_v58, %v2257_v58  ;;  %v6776_v35 = vcombine.low %v2258_v14, %v2258_v14 }
 0x149   : > { %v874_v2 = vsel %vm489_vm0, %v865_v47, %v866_v18  ;;  %v799_v50 = vsel %vm489_vm0, %v790_v1, %v791_v57  ;;  %6782 = vmatprep.subr.msk.bf16.mxu1 %vm2541_vm14, %v6775_v15  ;;  %6784 = vmatprep.subr.msk.bf16.mxu0 %vm2541_vm14, %v6777_v62 }
 0x14a   : > { %v875_v59 = vsel %vm868_vm6, %v8085_v40, %v874_v2  ;;  %v800_v9 = vsel %vm793_vm5, %v8068_v29, %v799_v50  ;;  %v1012_v21 = vpop.permute.xlu1 %1011  ;;  %v937_v51 = vpop.permute.xlu0 %936  ;;  %v2549_v19 = vsel %vm2541_vm14, %v6774_v53, 0  ;;  %v2555_v47 = vsel %vm2541_vm14, %v6776_v35, 0  ;;  %v2211_v25 = vld [vmem:[#allocation2 + $0x18] sm:$0xff] }
 0x14b   : > { %883 = vst [vmem:[#allocation2 + $0x78] sm:$0x33] %v875_v59  ;;  %808 = vst [vmem:[#allocation2 + $0x58] sm:$0xcc] %v800_v9  ;;  %v1017_v54 = vrot.slane %v1012_v21, 4  ;;  %v942_v1 = vrot.slane %v937_v51, 4  ;;  %2622 = vmatpush1.bf16.msra.mxu1 %v2549_v19  ;;  %2665 = vmatpush1.bf16.msra.mxu0 %v2555_v47 }
 0x14c   : > { %vm10319_vm6 = vcmask 752640  }
 0x14d   : > { %v1025_v39 = vsel %vm489_vm0, %v1016_v0, %v1017_v54  ;;  %v950_v29 = vsel %vm489_vm0, %v941_v7, %v942_v1 }
 0x14e   : > { %v1026_v40 = vsel %vm1019_vm8, %v8127_v12, %v1025_v39  ;;  %v951_v36 = vsel %vm944_vm7, %v8083_v6, %v950_v29  ;;  %6783 = vmatmul.mubr.msk.bf16.vlgmr.msra.gmra.mrb[0].mxu1 %vm2537_vm2, %v8035_v30  ;;  %6785 = vmatmul.mubr.msk.bf16.vlgmr.msra.gmra.mrb[4].mxu0 %vm2537_vm2, %v8035_v30  ;;  %v1163_v33 = vpop.permute.xlu1 %1162  ;;  %v1088_v4 = vpop.permute.xlu0 %1087  ;;  %v2215_v0 = vld [vmem:[#allocation2 + $0x38] sm:$0xff]  ;;  %vm10320_vm7 = vcmask 515072   ;;  %vm10321_vm8 = vcmask 490496  }
 0x14f   : > { %1034 = vst [vmem:[#allocation2 + $0x98] sm:$0x33] %v1026_v40  ;;  %959 = vst [vmem:[#allocation2 + $0x78] sm:$0xcc] %v951_v36  ;;  %v1168_v34 = vrot.slane %v1163_v33, 4  ;;  %v1093_v7 = vrot.slane %v1088_v4, 4  ;;  %v6730_v45 = vcombine.low %v2211_v25, %v2215_v0  ;;  %v6731_v41 = vcombine.high %v2211_v25, %v2215_v0  ;;  %2727 = vmatprep.mubr.bf16.mxu1 %v7484_v24 }
 0x151   : > { %v1176_v6 = vsel %vm489_vm0, %v1167_v55, %v1168_v34  ;;  %v1101_v12 = vsel %vm489_vm0, %v1092_v46, %v1093_v7  ;;  %2695 = vmatprep.subr.bf16.mxu1 %v6731_v41 }
 0x152   : > { %v1177_v58 = vsel %vm1170_vm10, %v8141_v43, %v1176_v6  ;;  %v1102_v14 = vsel %vm10319_vm6, %v8125_v26, %v1101_v12  ;;  %v1314_v18 = vpop.permute.xlu1 %1313  ;;  %v1239_v57 = vpop.permute.xlu0 %1238  ;;  %2696 = vmatpush1.bf16.msra.mxu1 %v6730_v45  ;;  %v2219_v2 = vld [vmem:[#allocation2 + $0x58] sm:$0xff]  ;;  %vm10325_vm6 = vcmask 244736  }
 0x153   : > { %1185 = vst [vmem:[#allocation2 + $0xb8] sm:$0x33] %v1177_v58  ;;  %1110 = vst [vmem:[#allocation2 + $0x98] sm:$0xcc] %v1102_v14  ;;  %v1319_v15 = vrot.slane %v1314_v18, 4  ;;  %v1244_v62 = vrot.slane %v1239_v57, 4 }
 0x155   : > { %v1327_v55 = vsel %vm489_vm0, %v1318_v44, %v1319_v15  ;;  %v1252_v46 = vsel %vm489_vm0, %v1243_v16, %v1244_v62 }
 0x156   : > { %v1328_v43 = vsel %vm1321_vm12, %v8175_v10, %v1327_v55  ;;  %v1253_v26 = vsel %vm10320_vm7, %v8139_v5, %v1252_v46  ;;  %v1465_v53 = vpop.permute.xlu1 %1464  ;;  %v1390_v35 = vpop.permute.xlu0 %1389  ;;  %v2223_v50 = vld [vmem:[#allocation2 + $0x78] sm:$0xff]  ;;  %vm10326_vm7 = vcmask 1039360  }
 0x157   : > { %1336 = vst [vmem:[#allocation2 + $0xd8] sm:$0x33] %v1328_v43  ;;  %1261 = vst [vmem:[#allocation2 + $0xb8] sm:$0xcc] %v1253_v26  ;;  %v1470_v59 = vrot.slane %v1465_v53, 4  ;;  %v1395_v9 = vrot.slane %v1390_v35, 4  ;;  %v6738_v21 = vcombine.low %v2219_v2, %v2223_v50  ;;  %v6739_v44 = vcombine.high %v2219_v2, %v2223_v50 }
 0x159   : > { %v1478_v16 = vsel %vm489_vm0, %v1469_v38, %v1470_v59  ;;  %v1403_v10 = vsel %vm489_vm0, %v1394_v37, %v1395_v9  ;;  %2697 = vmatprep.subr.bf16.mxu1 %v6739_v44 }
 0x15a   : > { %v1479_v5 = vsel %vm10321_vm8, %v8189_v49, %v1478_v16  ;;  %v1404_v51 = vsel %vm1397_vm13, %v8173_v13, %v1403_v10  ;;  %v1616_v19 = vpop.permute.xlu1 %1615  ;;  %v1541_v47 = vpop.permute.xlu0 %1540  ;;  %2698 = vmatpush1.bf16.msra.mxu1 %v6738_v21  ;;  %vm10323_vm13 = vcmask 261120   ;;  %v2227_v40 = vld [vmem:[#allocation2 + $0x98] sm:$0xff] }
 0x15b   : > { %1487 = vst [vmem:[#allocation2 + $0xf8] sm:$0x33] %v1479_v5  ;;  %1412 = vst [vmem:[#allocation2 + $0xd8] sm:$0xcc] %v1404_v51  ;;  %v1621_v54 = vrot.slane %v1616_v19, 4  ;;  %v1546_v1 = vrot.slane %v1541_v47, 4 }
 0x15d   : > { %v1629_v38 = vsel %vm489_vm0, %v1620_v31, %v1621_v54  ;;  %v1554_v37 = vsel %vm489_vm0, %v1545_v17, %v1546_v1 }
 0x15e   : > { %v1630_v49 = vsel %vm10322_vm11, %v8223_v56, %v1629_v38  ;;  %v1555_v13 = vsel %vm10323_vm13, %v8187_v63, %v1554_v37  ;;  %v1767_v39 = vpop.permute.xlu1 %1766  ;;  %v1692_v29 = vpop.permute.xlu0 %1691  ;;  %v2231_v36 = vld [vmem:[#allocation2 + $0xb8] sm:$0xff] }
 0x15f   : > { %1638 = vst [vmem:[#allocation2 + $0x118] sm:$0x33] %v1630_v49  ;;  %1563 = vst [vmem:[#allocation2 + $0xf8] sm:$0xcc] %v1555_v13  ;;  %v1772_v33 = vrot.slane %v1767_v39, 4  ;;  %v1697_v4 = vrot.slane %v1692_v29, 4  ;;  %v6746_v25 = vcombine.low %v2227_v40, %v2231_v36  ;;  %v6747_v31 = vcombine.high %v2227_v40, %v2231_v36 }
 0x161   : > { %v1780_v17 = vsel %vm489_vm0, %v1771_v28, %v1772_v33  ;;  %v1705_v56 = vsel %vm489_vm0, %v1696_v42, %v1697_v4  ;;  %2699 = vmatprep.subr.bf16.mxu1 %v6747_v31 }
 0x162   : > { %v1781_v63 = vsel %vm10324_vm9, %v8237_v52, %v1780_v17  ;;  %v1706_v0 = vsel %vm10325_vm6, %v8221_v8, %v1705_v56  ;;  %v1961_v34 = vpop.permute.xlu1 %1960  ;;  %v1843_v7 = vpop.permute.xlu0 %1842  ;;  %2700 = vmatpush1.bf16.msra.mxu1 %v6746_v25  ;;  %v2235_v58 = vld [vmem:[#allocation2 + $0xd8] sm:$0xff] }
 0x163   : > { %1789 = vst [vmem:[#allocation2 + $0x138] sm:$0x33] %v1781_v63  ;;  %1714 = vst [vmem:[#allocation2 + $0x118] sm:$0xcc] %v1706_v0  ;;  %v1966_v45 = vrot.slane %v1961_v34, 4  ;;  %v1848_v41 = vrot.slane %v1843_v7, 4 }
 0x165   : > { %v1973_v28 = vsel %vm489_vm0, %v1965_v20, %v1966_v45  ;;  %v1856_v42 = vsel %vm489_vm0, %v1847_v60, %v1848_v41 }
 0x166   : > { %v1974_v52 = vsel %vm10326_vm7, %v8259_v61, %v1973_v28  ;;  %v1857_v8 = vsel %vm1850_vm15, %v8235_v32, %v1856_v42  ;;  %v2110_v6 = vpop.permute.xlu1 %2109  ;;  %v2035_v12 = vpop.permute.xlu0 %2034  ;;  %v2239_v14 = vld [vmem:[#allocation2 + $0xf8] sm:$0xff] }
 0x167   : > { %1982 = vst [vmem:[#allocation2 + $0x158] sm:$0xcc] %v1974_v52  ;;  %1865 = vst [vmem:[#allocation2 + $0x138] sm:$0xcc] %v1857_v8  ;;  %v2115_v18 = vrot.slane %v2110_v6, 4  ;;  %v2040_v57 = vrot.slane %v2035_v12, 4  ;;  %v6754_v15 = vcombine.low %v2235_v58, %v2239_v14  ;;  %v6755_v20 = vcombine.high %v2235_v58, %v2239_v14 }
 0x169   : > { %v2122_v60 = vsel %vm489_vm0, %v2114_v11, %v2115_v18  ;;  %v2047_v61 = vsel %vm489_vm0, %v2039_v3, %v2040_v57  ;;  %2701 = vmatprep.subr.bf16.mxu1 %v6755_v20 }
 0x16a   : > { %v2123_v32 = vsel %vm642_vm4, %v8271_v48, %v2122_v60  ;;  %v2048_v62 = vsel %vm566_vm1, %v8273_v27, %v2047_v61  ;;  %v2184_v55 = vpop.permute.xlu0 %2183  ;;  %2702 = vmatpush1.bf16.msra.mxu1 %v6754_v15  ;;  %v2243_v3 = vld [vmem:[#allocation2 + $0x118] sm:$0xff] }
 0x16b   : > { %2131 = vst [vmem:[#allocation2 + $0x178] sm:$0xcc] %v2123_v32  ;;  %2056 = vst [vmem:[#allocation2 + $0x178] sm:$0x33] %v2048_v62  ;;  %v2189_v46 = vrot.slane %v2184_v55, 4 }
 0x16d   : > { %v2196_v11 = vsel %vm489_vm0, %v2188_v23, %v2189_v46 }
 0x16e   : > { %v2197_v43 = vsel %vm717_vm3, %v8285_v22, %v2196_v11  ;;  %v2247_v26 = vld [vmem:[#allocation2 + $0x138] sm:$0xff] }
 0x16f   : > { %2205 = vst [vmem:[#allocation2 + $0x198] sm:$0x33] %v2197_v43  ;;  %v6762_v53 = vcombine.low %v2243_v3, %v2247_v26  ;;  %v6763_v48 = vcombine.high %v2243_v3, %v2247_v26  ;;  %v2251_v35 = vld [vmem:[#allocation2 + $0x158] sm:$0xff] }
 0x171   : > { %2703 = vmatprep.subr.bf16.mxu1 %v6763_v48 }
 0x172   : > { %2704 = vmatpush1.bf16.msra.mxu1 %v6762_v53  ;;  %v2255_v27 = vld [vmem:[#allocation2 + $0x178] sm:$0xff] }
 0x173   : > { %v6770_v2 = vcombine.low %v2251_v35, %v2255_v27  ;;  %v6771_v50 = vcombine.high %v2251_v35, %v2255_v27 }
 0x175   : > { %2705 = vmatprep.subr.bf16.mxu1 %v6771_v50 }
 0x176   : > { %2706 = vmatpush1.bf16.msra.mxu1 %v6770_v2  ;;  %v2259_v59 = vld [vmem:[#allocation2 + $0x198] sm:$0x33] }
 0x177   : > { %v6779_v9 = vcombine.high %v2259_v59, %v2259_v59  ;;  %v6778_v21 = vcombine.low %v2259_v59, %v2259_v59 }
 0x179   : > { %6786 = vmatprep.subr.msk.bf16.mxu1 %vm2541_vm14, %v6779_v9  ;;  %v2561_v22 = vsel %vm2541_vm14, %v6778_v21, 0 }
 0x17a   : > { %2708 = vmatpush1.bf16.msra.mxu1 %v2561_v22 }
 0x17b   : > { %v8423_v23 = vpop.permute.xlu0 %2269 }
 0x17d   : > { %6787 = vmatmul.mubr.msk.bf16.vlgmr.msra.gmra.mrb[4].mxu1 %vm2537_vm2, %v8035_v30  ;;  %v2265_v30 = vpop.permute.xlu1 %2264  ;;  %vm10327_vm2 = vmmov %vm10326_vm7  ;;  %vm3083_vm7 = vcmask 998400  }
 0x17e   : > { %vm10328_vm4 = vmmov %vm10327_vm2 }
 0x17f   : > { %v8427_v44 = vpop.permute.xlu0 %2813  ;;  %vm10329_vm15 = vmmov %vm10327_vm2 }
 0x180   : > { %v2848_v16 = vmax.bf16 %v7484_v24, %v8427_v44  ;;  %vm10330_vm8 = vmmov %vm10327_vm2 }
 0x181   : > { %vm10331_vm11 = vmmov %vm10327_vm2 }
 0x182   : > { %2874 = vrot.lane.b32.xlu1 %v2848_v16, %s7469_s27  ;;  %vm10332_vm13 = vmmov %vm10327_vm2 }
 0x183   : > { %vm10333_vm9 = vmmov %vm10327_vm2 }
 0x184   : > { %vm10334_vm6 = vmmov %vm10327_vm2 }
 0x186   : > { %2961 = vrot.lane.b32.xlu1 %v7484_v24, %s7465_s23 }
 0x18a   : > { %3021 = vrot.lane.b32.xlu1 %v7484_v24, %s7468_s26 }
 0x18e   : > { %3081 = vrot.lane.b32.xlu1 %v7484_v24, %s7485_s20 }
 0x192   : > { %3142 = vrot.lane.b32.xlu1 %v7484_v24, %s7486_s21 }
 0x196   : > { %3203 = vrot.lane.b32.xlu1 %v7484_v24, %s10302_s28 }
 0x19a   : > { %3263 = vrot.lane.b32.xlu1 %v7484_v24, %s10300_s14 }
 0x19e   : > { %3323 = vrot.lane.b32.xlu1 %v7484_v24, %s10301_s13 }
 0x1a2   : > { %3383 = vrot.lane.b32.xlu1 %v7484_v24, %s7487_s29 }
 0x1a6   : > { %3444 = vrot.lane.b32.xlu1 %v7484_v24, %s7488_s30 }
 0x1c4   : > { %v2600_v10 = vpop.f32.mrb[0].mxu0 }
 0x1c5   : > { %v2602_v5 = vpop.f32.mrb[1].mxu0  ;;  %v2601_v51 = vadd.f32 %v2600_v10, %v2265_v30 }
 0x1c6   : > { %v2604_v19 = vpop.f32.mrb[2].mxu0  ;;  %v2603_v47 = vadd.f32 %v2602_v5, %v2265_v30 }
 0x1c7   : > { %v2606_v54 = vpop.f32.mrb[3].mxu0  ;;  %v2605_v1 = vadd.f32 %v2604_v19, %v8423_v23  ;;  %v2738_v38 = vmax.f32 %v2601_v51, 0.0 }
 0x1c8   : > { %v2607_v37 = vadd.f32 %v2606_v54, %v8423_v23  ;;  %v2739_v49 = vmax.f32 %v2603_v47, 0.0 }
 0x1c9   : > { %v2746_v13 = vmax.f32 %v2605_v1, 0.0 }
 0x1ca   : > { %v2747_v39 = vmax.f32 %v2607_v37, 0.0 }
 0x1cb   : > { %v8452_v29 = vpack.c.bf16 %v2746_v13, %v2738_v38 }
 0x1cc   : > { %v8454_v40 = vpack.c.bf16 %v2747_v39, %v2739_v49 }
 0x1cd   : > { %2797 = vrot.lane.b32.xlu0 %v8452_v29, %s7466_s24 }
 0x1f4   : > { %v8472_v9 = vpop.permute.xlu1 %2874 }
 0x1f8   : > { %v8474_v21 = vpop.permute.xlu1 %2961 }
 0x1fc   : > { %v8476_v22 = vpop.permute.xlu1 %3021 }
 0x200   : > { %v8478_v16 = vpop.permute.xlu1 %3081 }
 0x221   : > { %v2643_v36 = vpop.f32.mrb[0].mxu1  ;;  %v2686_v33 = vpop.f32.mrb[4].mxu0 }
 0x222   : > { %v2644_v4 = vadd.f32 %v2643_v36, %v2265_v30  ;;  %v2687_v25 = vadd.f32 %v2686_v33, %v2265_v30  ;;  %v2645_v31 = vpop.f32.mrb[1].mxu1  ;;  %v2688_v17 = vpop.f32.mrb[5].mxu0 }
 0x223   : > { %v2646_v56 = vadd.f32 %v2645_v31, %v2265_v30  ;;  %v2689_v63 = vadd.f32 %v2688_v17, %v2265_v30  ;;  %v2647_v0 = vpop.f32.mrb[2].mxu1  ;;  %v2690_v34 = vpop.f32.mrb[6].mxu0 }
 0x224   : > { %v2742_v7 = vmax.f32 %v2687_v25, 0.0  ;;  %v2648_v45 = vadd.f32 %v2647_v0, %v8423_v23  ;;  %v2691_v41 = vadd.f32 %v2690_v34, %v8423_v23  ;;  %v2649_v28 = vpop.f32.mrb[3].mxu1  ;;  %v2692_v42 = vpop.f32.mrb[7].mxu0  ;;  %v2740_v12 = vmax.f32 %v2644_v4, 0.0 }
 0x225   : > { %v2743_v52 = vmax.f32 %v2689_v63, 0.0  ;;  %v2650_v8 = vadd.f32 %v2649_v28, %v8423_v23  ;;  %v2693_v6 = vadd.f32 %v2692_v42, %v8423_v23  ;;  %v2741_v18 = vmax.f32 %v2646_v56, 0.0 }
 0x226   : > { %v2748_v58 = vmax.f32 %v2648_v45, 0.0  ;;  %v2750_v14 = vmax.f32 %v2691_v41, 0.0 }
 0x227   : > { %v2749_v57 = vmax.f32 %v2650_v8, 0.0  ;;  %v2751_v15 = vmax.f32 %v2693_v6, 0.0 }
 0x228   : > { %v2756_v20 = vpack.c.bf16 %v2748_v58, %v2740_v12  ;;  %v2758_v60 = vpack.c.bf16 %v2750_v14, %v2742_v7 }
 0x229   : > { %v2757_v61 = vpack.c.bf16 %v2749_v57, %v2741_v18  ;;  %v2759_v32 = vpack.c.bf16 %v2751_v15, %v2743_v52 }
 0x22a   : > { %2801 = vrot.lane.b32.xlu1 %v2756_v20, %s7466_s24 }
 0x22b   : > { %2803 = vrot.lane.b32.xlu0 %v2757_v61, %s7466_s24 }
 0x22e   : > { %2799 = vrot.lane.b32.xlu1 %v8454_v40, %s7466_s24 }
 0x232   : > { %2805 = vrot.lane.b32.xlu1 %v2758_v60, %s7466_s24 }
 0x236   : > { %2807 = vrot.lane.b32.xlu1 %v2759_v32, %s7466_s24 }
 0x23f   : > { %v2798_v47 = vpop.permute.xlu0 %2797 }
 0x250   : > { %v2729_v62 = vpop.f32.mrb[4].mxu1 }
 0x251   : > { %v2730_v55 = vadd.f32 %v2729_v62, %v2265_v30  ;;  %v2731_v46 = vpop.f32.mrb[5].mxu1 }
 0x252   : > { %v2732_v11 = vadd.f32 %v2731_v46, %v2265_v30  ;;  %v2733_v43 = vpop.f32.mrb[6].mxu1  ;;  %v8480_v30 = vpop.permute.xlu1 %3142 }
 0x253   : > { %v2734_v3 = vadd.f32 %v2733_v43, %v8423_v23  ;;  %v2735_v26 = vpop.f32.mrb[7].mxu1  ;;  %v2744_v48 = vmax.f32 %v2730_v55, 0.0 }
 0x254   : > { %v2736_v53 = vadd.f32 %v2735_v26, %v8423_v23  ;;  %v2745_v27 = vmax.f32 %v2732_v11, 0.0 }
 0x255   : > { %v2752_v35 = vmax.f32 %v2734_v3, 0.0  ;;  %v8658_v3 = vld [vmem:[%s10270_s3 + $0x4] ss:$16 sps:$4 sm:$0xff]  }
 0x256   : > { %v2753_v2 = vmax.f32 %v2736_v53, 0.0  ;;  %v8482_v23 = vpop.permute.xlu1 %3203  ;;  %4592 = vmatprep.mubr.bf16.mxu0 %v8658_v3  ;;  %4698 = vmatprep.mubr.bf16.mxu1 %v8658_v3 }
 0x257   : > { %v2760_v50 = vpack.c.bf16 %v2752_v35, %v2744_v48 }
 0x258   : > { %v2761_v59 = vpack.c.bf16 %v2753_v2, %v2745_v27 }
 0x259   : > { %2809 = vrot.lane.b32.xlu0 %v2760_v50, %s7466_s24 }
 0x25a   : > { %2811 = vrot.lane.b32.xlu1 %v2761_v59, %s7466_s24  ;;  %v8484_v10 = vpop.permute.xlu1 %3263 }
 0x25e   : > { %v8486_v5 = vpop.permute.xlu1 %3323 }
 0x262   : > { %v8488_v51 = vpop.permute.xlu1 %3383 }
 0x266   : > { %v8490_v19 = vpop.permute.xlu1 %3444 }
 0x29c   : > { %v2802_v54 = vpop.permute.xlu1 %2801 }
 0x29d   : > { %v2804_v1 = vpop.permute.xlu0 %2803 }
 0x29e   : > { %v2817_v38 = vsel %vm10327_vm2, %v2802_v54, %v2804_v1  ;;  %vm3144_vm2 = vcmask 982016  }
 0x29f   : > { %v2833_v37 = vmax.bf16 %v2817_v38, %v2756_v20 }
 0x2a0   : > { %v2800_v49 = vpop.permute.xlu1 %2799 }
 0x2a1   : > { %v2815_v13 = vsel %vm10328_vm4, %v2798_v47, %v2800_v49  ;;  %v2816_v39 = vsel %vm10329_vm15, %v2800_v49, %v2802_v54  ;;  %2862 = vrot.lane.b32.xlu0 %v2833_v37, %s7469_s27  ;;  %vm10335_vm4 = vcmask 490496  }
 0x2a2   : > { %v2831_v36 = vmax.bf16 %v2815_v13, %v8452_v29  ;;  %v2832_v33 = vmax.bf16 %v2816_v39, %v8454_v40  ;;  %vm10336_vm15 = vmmov %vm10335_vm4 }
 0x2a4   : > { %2860 = vrot.lane.b32.xlu1 %v2832_v33, %s7469_s27  ;;  %v2806_v4 = vpop.permute.xlu1 %2805 }
 0x2a5   : > { %v2818_v25 = vsel %vm10330_vm8, %v2804_v1, %v2806_v4  ;;  %2858 = vrot.lane.b32.xlu0 %v2831_v36, %s7469_s27  ;;  %vm3385_vm8 = vcmask 474112  }
 0x2a6   : > { %v2834_v31 = vmax.bf16 %v2818_v25, %v2757_v61 }
 0x2a8   : > { %2864 = vrot.lane.b32.xlu1 %v2834_v31, %s7469_s27  ;;  %v2808_v17 = vpop.permute.xlu1 %2807 }
 0x2a9   : > { %v2819_v56 = vsel %vm10331_vm11, %v2806_v4, %v2808_v17  ;;  %vm3446_vm11 = vcmask 457728  }
 0x2aa   : > { %v8503_v63 = vmax.bf16 %v2819_v56, %v2758_v60 }
 0x2ac   : > { %2866 = vrot.lane.b32.xlu1 %v8503_v63, %s7469_s27 }
 0x2cb   : > { %v2810_v29 = vpop.permute.xlu0 %2809 }
 0x2cc   : > { %v2820_v40 = vsel %vm10332_vm13, %v2808_v17, %v2810_v29  ;;  %v2812_v0 = vpop.permute.xlu1 %2811  ;;  %vm10337_vm13 = vmmov %vm10335_vm4 }
 0x2cd   : > { %v8508_v34 = vmax.bf16 %v2820_v40, %v2759_v32  ;;  %v2822_v7 = vsel %vm10333_vm9, %v2812_v0, %v8427_v44  ;;  %v2821_v45 = vsel %vm10334_vm6, %v2810_v29, %v2812_v0  ;;  %vm10338_vm9 = vmmov %vm10335_vm4  ;;  %vm4553_vm6 = vcmask 130048  }
 0x2ce   : > { %v8513_v41 = vmax.bf16 %v2822_v7, %v2761_v59  ;;  %v8519_v28 = vmax.bf16 %v2821_v45, %v2760_v50 }
 0x2cf   : > { %2868 = vrot.lane.b32.xlu0 %v8508_v34, %s7469_s27 }
 0x2d0   : > { %2872 = vrot.lane.b32.xlu1 %v8513_v41, %s7469_s27 }
 0x2d3   : > { %2870 = vrot.lane.b32.xlu0 %v8519_v28, %s7469_s27 }
 0x313   : > { %v2863_v42 = vpop.permute.xlu0 %2862 }
 0x316   : > { %v2861_v52 = vpop.permute.xlu1 %2860 }
 0x317   : > { %v2877_v8 = vsel %vm793_vm5, %v2861_v52, %v2863_v42  ;;  %v2859_v44 = vpop.permute.xlu0 %2858 }
 0x318   : > { %v8524_v6 = vmax.bf16 %v2877_v8, %v2832_v33  ;;  %v2876_v12 = vsel %vm793_vm5, %v2859_v44, %v2861_v52 }
 0x319   : > { %v2892_v58 = vmax.bf16 %v2876_v12, %v2831_v36 }
 0x31a   : > { %3007 = vrot.lane.b32.xlu0 %v8524_v6, %s7468_s26  ;;  %2947 = vrot.lane.b32.xlu1 %v8524_v6, %s7465_s23  ;;  %v2865_v14 = vpop.permute.xlu1 %2864 }
 0x31b   : > { %4560 = vmatprep.subr.bf16.mxu0 %v8524_v6  ;;  %v2878_v57 = vsel %vm793_vm5, %v2863_v42, %v2865_v14 }
 0x31c   : > { %4561 = vmatpush1.bf16.msra.mxu0 %v2892_v58  ;;  %v8538_v60 = vmax.bf16 %v2878_v57, %v2833_v37 }
 0x31e   : > { %3005 = vrot.lane.b32.xlu0 %v2892_v58, %s7468_s26  ;;  %2945 = vrot.lane.b32.xlu1 %v2892_v58, %s7465_s23  ;;  %v2867_v18 = vpop.permute.xlu1 %2866 }
 0x31f   : > { %v2879_v15 = vsel %vm793_vm5, %v2865_v14, %v2867_v18 }
 0x320   : > { %v8536_v20 = vmax.bf16 %v2879_v15, %v2834_v31 }
 0x322   : > { %3128 = vrot.lane.b32.xlu0 %v8524_v6, %s7486_s21  ;;  %3067 = vrot.lane.b32.xlu1 %v8524_v6, %s7485_s20 }
 0x323   : > { %4666 = vmatprep.subr.bf16.mxu1 %v8536_v20 }
 0x324   : > { %4667 = vmatpush1.bf16.msra.mxu1 %v8538_v60 }
 0x326   : > { %3126 = vrot.lane.b32.xlu0 %v2892_v58, %s7486_s21  ;;  %3065 = vrot.lane.b32.xlu1 %v2892_v58, %s7485_s20 }
 0x32a   : > { %3249 = vrot.lane.b32.xlu0 %v8524_v6, %s10300_s14  ;;  %3189 = vrot.lane.b32.xlu1 %v8524_v6, %s10302_s28 }
 0x32e   : > { %3309 = vrot.lane.b32.xlu0 %v8524_v6, %s10301_s13  ;;  %3187 = vrot.lane.b32.xlu1 %v2892_v58, %s10302_s28 }
 0x332   : > { %3307 = vrot.lane.b32.xlu0 %v2892_v58, %s10301_s13  ;;  %3247 = vrot.lane.b32.xlu1 %v2892_v58, %s10300_s14 }
 0x336   : > { %3430 = vrot.lane.b32.xlu0 %v8524_v6, %s7488_s30  ;;  %3369 = vrot.lane.b32.xlu1 %v8524_v6, %s7487_s29 }
 0x33a   : > { %3428 = vrot.lane.b32.xlu0 %v2892_v58, %s7488_s30  ;;  %3367 = vrot.lane.b32.xlu1 %v2892_v58, %s7487_s29 }
 0x33e   : > { %3505 = vrot.lane.b32.xlu0 %v8524_v6, %s7465_s23  ;;  %3565 = vrot.lane.b32.xlu1 %v8524_v6, %s7468_s26 }
 0x341   : > { %v2869_v61 = vpop.permute.xlu0 %2868 }
 0x342   : > { %3625 = vrot.lane.b32.xlu0 %v8524_v6, %s7485_s20  ;;  %3685 = vrot.lane.b32.xlu1 %v8524_v6, %s7486_s21  ;;  %v2880_v32 = vsel %vm793_vm5, %v2867_v18, %v2869_v61  ;;  %v8643_v55 = vpop.permute.xlu1 %2872 }
 0x343   : > { %v8629_v62 = vmax.bf16 %v2880_v32, %v8503_v63 }
 0x345   : > { %v8645_v46 = vpop.permute.xlu0 %2870 }
 0x346   : > { %3745 = vrot.lane.b32.xlu0 %v8524_v6, %s10302_s28  ;;  %3805 = vrot.lane.b32.xlu1 %v8524_v6, %s10300_s14  ;;  %v2881_v4 = vsel %vm793_vm5, %v2869_v61, %v8645_v46 }
 0x347   : > { %v8739_v25 = vmax.bf16 %v2881_v4, %v8508_v34 }
 0x34a   : > { %3865 = vrot.lane.b32.xlu0 %v8524_v6, %s10301_s13  ;;  %3925 = vrot.lane.b32.xlu1 %v8524_v6, %s7487_s29 }
 0x34e   : > { %3985 = vrot.lane.b32.xlu0 %v8524_v6, %s7488_s30  ;;  %3009 = vrot.lane.b32.xlu1 %v8538_v60, %s7468_s26 }
 0x352   : > { %3130 = vrot.lane.b32.xlu1 %v8538_v60, %s7486_s21  ;;  %2949 = vrot.lane.b32.xlu0 %v8538_v60, %s7465_s23 }
 0x356   : > { %3251 = vrot.lane.b32.xlu1 %v8538_v60, %s10300_s14  ;;  %3069 = vrot.lane.b32.xlu0 %v8538_v60, %s7485_s20 }
 0x35a   : > { %3311 = vrot.lane.b32.xlu1 %v8538_v60, %s10301_s13  ;;  %3191 = vrot.lane.b32.xlu0 %v8538_v60, %s10302_s28 }
 0x35e   : > { %3432 = vrot.lane.b32.xlu1 %v8538_v60, %s7488_s30  ;;  %3371 = vrot.lane.b32.xlu0 %v8538_v60, %s7487_s29 }
 0x362   : > { %3567 = vrot.lane.b32.xlu1 %v8538_v60, %s7468_s26  ;;  %3507 = vrot.lane.b32.xlu0 %v8538_v60, %s7465_s23 }
 0x366   : > { %3687 = vrot.lane.b32.xlu1 %v8538_v60, %s7486_s21  ;;  %3627 = vrot.lane.b32.xlu0 %v8538_v60, %s7485_s20 }
 0x36a   : > { %3807 = vrot.lane.b32.xlu1 %v8538_v60, %s10300_s14  ;;  %3747 = vrot.lane.b32.xlu0 %v8538_v60, %s10302_s28 }
 0x36e   : > { %3927 = vrot.lane.b32.xlu1 %v8538_v60, %s7487_s29  ;;  %3867 = vrot.lane.b32.xlu0 %v8538_v60, %s10301_s13 }
 0x372   : > { %4121 = vrot.lane.b32.xlu1 %v8538_v60, %s7468_s26  ;;  %3987 = vrot.lane.b32.xlu0 %v8538_v60, %s7488_s30 }
 0x376   : > { %4241 = vrot.lane.b32.xlu1 %v8538_v60, %s7486_s21  ;;  %4061 = vrot.lane.b32.xlu0 %v8538_v60, %s7465_s23 }
 0x37a   : > { %4181 = vrot.lane.b32.xlu0 %v8538_v60, %s7485_s20  ;;  %3509 = vrot.lane.b32.xlu1 %v8536_v20, %s7465_s23 }
 0x37e   : > { %2953 = vrot.lane.b32.xlu0 %v8629_v62, %s7465_s23  ;;  %2951 = vrot.lane.b32.xlu1 %v8536_v20, %s7465_s23 }
 0x382   : > { %3569 = vrot.lane.b32.xlu0 %v8536_v20, %s7468_s26  ;;  %3013 = vrot.lane.b32.xlu1 %v8629_v62, %s7468_s26 }
 0x386   : > { %3011 = vrot.lane.b32.xlu0 %v8536_v20, %s7468_s26  ;;  %3629 = vrot.lane.b32.xlu1 %v8536_v20, %s7485_s20 }
 0x38a   : > { %3073 = vrot.lane.b32.xlu0 %v8629_v62, %s7485_s20  ;;  %3071 = vrot.lane.b32.xlu1 %v8536_v20, %s7485_s20 }
 0x38c   : > { %v8651_v11 = vpop.permute.xlu0 %3007  ;;  %v8653_v43 = vpop.permute.xlu1 %2947 }
 0x38e   : > { %3689 = vrot.lane.b32.xlu0 %v8536_v20, %s7486_s21  ;;  %3134 = vrot.lane.b32.xlu1 %v8629_v62, %s7486_s21 }
 0x390   : > { %v8666_v26 = vpop.permute.xlu0 %3005  ;;  %v2946_v53 = vpop.permute.xlu1 %2945 }
 0x391   : > { %v2963_v52 = vsel %vm566_vm1, %v2946_v53, %v8653_v43  ;;  %v3023_v58 = vsel %vm717_vm3, %v8666_v26, %v8651_v11 }
 0x392   : > { %3132 = vrot.lane.b32.xlu0 %v8536_v20, %s7486_s21  ;;  %3749 = vrot.lane.b32.xlu1 %v8536_v20, %s10302_s28 }
 0x394   : > { %v8672_v48 = vpop.permute.xlu0 %3128  ;;  %v8674_v35 = vpop.permute.xlu1 %3067 }
 0x396   : > { %3195 = vrot.lane.b32.xlu0 %v8629_v62, %s10302_s28  ;;  %3193 = vrot.lane.b32.xlu1 %v8536_v20, %s10302_s28 }
 0x398   : > { %v8680_v27 = vpop.permute.xlu0 %3126  ;;  %v8682_v2 = vpop.permute.xlu1 %3065 }
 0x399   : > { %v3084_v15 = vsel %vm3083_vm7, %v8682_v2, %v8674_v35  ;;  %v3145_v26 = vsel %vm3144_vm2, %v8680_v27, %v8672_v48 }
 0x39a   : > { %3809 = vrot.lane.b32.xlu0 %v8536_v20, %s10300_s14  ;;  %3255 = vrot.lane.b32.xlu1 %v8629_v62, %s10300_s14 }
 0x39c   : > { %v8688_v50 = vpop.permute.xlu0 %3249  ;;  %v8690_v59 = vpop.permute.xlu1 %3189 }
 0x39e   : > { %3253 = vrot.lane.b32.xlu0 %v8536_v20, %s10300_s14  ;;  %3869 = vrot.lane.b32.xlu1 %v8536_v20, %s10301_s13 }
 0x3a0   : > { %v8696_v47 = vpop.permute.xlu0 %3309  ;;  %v8698_v54 = vpop.permute.xlu1 %3187 }
 0x3a2   : > { %3315 = vrot.lane.b32.xlu0 %v8629_v62, %s10301_s13  ;;  %3313 = vrot.lane.b32.xlu1 %v8536_v20, %s10301_s13 }
 0x3a4   : > { %v8704_v1 = vpop.permute.xlu0 %3307  ;;  %v8706_v38 = vpop.permute.xlu1 %3247 }
 0x3a6   : > { %3929 = vrot.lane.b32.xlu0 %v8536_v20, %s7487_s29  ;;  %3375 = vrot.lane.b32.xlu1 %v8629_v62, %s7487_s29 }
 0x3a8   : > { %v8712_v37 = vpop.permute.xlu0 %3430  ;;  %v8714_v49 = vpop.permute.xlu1 %3369 }
 0x3aa   : > { %3373 = vrot.lane.b32.xlu0 %v8536_v20, %s7487_s29  ;;  %3989 = vrot.lane.b32.xlu1 %v8536_v20, %s7488_s30 }
 0x3ac   : > { %v8720_v13 = vpop.permute.xlu0 %3428  ;;  %v8722_v39 = vpop.permute.xlu1 %3367 }
 0x3ae   : > { %3436 = vrot.lane.b32.xlu0 %v8629_v62, %s7488_s30  ;;  %3434 = vrot.lane.b32.xlu1 %v8536_v20, %s7488_s30 }
 0x3b0   : > { %v8728_v36 = vpop.permute.xlu0 %3505  ;;  %v8730_v33 = vpop.permute.xlu1 %3565 }
 0x3b2   : > { %4063 = vrot.lane.b32.xlu0 %v8536_v20, %s7465_s23  ;;  %4065 = vrot.lane.b32.xlu1 %v8629_v62, %s7465_s23 }
 0x3b4   : > { %v8741_v31 = vpop.permute.xlu0 %3625  ;;  %v8743_v17 = vpop.permute.xlu1 %3685 }
 0x3b6   : > { %3513 = vrot.lane.b32.xlu0 %v8739_v25, %s7465_s23  ;;  %3511 = vrot.lane.b32.xlu1 %v8629_v62, %s7465_s23 }
 0x3b8   : > { %v8749_v56 = vpop.permute.xlu0 %3745  ;;  %v8751_v63 = vpop.permute.xlu1 %3805 }
 0x3ba   : > { %4125 = vrot.lane.b32.xlu0 %v8629_v62, %s7468_s26  ;;  %4123 = vrot.lane.b32.xlu1 %v8536_v20, %s7468_s26 }
 0x3bc   : > { %v8757_v29 = vpop.permute.xlu0 %3865  ;;  %v8759_v40 = vpop.permute.xlu1 %3925 }
 0x3be   : > { %3571 = vrot.lane.b32.xlu0 %v8629_v62, %s7468_s26  ;;  %3573 = vrot.lane.b32.xlu1 %v8739_v25, %s7468_s26 }
 0x3c0   : > { %v8765_v0 = vpop.permute.xlu0 %3985  ;;  %v8767_v34 = vpop.permute.xlu1 %3009 }
 0x3c1   : > { %v3024_v44 = vsel %vm717_vm3, %v8651_v11, %v8767_v34 }
 0x3c2   : > { %4183 = vrot.lane.b32.xlu0 %v8536_v20, %s7485_s20  ;;  %4185 = vrot.lane.b32.xlu1 %v8629_v62, %s7485_s20 }
 0x3c4   : > { %v8773_v7 = vpop.permute.xlu0 %2949  ;;  %v8775_v45 = vpop.permute.xlu1 %3130 }
 0x3c5   : > { %v2964_v42 = vsel %vm566_vm1, %v8653_v43, %v8773_v7  ;;  %v3146_v32 = vsel %vm3144_vm2, %v8672_v48, %v8775_v45  ;;  %v2882_v43 = vsel %vm793_vm5, %v8645_v46, %v8643_v55 }
 0x3c6   : > { %3633 = vrot.lane.b32.xlu0 %v8739_v25, %s7485_s20  ;;  %3631 = vrot.lane.b32.xlu1 %v8629_v62, %s7485_s20  ;;  %v8832_v53 = vmax.bf16 %v2882_v43, %v8519_v28  ;;  %v3205_v28 = vsel %vm1170_vm10, %v8698_v54, %v8690_v59 }
 0x3c7   : > { %4562 = vmatprep.subr.bf16.mxu0 %v2964_v42 }
 0x3c8   : > { %4563 = vmatpush1.bf16.msra.mxu0 %v2963_v52  ;;  %v8786_v8 = vpop.permute.xlu0 %3069  ;;  %v8791_v12 = vpop.permute.xlu1 %3251 }
 0x3c9   : > { %4564 = vmatprep.subr.bf16.mxu0 %v3024_v44  ;;  %v3085_v18 = vsel %vm3083_vm7, %v8674_v35, %v8786_v8  ;;  %v3266_v27 = vsel %vm1321_vm12, %v8688_v50, %v8791_v12 }
 0x3ca   : > { %4245 = vrot.lane.b32.xlu0 %v8629_v62, %s7486_s21  ;;  %4243 = vrot.lane.b32.xlu1 %v8536_v20, %s7486_s21 }
 0x3cc   : > { %4565 = vmatpush1.bf16.msra.mxu0 %v3023_v58  ;;  %v8800_v14 = vpop.permute.xlu0 %3191  ;;  %v8805_v57 = vpop.permute.xlu1 %3311 }
 0x3cd   : > { %4566 = vmatprep.subr.bf16.mxu0 %v3085_v18  ;;  %v3206_v46 = vsel %vm1170_vm10, %v8690_v59, %v8800_v14  ;;  %v3265_v59 = vsel %vm1321_vm12, %v8706_v38, %v8688_v50  ;;  %v3326_v42 = vsel %vm10335_vm4, %v8696_v47, %v8805_v57  ;;  %v3325_v50 = vsel %vm10336_vm15, %v8704_v1, %v8696_v47  ;;  %vm10339_vm15 = vmmov %vm10335_vm4 }
 0x3ce   : > { %3691 = vrot.lane.b32.xlu0 %v8629_v62, %s7486_s21  ;;  %3693 = vrot.lane.b32.xlu1 %v8739_v25, %s7486_s21  ;;  %v3386_v47 = vsel %vm3385_vm8, %v8722_v39, %v8714_v49 }
 0x3d0   : > { %4567 = vmatpush1.bf16.msra.mxu0 %v3084_v15  ;;  %v8814_v61 = vpop.permute.xlu0 %3371  ;;  %v8819_v11 = vpop.permute.xlu1 %3432 }
 0x3d1   : > { %4568 = vmatprep.subr.bf16.mxu0 %v3146_v32  ;;  %v3387_v44 = vsel %vm3385_vm8, %v8714_v49, %v8814_v61  ;;  %v3448_v18 = vsel %vm3446_vm11, %v8712_v37, %v8819_v11  ;;  %v3447_v49 = vsel %vm3446_vm11, %v8720_v13, %v8712_v37 }
 0x3d2   : > { %3751 = vrot.lane.b32.xlu0 %v8629_v62, %s10302_s28  ;;  %3753 = vrot.lane.b32.xlu1 %v8739_v25, %s10302_s28 }
 0x3d4   : > { %4569 = vmatpush1.bf16.msra.mxu0 %v3145_v26  ;;  %v3508_v35 = vpop.permute.xlu0 %3507  ;;  %v8837_v2 = vpop.permute.xlu1 %3567 }
 0x3d5   : > { %4570 = vmatprep.subr.bf16.mxu0 %v3206_v46  ;;  %v3523_v13 = vsel %vm566_vm1, %v8728_v36, %v3508_v35 }
 0x3d6   : > { %2955 = vrot.lane.b32.xlu0 %v8739_v25, %s7465_s23  ;;  %2957 = vrot.lane.b32.xlu1 %v8832_v53, %s7465_s23 }
 0x3d8   : > { %4571 = vmatpush1.bf16.msra.mxu0 %v3205_v28  ;;  %v8846_v48 = vpop.permute.xlu0 %3627  ;;  %v8851_v4 = vpop.permute.xlu1 %3687 }
 0x3d9   : > { %4572 = vmatprep.subr.bf16.mxu0 %v3266_v27 }
 0x3da   : > { %3811 = vrot.lane.b32.xlu0 %v8629_v62, %s10300_s14  ;;  %3813 = vrot.lane.b32.xlu1 %v8739_v25, %s10300_s14 }
 0x3dc   : > { %4573 = vmatpush1.bf16.msra.mxu0 %v3265_v59  ;;  %v8860_v54 = vpop.permute.xlu0 %3747  ;;  %v8865_v52 = vpop.permute.xlu1 %3807 }
 0x3dd   : > { %4574 = vmatprep.subr.bf16.mxu0 %v3326_v42 }
 0x3de   : > { %3015 = vrot.lane.b32.xlu0 %v8739_v25, %s7468_s26  ;;  %3017 = vrot.lane.b32.xlu1 %v8832_v53, %s7468_s26 }
 0x3e0   : > { %4575 = vmatpush1.bf16.msra.mxu0 %v3325_v50  ;;  %v8874_v38 = vpop.permute.xlu0 %3867  ;;  %v8879_v58 = vpop.permute.xlu1 %3927 }
 0x3e1   : > { %4576 = vmatprep.subr.bf16.mxu0 %v3387_v44 }
 0x3e2   : > { %3871 = vrot.lane.b32.xlu0 %v8629_v62, %s10301_s13  ;;  %3873 = vrot.lane.b32.xlu1 %v8739_v25, %s10301_s13 }
 0x3e4   : > { %4577 = vmatpush1.bf16.msra.mxu0 %v3386_v47  ;;  %v8888_v1 = vpop.permute.xlu0 %3987  ;;  %v8893_v15 = vpop.permute.xlu1 %4121 }
 0x3e5   : > { %4578 = vmatprep.subr.bf16.mxu0 %v3448_v18 }
 0x3e6   : > { %3075 = vrot.lane.b32.xlu0 %v8739_v25, %s7485_s20  ;;  %3077 = vrot.lane.b32.xlu1 %v8832_v53, %s7485_s20 }
 0x3e8   : > { %4579 = vmatpush1.bf16.msra.mxu0 %v3447_v49  ;;  %v8902_v39 = vpop.permute.xlu0 %4061  ;;  %v8904_v32 = vpop.permute.xlu1 %4241 }
 0x3e9   : > { %4580 = vmatprep.subr.bf16.mxu0 %v8538_v60 }
 0x3ea   : > { %3931 = vrot.lane.b32.xlu0 %v8629_v62, %s7487_s29  ;;  %3933 = vrot.lane.b32.xlu1 %v8739_v25, %s7487_s29 }
 0x3ec   : > { %4581 = vmatpush1.bf16.msra.mxu0 %v8524_v6  ;;  %v8912_v43 = vpop.permute.xlu0 %4181  ;;  %v8914_v26 = vpop.permute.xlu1 %3509 }
 0x3ed   : > { %v3524_v37 = vsel %vm566_vm1, %v3508_v35, %v8914_v26 }
 0x3ee   : > { %3136 = vrot.lane.b32.xlu0 %v8739_v25, %s7486_s21  ;;  %3138 = vrot.lane.b32.xlu1 %v8832_v53, %s7486_s21 }
 0x3ef   : > { %4582 = vmatprep.subr.bf16.mxu0 %v3524_v37 }
 0x3f0   : > { %4583 = vmatpush1.bf16.msra.mxu0 %v3523_v13  ;;  %v8924_v46 = vpop.permute.xlu0 %2953  ;;  %v2952_v6 = vpop.permute.xlu1 %2951 }
 0x3f1   : > { %v2966_v28 = vsel %vm566_vm1, %v2952_v6, %v8924_v46  ;;  %v2965_v27 = vsel %vm566_vm1, %v8773_v7, %v2952_v6  ;;  %v3583_v7 = vsel %vm717_vm3, %v8730_v33, %v8837_v2  ;;  %v3643_v33 = vsel %vm3083_vm7, %v8741_v31, %v8846_v48 }
 0x3f2   : > { %3991 = vrot.lane.b32.xlu0 %v8629_v62, %s7488_s30  ;;  %3993 = vrot.lane.b32.xlu1 %v8739_v25, %s7488_s30 }
 0x3f3   : > { %4668 = vmatprep.subr.bf16.mxu1 %v2966_v28 }
 0x3f4   : > { %4669 = vmatpush1.bf16.msra.mxu1 %v2965_v27  ;;  %v8934_v59 = vpop.permute.xlu0 %3569  ;;  %v8936_v36 = vpop.permute.xlu1 %3013 }
 0x3f5   : > { %v3584_v35 = vsel %vm717_vm3, %v8837_v2, %v8934_v59 }
 0x3f6   : > { %3197 = vrot.lane.b32.xlu0 %v8739_v25, %s10302_s28  ;;  %3199 = vrot.lane.b32.xlu1 %v8832_v53, %s10302_s28 }
 0x3f7   : > { %4584 = vmatprep.subr.bf16.mxu0 %v3584_v35 }
 0x3f8   : > { %4585 = vmatpush1.bf16.msra.mxu0 %v3583_v7  ;;  %v3012_v42 = vpop.permute.xlu0 %3011  ;;  %v8948_v50 = vpop.permute.xlu1 %3629 }
 0x3f9   : > { %v3644_v44 = vsel %vm3083_vm7, %v8846_v48, %v8948_v50  ;;  %v3026_v47 = vsel %vm717_vm3, %v3012_v42, %v8936_v36  ;;  %v3025_v18 = vsel %vm717_vm3, %v8767_v34, %v3012_v42 }
 0x3fa   : > { %3257 = vrot.lane.b32.xlu0 %v8739_v25, %s10300_s14  ;;  %3259 = vrot.lane.b32.xlu1 %v8832_v53, %s10300_s14 }
 0x3fb   : > { %4586 = vmatprep.subr.bf16.mxu0 %v3644_v44  ;;  %4670 = vmatprep.subr.bf16.mxu1 %v3026_v47  ;;  %v9014_v44 = vld [vmem:[%s10270_s3 + $0x24] ss:$16 sps:$4 sm:$0xff]  }
 0x3fc   : > { %4587 = vmatpush1.bf16.msra.mxu0 %v3643_v33  ;;  %4671 = vmatpush1.bf16.msra.mxu1 %v3025_v18  ;;  %v8964_v2 = vpop.permute.xlu0 %3073  ;;  %v3072_v49 = vpop.permute.xlu1 %3071  ;;  %v3823_v33 = vsel %vm1321_vm12, %v8751_v63, %v8865_v52  ;;  %v3883_v63 = vsel %vm10338_vm9, %v8757_v29, %v8874_v38  ;;  %vm10342_vm9 = vmmov %vm10335_vm4 }
 0x3fd   : > { %v3087_v34 = vsel %vm3083_vm7, %v3072_v49, %v8964_v2  ;;  %v3086_v37 = vsel %vm3083_vm7, %v8786_v8, %v3072_v49  ;;  %v3703_v8 = vsel %vm3144_vm2, %v8743_v17, %v8851_v4  ;;  %v3763_v17 = vsel %vm1170_vm10, %v8749_v56, %v8860_v54 }
 0x3fe   : > { %4067 = vrot.lane.b32.xlu0 %v8739_v25, %s7465_s23  ;;  %4069 = vrot.lane.b32.xlu1 %v8832_v53, %s7465_s23 }
 0x3ff   : > { %4672 = vmatprep.subr.bf16.mxu1 %v3087_v34 }
 0x400   : > { %4673 = vmatpush1.bf16.msra.mxu1 %v3086_v37  ;;  %v8974_v31 = vpop.permute.xlu0 %3689  ;;  %v8976_v48 = vpop.permute.xlu1 %3134 }
 0x401   : > { %v3704_v13 = vsel %vm3144_vm2, %v8851_v4, %v8974_v31  ;;  %v9007_v4 = vld [vmem:[%s10270_s3] ss:$16 sps:$4 sm:$0xff]  }
 0x402   : > { %3317 = vrot.lane.b32.xlu0 %v8739_v25, %s10301_s13  ;;  %3319 = vrot.lane.b32.xlu1 %v8832_v53, %s10301_s13 }
 0x403   : > { %4588 = vmatprep.subr.bf16.mxu0 %v3704_v13 }
 0x404   : > { %4589 = vmatpush1.bf16.msra.mxu0 %v3703_v8  ;;  %v3133_v6 = vpop.permute.xlu0 %3132  ;;  %v8988_v28 = vpop.permute.xlu1 %3749 }
 0x405   : > { %v3764_v27 = vsel %vm1170_vm10, %v8860_v54, %v8988_v28  ;;  %v3148_v35 = vsel %vm3144_vm2, %v3133_v6, %v8976_v48  ;;  %v3147_v7 = vsel %vm3144_vm2, %v8775_v45, %v3133_v6  ;;  %v9052_v6 = vld [vmem:[%s10270_s3 + $0x20] ss:$16 sps:$4 sm:$0xff]  }
 0x406   : > { %4127 = vrot.lane.b32.xlu0 %v8739_v25, %s7468_s26  ;;  %4129 = vrot.lane.b32.xlu1 %v8832_v53, %s7468_s26 }
 0x407   : > { %4590 = vmatprep.subr.bf16.mxu0 %v3764_v27  ;;  %4674 = vmatprep.subr.bf16.mxu1 %v3148_v35  ;;  %v2883_v35 = vsel %vm793_vm5, %v8643_v55, %v8472_v9  ;;  %vm10340_vm5 = vmmov %vm10335_vm4 }
 0x408   : > { %4591 = vmatpush1.bf16.msra.mxu0 %v3763_v17  ;;  %4675 = vmatpush1.bf16.msra.mxu1 %v3147_v7  ;;  %v9009_v45 = vpop.permute.xlu0 %3195  ;;  %v3194_v42 = vpop.permute.xlu1 %3193  ;;  %v9083_v9 = vmax.bf16 %v2883_v35, %v8513_v41  ;;  %v3943_v41 = vsel %vm3385_vm8, %v8759_v40, %v8879_v58  ;;  %v4003_v40 = vsel %vm3446_vm11, %v8765_v0, %v8888_v1 }
 0x409   : > { %v3208_v47 = vsel %vm1170_vm10, %v3194_v42, %v9009_v45  ;;  %v3207_v56 = vsel %vm1170_vm10, %v8800_v14, %v3194_v42 }
 0x40a   : > { %3377 = vrot.lane.b32.xlu0 %v8739_v25, %s7487_s29  ;;  %3379 = vrot.lane.b32.xlu1 %v8832_v53, %s7487_s29 }
 0x40b   : > { %4676 = vmatprep.subr.bf16.mxu1 %v3208_v47  ;;  %4593 = vmatmul.mubr.bf16.vlgmr.msra.gmra.mrb[8].mxu0 %v9007_v4 }
 0x40c   : > { %4677 = vmatpush1.bf16.msra.mxu1 %v3207_v56  ;;  %v9025_v54 = vpop.permute.xlu0 %3809  ;;  %v9027_v18 = vpop.permute.xlu1 %3255  ;;  %4602 = vmatprep.mubr.bf16.mxu0 %v9014_v44 }
 0x40d   : > { %v3824_v14 = vsel %vm1321_vm12, %v8865_v52, %v9025_v54 }
 0x40e   : > { %4187 = vrot.lane.b32.xlu0 %v8739_v25, %s7485_s20  ;;  %4189 = vrot.lane.b32.xlu1 %v8832_v53, %s7485_s20 }
 0x40f   : > { %4613 = vmatprep.subr.bf16.mxu0 %v3824_v14 }
 0x410   : > { %4614 = vmatpush1.bf16.msra.mxu0 %v3823_v33  ;;  %v3254_v49 = vpop.permute.xlu0 %3253  ;;  %v9040_v34 = vpop.permute.xlu1 %3869 }
 0x411   : > { %v3884_v37 = vsel %vm10337_vm13, %v8874_v38, %v9040_v34  ;;  %v3268_v13 = vsel %vm1321_vm12, %v3254_v49, %v9027_v18  ;;  %v3267_v8 = vsel %vm1321_vm12, %v8791_v12, %v3254_v49  ;;  %v9064_v12 = vld [vmem:[%s10270_s3 + $0xc] ss:$16 sps:$4 sm:$0xff]   ;;  %vm10341_vm13 = vmmov %vm10335_vm4 }
 0x412   : > { %3438 = vrot.lane.b32.xlu0 %v8739_v25, %s7488_s30  ;;  %3440 = vrot.lane.b32.xlu1 %v8832_v53, %s7488_s30 }
 0x413   : > { %4615 = vmatprep.subr.bf16.mxu0 %v3884_v37  ;;  %4678 = vmatprep.subr.bf16.mxu1 %v3268_v13 }
 0x414   : > { %4616 = vmatpush1.bf16.msra.mxu0 %v3883_v63  ;;  %4679 = vmatpush1.bf16.msra.mxu1 %v3267_v8  ;;  %v9066_v52 = vpop.permute.xlu0 %3315  ;;  %v3314_v27 = vpop.permute.xlu1 %3313 }
 0x415   : > { %v3328_v7 = vsel %vm10335_vm4, %v3314_v27, %v9066_v52  ;;  %v3327_v29 = vsel %vm10339_vm15, %v8805_v57, %v3314_v27  ;;  %4603 = vmatmul.mubr.bf16.gmra.mrb[12].mxu0 %v9052_v6  ;;  %vm10343_vm15 = vmmov %vm10335_vm4 }
 0x416   : > { %4247 = vrot.lane.b32.xlu0 %v8739_v25, %s7486_s21  ;;  %4249 = vrot.lane.b32.xlu1 %v8832_v53, %s7486_s21 }
 0x417   : > { %4680 = vmatprep.subr.bf16.mxu1 %v3328_v7  ;;  %6796 = vmatprep.mubr.msk.bf16.mxu0 %vm4553_vm6, %v9064_v12 }
 0x418   : > { %4681 = vmatpush1.bf16.msra.mxu1 %v3327_v29  ;;  %v9085_v55 = vpop.permute.xlu0 %3929  ;;  %v9087_v38 = vpop.permute.xlu1 %3375 }
 0x419   : > { %v3944_v57 = vsel %vm3385_vm8, %v8879_v58, %v9085_v55 }
 0x41a   : > { %3515 = vrot.lane.b32.xlu0 %v8832_v53, %s7465_s23  ;;  %3517 = vrot.lane.b32.xlu1 %v9083_v9, %s7465_s23 }
 0x41b   : > { %4617 = vmatprep.subr.bf16.mxu0 %v3944_v57 }
 0x41c   : > { %4618 = vmatpush1.bf16.msra.mxu0 %v3943_v41  ;;  %v3374_v17 = vpop.permute.xlu0 %3373  ;;  %v9099_v42 = vpop.permute.xlu1 %3989 }
 0x41d   : > { %v4004_v47 = vsel %vm3446_vm11, %v8888_v1, %v9099_v42  ;;  %v3389_v56 = vsel %vm3385_vm8, %v3374_v17, %v9087_v38  ;;  %v3388_v14 = vsel %vm3385_vm8, %v8814_v61, %v3374_v17 }
 0x41e   : > { %2959 = vrot.lane.b32.xlu0 %v9083_v9, %s7465_s23  ;;  %3577 = vrot.lane.b32.xlu1 %v9083_v9, %s7468_s26 }
 0x41f   : > { %4619 = vmatprep.subr.bf16.mxu0 %v4004_v47  ;;  %4682 = vmatprep.subr.bf16.mxu1 %v3389_v56 }
 0x420   : > { %4620 = vmatpush1.bf16.msra.mxu0 %v4003_v40  ;;  %4683 = vmatpush1.bf16.msra.mxu1 %v3388_v14  ;;  %v9115_v58 = vpop.permute.xlu0 %3436  ;;  %v3435_v33 = vpop.permute.xlu1 %3434 }
 0x421   : > { %4621 = vmatprep.subr.bf16.mxu0 %v8536_v20  ;;  %v3450_v61 = vsel %vm3446_vm11, %v3435_v33, %v9115_v58  ;;  %v3449_v49 = vsel %vm3446_vm11, %v8819_v11, %v3435_v33 }
 0x422   : > { %3575 = vrot.lane.b32.xlu0 %v8832_v53, %s7468_s26  ;;  %3637 = vrot.lane.b32.xlu1 %v9083_v9, %s7485_s20 }
 0x423   : > { %4684 = vmatprep.subr.bf16.mxu1 %v3450_v61 }
 0x424   : > { %4622 = vmatpush1.bf16.msra.mxu0 %v8538_v60  ;;  %4685 = vmatpush1.bf16.msra.mxu1 %v3449_v49  ;;  %v4064_v0 = vpop.permute.xlu0 %4063  ;;  %v9127_v1 = vpop.permute.xlu1 %4065 }
 0x425   : > { %4686 = vmatprep.subr.bf16.mxu1 %v8629_v62  ;;  %v4080_v37 = vsel %vm566_vm1, %v4064_v0, %v9127_v1  ;;  %v4079_v11 = vsel %vm566_vm1, %v8902_v39, %v4064_v0 }
 0x426   : > { %3019 = vrot.lane.b32.xlu0 %v9083_v9, %s7468_s26  ;;  %3697 = vrot.lane.b32.xlu1 %v9083_v9, %s7486_s21 }
 0x427   : > { %4623 = vmatprep.subr.bf16.mxu0 %v4080_v37 }
 0x428   : > { %4624 = vmatpush1.bf16.msra.mxu0 %v4079_v11  ;;  %4687 = vmatpush1.bf16.msra.mxu1 %v8536_v20  ;;  %v9139_v60 = vpop.permute.xlu0 %3513  ;;  %v3512_v13 = vpop.permute.xlu1 %3511 }
 0x429   : > { %v3526_v8 = vsel %vm566_vm1, %v3512_v13, %v9139_v60  ;;  %v3525_v63 = vsel %vm566_vm1, %v8914_v26, %v3512_v13  ;;  %v9214_v13 = vld [vmem:[%s10270_s3 + $0x2c] ss:$16 sps:$4 sm:$0xff]  }
 0x42a   : > { %3635 = vrot.lane.b32.xlu0 %v8832_v53, %s7485_s20  ;;  %3757 = vrot.lane.b32.xlu1 %v9083_v9, %s10302_s28 }
 0x42b   : > { %4688 = vmatprep.subr.bf16.mxu1 %v3526_v8 }
 0x42c   : > { %4689 = vmatpush1.bf16.msra.mxu1 %v3525_v63  ;;  %v9149_v39 = vpop.permute.xlu0 %4125  ;;  %v4124_v20 = vpop.permute.xlu1 %4123 }
 0x42d   : > { %v4140_v27 = vsel %vm717_vm3, %v4124_v20, %v9149_v39  ;;  %v4139_v35 = vsel %vm717_vm3, %v8893_v15, %v4124_v20 }
 0x42e   : > { %3079 = vrot.lane.b32.xlu0 %v9083_v9, %s7485_s20  ;;  %3817 = vrot.lane.b32.xlu1 %v9083_v9, %s10300_s14 }
 0x42f   : > { %4625 = vmatprep.subr.bf16.mxu0 %v4140_v27  ;;  %v9237_v27 = vld [vmem:[%s10270_s3 + $0x28] ss:$16 sps:$4 sm:$0xff]  }
 0x430   : > { %4626 = vmatpush1.bf16.msra.mxu0 %v4139_v35  ;;  %v3572_v26 = vpop.permute.xlu0 %3571  ;;  %v9159_v7 = vpop.permute.xlu1 %3573 }
 0x431   : > { %v3586_v29 = vsel %vm717_vm3, %v3572_v26, %v9159_v7  ;;  %v3585_v57 = vsel %vm717_vm3, %v8934_v59, %v3572_v26 }
 0x432   : > { %3695 = vrot.lane.b32.xlu0 %v8832_v53, %s7486_s21  ;;  %3877 = vrot.lane.b32.xlu1 %v9083_v9, %s10301_s13 }
 0x433   : > { %4690 = vmatprep.subr.bf16.mxu1 %v3586_v29 }
 0x434   : > { %4691 = vmatpush1.bf16.msra.mxu1 %v3585_v57  ;;  %v4184_v15 = vpop.permute.xlu0 %4183  ;;  %v9169_v41 = vpop.permute.xlu1 %4185 }
 0x435   : > { %v4200_v17 = vsel %vm3083_vm7, %v4184_v15, %v9169_v41  ;;  %v4199_v47 = vsel %vm3083_vm7, %v8912_v43, %v4184_v15 }
 0x436   : > { %3140 = vrot.lane.b32.xlu0 %v9083_v9, %s7486_s21  ;;  %3937 = vrot.lane.b32.xlu1 %v9083_v9, %s7487_s29 }
 0x437   : > { %4627 = vmatprep.subr.bf16.mxu0 %v4200_v17 }
 0x438   : > { %4628 = vmatpush1.bf16.msra.mxu0 %v4199_v47  ;;  %v9179_v59 = vpop.permute.xlu0 %3633  ;;  %v3632_v56 = vpop.permute.xlu1 %3631 }
 0x439   : > { %v3646_v14 = vsel %vm3083_vm7, %v3632_v56, %v9179_v59  ;;  %v3645_v40 = vsel %vm3083_vm7, %v8948_v50, %v3632_v56  ;;  %v9202_v50 = vld [vmem:[%s10270_s3 + $0x8] ss:$16 sps:$4 sm:$0xff]  }
 0x43a   : > { %3755 = vrot.lane.b32.xlu0 %v8832_v53, %s10302_s28  ;;  %3997 = vrot.lane.b32.xlu1 %v9083_v9, %s7488_s30 }
 0x43b   : > { %4692 = vmatprep.subr.bf16.mxu1 %v3646_v14 }
 0x43c   : > { %4693 = vmatpush1.bf16.msra.mxu1 %v3645_v40  ;;  %v9189_v43 = vpop.permute.xlu0 %4245  ;;  %v4244_v33 = vpop.permute.xlu1 %4243 }
 0x43d   : > { %v4260_v61 = vsel %vm3144_vm2, %v4244_v33, %v9189_v43  ;;  %v4259_v49 = vsel %vm3144_vm2, %v8904_v32, %v4244_v33 }
 0x43e   : > { %3201 = vrot.lane.b32.xlu0 %v9083_v9, %s10302_s28  ;;  %7274 = vrot.lane.b32.xlu1 %v7484_v24, %s7465_s23 }
 0x43f   : > { %4629 = vmatprep.subr.bf16.mxu0 %v4260_v61 }
 0x440   : > { %4630 = vmatpush1.bf16.msra.mxu0 %v4259_v49  ;;  %v3692_v0 = vpop.permute.xlu0 %3691  ;;  %v9204_v37 = vpop.permute.xlu1 %3693 }
 0x441   : > { %4772 = vmatprep.subr.bf16.mxu0 %v8739_v25  ;;  %v3706_v32 = vsel %vm3144_vm2, %v3692_v0, %v9204_v37  ;;  %v3705_v11 = vsel %vm3144_vm2, %v8974_v31, %v3692_v0 }
 0x442   : > { %3815 = vrot.lane.b32.xlu0 %v8832_v53, %s10300_s14  ;;  %3581 = vrot.lane.b32.xlu1 %v7484_v24, %s7468_s26 }
 0x443   : > { %4646 = vmatmul.mubr.bf16.vlgmr.msra.gmra.mrb[8].mxu0 %v9202_v50  ;;  %4694 = vmatprep.subr.bf16.mxu1 %v3706_v32 }
 0x444   : > { %4695 = vmatpush1.bf16.msra.mxu1 %v3705_v11  ;;  %4773 = vmatpush1.bf16.msra.mxu0 %v8629_v62  ;;  %v3752_v8 = vpop.permute.xlu0 %3751  ;;  %v9222_v63 = vpop.permute.xlu1 %3753 }
 0x445   : > { %v3766_v31 = vsel %vm1170_vm10, %v3752_v8, %v9222_v63  ;;  %v3765_v20 = vsel %vm1170_vm10, %v8988_v28, %v3752_v8  ;;  %6797 = vmatprep.mubr.msk.bf16.mxu0 %vm4553_vm6, %v9214_v13 }
 0x446   : > { %3261 = vrot.lane.b32.xlu0 %v9083_v9, %s10300_s14  ;;  %4131 = vrot.lane.b32.xlu1 %v9083_v9, %s7468_s26 }
 0x447   : > { %4696 = vmatprep.subr.bf16.mxu1 %v3766_v31 }
 0x448   : > { %4697 = vmatpush1.bf16.msra.mxu1 %v3765_v20  ;;  %v2956_v35 = vpop.permute.xlu0 %2955  ;;  %v9239_v26 = vpop.permute.xlu1 %2957 }
 0x449   : > { %v2968_v28 = vsel %vm566_vm1, %v2956_v35, %v9239_v26  ;;  %v2967_v29 = vsel %vm566_vm1, %v8924_v46, %v2956_v35 }
 0x44a   : > { %3875 = vrot.lane.b32.xlu0 %v8832_v53, %s10301_s13  ;;  %7284 = vrot.lane.b32.xlu1 %v7484_v24, %s7485_s20 }
 0x44b   : > { %4656 = vmatmul.mubr.bf16.gmra.mrb[12].mxu0 %v9237_v27  ;;  %4774 = vmatprep.subr.bf16.mxu0 %v2968_v28 }
 0x44c   : > { %4775 = vmatpush1.bf16.msra.mxu0 %v2967_v29  ;;  %v3812_v57 = vpop.permute.xlu0 %3811  ;;  %v9250_v15 = vpop.permute.xlu1 %3813  ;;  %4699 = vmatmul.mubr.bf16.vlgmr.msra.gmra.mrb[8].mxu1 %v9007_v4 }
 0x44d   : > { %v3826_v17 = vsel %vm1321_vm12, %v3812_v57, %v9250_v15  ;;  %v3825_v46 = vsel %vm1321_vm12, %v9025_v54, %v3812_v57  ;;  %4708 = vmatprep.mubr.bf16.mxu1 %v9014_v44  ;;  %4804 = vmatprep.mubr.bf16.mxu0 %v8658_v3 }
 0x44e   : > { %3321 = vrot.lane.b32.xlu0 %v9083_v9, %s10301_s13  ;;  %4251 = vrot.lane.b32.xlu1 %v9083_v9, %s7486_s21 }
 0x44f   : > { %4719 = vmatprep.subr.bf16.mxu1 %v3826_v17 }
 0x450   : > { %4720 = vmatpush1.bf16.msra.mxu1 %v3825_v46  ;;  %v3016_v47 = vpop.permute.xlu0 %3015  ;;  %v9263_v56 = vpop.permute.xlu1 %3017  ;;  %v4493_v46 = vld [vmem:[%s10271_s4 + $0x10] sm:$0xff] }
 0x451   : > { %v3028_v14 = vsel %vm717_vm3, %v3016_v47, %v9263_v56  ;;  %v3027_v54 = vsel %vm717_vm3, %v8936_v36, %v3016_v47 }
 0x452   : > { %3935 = vrot.lane.b32.xlu0 %v8832_v53, %s7487_s29  ;;  %3701 = vrot.lane.b32.xlu1 %v7484_v24, %s7486_s21 }
 0x453   : > { %4776 = vmatprep.subr.bf16.mxu0 %v3028_v14 }
 0x454   : > { %4777 = vmatpush1.bf16.msra.mxu0 %v3027_v54  ;;  %v3872_v3 = vpop.permute.xlu0 %3871  ;;  %v9273_v40 = vpop.permute.xlu1 %3873  ;;  %4709 = vmatmul.mubr.bf16.gmra.mrb[12].mxu1 %v9052_v6 }
 0x455   : > { %v3886_v33 = vsel %vm10340_vm5, %v3872_v3, %v9273_v40  ;;  %v3885_v61 = vsel %vm10341_vm13, %v9040_v34, %v3872_v3  ;;  %6798 = vmatprep.mubr.msk.bf16.mxu1 %vm4553_vm6, %v9064_v12  ;;  %vm10344_vm5 = vmmov %vm10335_vm4 }
 0x456   : > { %3381 = vrot.lane.b32.xlu0 %v9083_v9, %s7487_s29  ;;  %7299 = vrot.lane.b32.xlu1 %v7484_v24, %s10300_s14  ;;  %vm10345_vm13 = vmmov %vm10335_vm4 }
 0x457   : > { %4721 = vmatprep.subr.bf16.mxu1 %v3886_v33 }
 0x458   : > { %4722 = vmatpush1.bf16.msra.mxu1 %v3885_v61  ;;  %v3076_v36 = vpop.permute.xlu0 %3075  ;;  %v9286_v49 = vpop.permute.xlu1 %3077 }
 0x459   : > { %v3089_v0 = vsel %vm3083_vm7, %v3076_v36, %v9286_v49  ;;  %v3088_v34 = vsel %vm3083_vm7, %v8964_v2, %v3076_v36 }
 0x45a   : > { %3995 = vrot.lane.b32.xlu0 %v8832_v53, %s7488_s30  ;;  %7309 = vrot.lane.b32.xlu1 %v7484_v24, %s7487_s29 }
 0x45b   : > { %4778 = vmatprep.subr.bf16.mxu0 %v3089_v0 }
 0x45c   : > { %4779 = vmatpush1.bf16.msra.mxu0 %v3088_v34  ;;  %v3932_v32 = vpop.permute.xlu0 %3931  ;;  %v9296_v11 = vpop.permute.xlu1 %3933 }
 0x45d   : > { %v3946_v8 = vsel %vm3385_vm8, %v3932_v32, %v9296_v11  ;;  %v3945_v31 = vsel %vm3385_vm8, %v9085_v55, %v3932_v32  ;;  %v4491_v55 = vld [vmem:[%s10271_s4] sm:$0xff] }
 0x45e   : > { %3521 = vrot.lane.b32.xlu0 %v7484_v24, %s7465_s23  ;;  %7319 = vrot.lane.b32.xlu1 %v7484_v24, %s7465_s23 }
 0x45f   : > { %4723 = vmatprep.subr.bf16.mxu1 %v3946_v8 }
 0x460   : > { %4724 = vmatpush1.bf16.msra.mxu1 %v3945_v31  ;;  %v3137_v2 = vpop.permute.xlu0 %3136  ;;  %v9306_v20 = vpop.permute.xlu1 %3138 }
 0x461   : > { %v3150_v35 = vsel %vm3144_vm2, %v3137_v2, %v9306_v20  ;;  %v3149_v28 = vsel %vm3144_vm2, %v8976_v48, %v3137_v2 }
 0x462   : > { %3442 = vrot.lane.b32.xlu0 %v9083_v9, %s7488_s30  ;;  %7329 = vrot.lane.b32.xlu1 %v7484_v24, %s7485_s20 }
 0x463   : > { %4780 = vmatprep.subr.bf16.mxu0 %v3150_v35 }
 0x464   : > { %4781 = vmatpush1.bf16.msra.mxu0 %v3149_v28  ;;  %v3992_v29 = vpop.permute.xlu0 %3991  ;;  %v9319_v57 = vpop.permute.xlu1 %3993 }
 0x465   : > { %v4006_v17 = vsel %vm3446_vm11, %v3992_v29, %v9319_v57  ;;  %v4005_v48 = vsel %vm3446_vm11, %v9099_v42, %v3992_v29 }
 0x466   : > { %7279 = vrot.lane.b32.xlu0 %v7484_v24, %s7468_s26  ;;  %4497 = vperm.xlu1 %7271, %v4491_v55  }
 0x467   : > { %4725 = vmatprep.subr.bf16.mxu1 %v4006_v17 }
 0x468   : > { %4726 = vmatpush1.bf16.msra.mxu1 %v4005_v48  ;;  %v3198_v47 = vpop.permute.xlu0 %3197  ;;  %v9330_v14 = vpop.permute.xlu1 %3199 }
 0x469   : > { %4727 = vmatprep.subr.bf16.mxu1 %v8739_v25  ;;  %v3210_v54 = vsel %vm1170_vm10, %v3198_v47, %v9330_v14  ;;  %v3209_v42 = vsel %vm1170_vm10, %v9009_v45, %v3198_v47 }
 0x46a   : > { %4071 = vrot.lane.b32.xlu0 %v9083_v9, %s7465_s23  ;;  %4507 = vperm.xlu1 %7271, %v4493_v46  }
 0x46b   : > { %4782 = vmatprep.subr.bf16.mxu0 %v3210_v54 }
 0x46c   : > { %4728 = vmatpush1.bf16.msra.mxu1 %v8629_v62  ;;  %4783 = vmatpush1.bf16.msra.mxu0 %v3209_v42  ;;  %v3258_v3 = vpop.permute.xlu0 %3257  ;;  %v9340_v33 = vpop.permute.xlu1 %3259 }
 0x46d   : > { %v3270_v61 = vsel %vm1321_vm12, %v3258_v3, %v9340_v33  ;;  %v3269_v36 = vsel %vm1321_vm12, %v9027_v18, %v3258_v3 }
 0x46e   : > { %3641 = vrot.lane.b32.xlu0 %v7484_v24, %s7485_s20  ;;  %4784 = vmatprep.subr.bf16.mxu0 %v3270_v61 }
 0x470   : > { %4785 = vmatpush1.bf16.msra.mxu0 %v3269_v36  ;;  %v4068_v45 = vpop.permute.xlu0 %4067  ;;  %v9348_v0 = vpop.permute.xlu1 %4069 }
 0x471   : > { %v4082_v62 = vsel %vm566_vm1, %v4068_v45, %v9348_v0  ;;  %v4081_v34 = vsel %vm566_vm1, %v9127_v1, %v4068_v45 }
 0x472   : > { %4191 = vrot.lane.b32.xlu0 %v9083_v9, %s7485_s20  ;;  %4729 = vmatprep.subr.bf16.mxu1 %v4082_v62 }
 0x473   : > { %4730 = vmatpush1.bf16.msra.mxu1 %v4081_v34 }
 0x474   : > { %v3318_v18 = vpop.permute.xlu0 %3317  ;;  %v9356_v32 = vpop.permute.xlu1 %3319 }
 0x475   : > { %v3330_v8 = vsel %vm10342_vm9, %v3318_v18, %v9356_v32  ;;  %v3329_v31 = vsel %vm10335_vm4, %v9066_v52, %v3318_v18  ;;  %vm10346_vm9 = vmmov %vm10335_vm4 }
 0x476   : > { %7289 = vrot.lane.b32.xlu0 %v7484_v24, %s7486_s21  ;;  %4786 = vmatprep.subr.bf16.mxu0 %v3330_v8 }
 0x477   : > { %4787 = vmatpush1.bf16.msra.mxu0 %v3329_v31 }
 0x478   : > { %v4128_v1 = vpop.permute.xlu0 %4127  ;;  %v9364_v2 = vpop.permute.xlu1 %4129 }
 0x479   : > { %v4142_v35 = vsel %vm717_vm3, %v4128_v1, %v9364_v2  ;;  %v4141_v28 = vsel %vm717_vm3, %v9149_v39, %v4128_v1 }
 0x47a   : > { %7294 = vrot.lane.b32.xlu0 %v7484_v24, %s10302_s28  ;;  %4731 = vmatprep.subr.bf16.mxu1 %v4142_v35 }
 0x47b   : > { %4732 = vmatpush1.bf16.msra.mxu1 %v4141_v28 }
 0x47c   : > { %v3378_v52 = vpop.permute.xlu0 %3377  ;;  %v9372_v55 = vpop.permute.xlu1 %3379 }
 0x47d   : > { %v3391_v29 = vsel %vm3385_vm8, %v3378_v52, %v9372_v55  ;;  %v3390_v17 = vsel %vm3385_vm8, %v9087_v38, %v3378_v52 }
 0x47e   : > { %7304 = vrot.lane.b32.xlu0 %v7484_v24, %s10301_s13  ;;  %4788 = vmatprep.subr.bf16.mxu0 %v3391_v29 }
 0x47f   : > { %4789 = vmatpush1.bf16.msra.mxu0 %v3390_v17 }
 0x480   : > { %v4188_v39 = vpop.permute.xlu0 %4187  ;;  %v9380_v48 = vpop.permute.xlu1 %4189 }
 0x481   : > { %v4202_v46 = vsel %vm3083_vm7, %v4188_v39, %v9380_v48  ;;  %v4201_v47 = vsel %vm3083_vm7, %v9169_v41, %v4188_v39 }
 0x482   : > { %7314 = vrot.lane.b32.xlu0 %v7484_v24, %s7488_s30  ;;  %4733 = vmatprep.subr.bf16.mxu1 %v4202_v46 }
 0x483   : > { %4734 = vmatpush1.bf16.msra.mxu1 %v4201_v47 }
 0x484   : > { %v3439_v38 = vpop.permute.xlu0 %3438  ;;  %v9388_v54 = vpop.permute.xlu1 %3440 }
 0x485   : > { %v3452_v42 = vsel %vm3446_vm11, %v3439_v38, %v9388_v54  ;;  %v3451_v3 = vsel %vm3446_vm11, %v9115_v58, %v3439_v38  ;;  %v4492_v58 = vld [vmem:[%s10271_s4 + $0x8] sm:$0xff] }
 0x486   : > { %7324 = vrot.lane.b32.xlu0 %v7484_v24, %s7468_s26  ;;  %4790 = vmatprep.subr.bf16.mxu0 %v3452_v42 }
 0x487   : > { %4791 = vmatpush1.bf16.msra.mxu0 %v3451_v3 }
 0x488   : > { %v4248_v41 = vpop.permute.xlu0 %4247  ;;  %4792 = vmatprep.subr.bf16.mxu0 %v8832_v53  ;;  %v9397_v61 = vpop.permute.xlu1 %4249 }
 0x489   : > { %v4262_v36 = vsel %vm3144_vm2, %v4248_v41, %v9397_v61  ;;  %v4261_v45 = vsel %vm3144_vm2, %v9189_v43, %v4248_v41 }
 0x48a   : > { %7334 = vrot.lane.b32.xlu0 %v7484_v24, %s7486_s21  ;;  %4735 = vmatprep.subr.bf16.mxu1 %v4262_v36 }
 0x48b   : > { %4736 = vmatpush1.bf16.msra.mxu1 %v4261_v45  ;;  %4793 = vmatpush1.bf16.msra.mxu0 %v8739_v25  ;;  %v4494_v25 = vld [vmem:[%s10271_s4 + $0x18] sm:$0xff] }
 0x48c   : > { %v3516_v62 = vpop.permute.xlu0 %3515  ;;  %4878 = vmatprep.subr.bf16.mxu1 %v9083_v9  ;;  %v9410_v34 = vpop.permute.xlu1 %3517 }
 0x48d   : > { %v3528_v18 = vsel %vm566_vm1, %v3516_v62, %v9410_v34  ;;  %v3527_v43 = vsel %vm566_vm1, %v9139_v60, %v3516_v62 }
 0x48e   : > { %4502 = vperm.xlu0 %7272, %v4492_v58   ;;  %4752 = vmatmul.mubr.bf16.vlgmr.msra.gmra.mrb[8].mxu1 %v9202_v50 }
 0x48f   : > { %4794 = vmatprep.subr.bf16.mxu0 %v3528_v18  ;;  %4879 = vmatpush1.bf16.msra.mxu1 %v8832_v53 }
 0x490   : > { %4795 = vmatpush1.bf16.msra.mxu0 %v3527_v43  ;;  %v2960_v8 = vpop.permute.xlu0 %2959  ;;  %6799 = vmatprep.mubr.msk.bf16.mxu1 %vm4553_vm6, %v9214_v13  ;;  %v9427_v1 = vpop.permute.xlu1 %3577 }
 0x491   : > { %v2970_v31 = vsel %vm566_vm1, %v2960_v8, %v8474_v21  ;;  %v2969_v60 = vsel %vm566_vm1, %v9239_v26, %v2960_v8  ;;  %v7455_v21 = vld [vmem:[%s10270_s3 + $0x4] ss:$16 sps:$4 sm:$0xff]  }
 0x492   : > { %4512 = vperm.xlu0 %7272, %v4494_v25   ;;  %4880 = vmatprep.subr.bf16.mxu1 %v2970_v31 }
 0x493   : > { %4881 = vmatpush1.bf16.msra.mxu1 %v2969_v60 }
 0x494   : > { %v3576_v35 = vpop.permute.xlu0 %3575  ;;  %v9441_v39 = vpop.permute.xlu1 %3637 }
 0x495   : > { %v3588_v28 = vsel %vm717_vm3, %v3576_v35, %v9427_v1  ;;  %v3587_v52 = vsel %vm717_vm3, %v9159_v7, %v3576_v35 }
 0x496   : > { %4762 = vmatmul.mubr.bf16.gmra.mrb[12].mxu1 %v9237_v27  ;;  %4796 = vmatprep.subr.bf16.mxu0 %v3588_v28 }
 0x497   : > { %4797 = vmatpush1.bf16.msra.mxu0 %v3587_v52  ;;  %4910 = vmatprep.mubr.bf16.mxu1 %v7455_v21 }
 0x498   : > { %v3020_v26 = vpop.permute.xlu0 %3019  ;;  %v9451_v42 = vpop.permute.xlu1 %3697 }
 0x499   : > { %v3030_v29 = vsel %vm717_vm3, %v3020_v26, %v8476_v22  ;;  %v3029_v17 = vsel %vm717_vm3, %v9263_v56, %v3020_v26 }
 0x49a   : > { %4882 = vmatprep.subr.bf16.mxu1 %v3030_v29 }
 0x49b   : > { %4883 = vmatpush1.bf16.msra.mxu1 %v3029_v17 }
 0x49c   : > { %v3636_v7 = vpop.permute.xlu0 %3635  ;;  %v9457_v36 = vpop.permute.xlu1 %3757 }
 0x49d   : > { %v3648_v46 = vsel %vm3083_vm7, %v3636_v7, %v9441_v39  ;;  %v3647_v47 = vsel %vm3083_vm7, %v9179_v59, %v3636_v7 }
 0x49e   : > { %4798 = vmatprep.subr.bf16.mxu0 %v3648_v46 }
 0x49f   : > { %4799 = vmatpush1.bf16.msra.mxu0 %v3647_v47 }
 0x4a0   : > { %v3080_v38 = vpop.permute.xlu0 %3079  ;;  %v9467_v18 = vpop.permute.xlu1 %3817 }
 0x4a1   : > { %v3091_v22 = vsel %vm3083_vm7, %v3080_v38, %v8478_v16  ;;  %v3090_v56 = vsel %vm3083_vm7, %v9286_v49, %v3080_v38 }
 0x4a2   : > { %4884 = vmatprep.subr.bf16.mxu1 %v3091_v22 }
 0x4a3   : > { %4885 = vmatpush1.bf16.msra.mxu1 %v3090_v56 }
 0x4a4   : > { %v3696_v3 = vpop.permute.xlu0 %3695  ;;  %v9475_v25 = vpop.permute.xlu1 %3877 }
 0x4a5   : > { %v3708_v41 = vsel %vm3144_vm2, %v3696_v3, %v9451_v42  ;;  %v3707_v59 = vsel %vm3144_vm2, %v9204_v37, %v3696_v3 }
 0x4a6   : > { %4800 = vmatprep.subr.bf16.mxu0 %v3708_v41 }
 0x4a7   : > { %4801 = vmatpush1.bf16.msra.mxu0 %v3707_v59 }
 0x4a8   : > { %v3141_v45 = vpop.permute.xlu0 %3140  ;;  %v9485_v35 = vpop.permute.xlu1 %3937 }
 0x4a9   : > { %v3152_v16 = vsel %vm3144_vm2, %v3141_v45, %v8480_v30  ;;  %v3151_v49 = vsel %vm3144_vm2, %v9306_v20, %v3141_v45 }
 0x4aa   : > { %4886 = vmatprep.subr.bf16.mxu1 %v3152_v16 }
 0x4ab   : > { %4887 = vmatpush1.bf16.msra.mxu1 %v3151_v49 }
 0x4ac   : > { %v3756_v58 = vpop.permute.xlu0 %3755 }
 0x4ad   : > { %v3768_v62 = vsel %vm1170_vm10, %v3756_v58, %v9457_v36  ;;  %v3767_v37 = vsel %vm1170_vm10, %v9222_v63, %v3756_v58 }
 0x4ae   : > { %4802 = vmatprep.subr.bf16.mxu0 %v3768_v62 }
 0x4af   : > { %4803 = vmatpush1.bf16.msra.mxu0 %v3767_v37 }
 0x4b0   : > { %v3202_v43 = vpop.permute.xlu0 %3201 }
 0x4b1   : > { %v3212_v30 = vsel %vm1170_vm10, %v3202_v43, %v8482_v23  ;;  %v3211_v20 = vsel %vm1170_vm10, %v9330_v14, %v3202_v43 }
 0x4b2   : > { %4888 = vmatprep.subr.bf16.mxu1 %v3212_v30  ;;  %4805 = vmatmul.mubr.bf16.vlgmr.msra.gmra.mrb[16].mxu0 %v9007_v4 }
 0x4b3   : > { %4889 = vmatpush1.bf16.msra.mxu1 %v3211_v20  ;;  %4814 = vmatprep.mubr.bf16.mxu0 %v9014_v44 }
 0x4b4   : > { %v3816_v63 = vpop.permute.xlu0 %3815 }
 0x4b5   : > { %v3828_v8 = vsel %vm1321_vm12, %v3816_v63, %v9467_v18  ;;  %v3827_v31 = vsel %vm1321_vm12, %v9250_v15, %v3816_v63 }
 0x4b6   : > { %4825 = vmatprep.subr.bf16.mxu0 %v3828_v8 }
 0x4b7   : > { %4826 = vmatpush1.bf16.msra.mxu0 %v3827_v31 }
 0x4b8   : > { %v3262_v23 = vpop.permute.xlu0 %3261 }
 0x4b9   : > { %v3272_v14 = vsel %vm1321_vm12, %v3262_v23, %v8484_v10  ;;  %v3271_v60 = vsel %vm1321_vm12, %v9340_v33, %v3262_v23  ;;  %v9494_v10 = vpop.permute.xlu1 %3997 }
 0x4ba   : > { %4890 = vmatprep.subr.bf16.mxu1 %v3272_v14  ;;  %4815 = vmatmul.mubr.bf16.gmra.mrb[20].mxu0 %v9052_v6 }
 0x4bb   : > { %4891 = vmatpush1.bf16.msra.mxu1 %v3271_v60  ;;  %6800 = vmatprep.mubr.msk.bf16.mxu0 %vm4553_vm6, %v9064_v12 }
 0x4bc   : > { %v3876_v28 = vpop.permute.xlu0 %3875 }
 0x4bd   : > { %v3888_v15 = vsel %vm10343_vm15, %v3876_v28, %v9475_v25  ;;  %v3887_v52 = vsel %vm10344_vm5, %v9273_v40, %v3876_v28  ;;  %v9504_v7 = vpop.permute.xlu1 %7274  ;;  %vm10347_vm15 = vmmov %vm10335_vm4 }
 0x4be   : > { %4827 = vmatprep.subr.bf16.mxu0 %v3888_v15  ;;  %v7277_v45 = vunpack.i.h.bf16 %v9504_v7  ;;  %v7276_v16 = vunpack.i.l.bf16 %v9504_v7 }
 0x4bf   : > { %4828 = vmatpush1.bf16.msra.mxu0 %v3887_v52 }
 0x4c0   : > { %v3322_v33 = vpop.permute.xlu0 %3321  ;;  %v3529_v43 = vsel %vm566_vm1, %v9410_v34, %v7277_v45 }
 0x4c1   : > { %v3332_v21 = vsel %vm10345_vm13, %v3322_v33, %v8486_v5  ;;  %v3331_v26 = vsel %vm10346_vm9, %v9356_v32, %v3322_v33  ;;  %v3582_v47 = vpop.permute.xlu1 %3581 }
 0x4c2   : > { %4892 = vmatprep.subr.bf16.mxu1 %v3332_v21 }
 0x4c3   : > { %4893 = vmatpush1.bf16.msra.mxu1 %v3331_v26 }
 0x4c4   : > { %v3936_v29 = vpop.permute.xlu0 %3935 }
 0x4c5   : > { %v3948_v17 = vsel %vm3385_vm8, %v3936_v29, %v9485_v35  ;;  %v3947_v40 = vsel %vm3385_vm8, %v9296_v11, %v3936_v29  ;;  %v4132_v3 = vpop.permute.xlu1 %4131 }
 0x4c6   : > { %4829 = vmatprep.subr.bf16.mxu0 %v3948_v17  ;;  %v4143_v8 = vsel %vm717_vm3, %v9364_v2, %v4132_v3 }
 0x4c7   : > { %4830 = vmatpush1.bf16.msra.mxu0 %v3947_v40 }
 0x4c8   : > { %v3382_v46 = vpop.permute.xlu0 %3381 }
 0x4c9   : > { %v3392_v5 = vsel %vm3385_vm8, %v9372_v55, %v3382_v46  ;;  %v3393_v32 = vsel %vm3385_vm8, %v3382_v46, %v8488_v51 }
 0x4ca   : > { %4894 = vmatprep.subr.bf16.mxu1 %v3393_v32 }
 0x4cb   : > { %4895 = vmatpush1.bf16.msra.mxu1 %v3392_v5 }
 0x4cc   : > { %v3996_v38 = vpop.permute.xlu0 %3995 }
 0x4cd   : > { %v4007_v22 = vsel %vm3446_vm11, %v9319_v57, %v3996_v38  ;;  %v4008_v11 = vsel %vm3446_vm11, %v3996_v38, %v9494_v10  ;;  %v9520_v57 = vpop.permute.xlu1 %7284 }
 0x4ce   : > { %4831 = vmatprep.subr.bf16.mxu0 %v4008_v11  ;;  %v7286_v63 = vunpack.i.l.bf16 %v9520_v57 }
 0x4cf   : > { %4832 = vmatpush1.bf16.msra.mxu0 %v4007_v22 }
 0x4d0   : > { %v3522_v56 = vpop.permute.xlu0 %3521  ;;  %4833 = vmatprep.subr.bf16.mxu0 %v9083_v9 }
 0x4d1   : > { %v4252_v37 = vpop.permute.xlu1 %4251 }
 0x4d3   : > { %4834 = vmatpush1.bf16.msra.mxu0 %v8832_v53 }
 0x4d4   : > { %v3443_v55 = vpop.permute.xlu0 %3442 }
 0x4d5   : > { %v3453_v51 = vsel %vm3446_vm11, %v9388_v54, %v3443_v55  ;;  %v3454_v41 = vsel %vm3446_vm11, %v3443_v55, %v8490_v19  ;;  %v3530_v19 = vsel %vm566_vm1, %v7277_v45, %v3522_v56  ;;  %v3702_v23 = vpop.permute.xlu1 %3701 }
 0x4d6   : > { %4896 = vmatprep.subr.bf16.mxu1 %v3454_v41 }
 0x4d7   : > { %4897 = vmatpush1.bf16.msra.mxu1 %v3453_v51 }
 0x4d8   : > { %v9522_v59 = vpop.permute.xlu0 %7279  ;;  %4898 = vmatprep.subr.bf16.mxu1 %v7484_v24 }
 0x4d9   : > { %v7282_v53 = vunpack.i.h.bf16 %v9522_v59  ;;  %v7281_v49 = vunpack.i.l.bf16 %v9522_v59  ;;  %v7300_v33 = vpop.permute.xlu1 %7299 }
 0x4da   : > { %v7302_v21 = vunpack.i.h.bf16 %v7300_v33  ;;  %v7301_v40 = vunpack.i.l.bf16 %v7300_v33 }
 0x4db   : > { %4899 = vmatpush1.bf16.msra.mxu1 %v9083_v9  ;;  %v4144_v9 = vsel %vm717_vm3, %v4132_v3, %v7281_v49  ;;  %v3590_v30 = vsel %vm717_vm3, %v7282_v53, %v3582_v47  ;;  %v3589_v34 = vsel %vm717_vm3, %v9427_v1, %v7282_v53 }
 0x4dc   : > { %v4072_v54 = vpop.permute.xlu0 %4071  ;;  %4900 = vmatprep.subr.bf16.mxu1 %v3530_v19  ;;  %v3830_v38 = vsel %vm1321_vm12, %v7301_v40, %v7302_v21 }
 0x4dd   : > { %v4083_v58 = vsel %vm566_vm1, %v9348_v0, %v4072_v54  ;;  %v4084_v62 = vsel %vm566_vm1, %v4072_v54, %v7276_v16  ;;  %v7287_v0 = vunpack.i.h.bf16 %v9520_v57  ;;  %v7310_v11 = vpop.permute.xlu1 %7309 }
 0x4de   : > { %4835 = vmatprep.subr.bf16.mxu0 %v4084_v62  ;;  %v7312_v56 = vunpack.i.h.bf16 %v7310_v11  ;;  %v7311_v55 = vunpack.i.l.bf16 %v7310_v11 }
 0x4df   : > { %4836 = vmatpush1.bf16.msra.mxu0 %v4083_v58  ;;  %4901 = vmatpush1.bf16.msra.mxu1 %v3529_v43  ;;  %v3649_v2 = vsel %vm3083_vm7, %v9441_v39, %v7287_v0  ;;  %v4263_v39 = vsel %vm3144_vm2, %v9397_v61, %v4252_v37 }
 0x4e0   : > { %v3642_v20 = vpop.permute.xlu0 %3641  ;;  %4837 = vmatprep.subr.bf16.mxu0 %v4144_v9  ;;  %4902 = vmatprep.subr.bf16.mxu1 %v3590_v30  ;;  %v3950_v45 = vsel %vm3385_vm8, %v7311_v55, %v7312_v56 }
 0x4e1   : > { %v3650_v31 = vsel %vm3083_vm7, %v7287_v0, %v3642_v20 }
 0x4e3   : > { %4838 = vmatpush1.bf16.msra.mxu0 %v4143_v8  ;;  %4903 = vmatpush1.bf16.msra.mxu1 %v3589_v34 }
 0x4e4   : > { %v4192_v14 = vpop.permute.xlu0 %4191  ;;  %4904 = vmatprep.subr.bf16.mxu1 %v3650_v31 }
 0x4e5   : > { %v4203_v60 = vsel %vm3083_vm7, %v9380_v48, %v4192_v14  ;;  %v4204_v28 = vsel %vm3083_vm7, %v4192_v14, %v7286_v63 }
 0x4e6   : > { %4839 = vmatprep.subr.bf16.mxu0 %v4204_v28 }
 0x4e7   : > { %4840 = vmatpush1.bf16.msra.mxu0 %v4203_v60  ;;  %4905 = vmatpush1.bf16.msra.mxu1 %v3649_v2 }
 0x4e8   : > { %v9556_v1 = vpop.permute.xlu0 %7289 }
 0x4e9   : > { %v7292_v15 = vunpack.i.h.bf16 %v9556_v1  ;;  %v7291_v52 = vunpack.i.l.bf16 %v9556_v1 }
 0x4eb   : > { %v4264_v48 = vsel %vm3144_vm2, %v4252_v37, %v7291_v52  ;;  %v3710_v26 = vsel %vm3144_vm2, %v7292_v15, %v3702_v23  ;;  %v3709_v29 = vsel %vm3144_vm2, %v9451_v42, %v7292_v15 }
 0x4ec   : > { %v7295_v17 = vpop.permute.xlu0 %7294  ;;  %4841 = vmatprep.subr.bf16.mxu0 %v4264_v48  ;;  %4906 = vmatprep.subr.bf16.mxu1 %v3710_v26 }
 0x4ed   : > { %v7297_v46 = vunpack.i.h.bf16 %v7295_v17  ;;  %v7296_v5 = vunpack.i.l.bf16 %v7295_v17  ;;  %4842 = vmatpush1.bf16.msra.mxu0 %v4263_v39  ;;  %4907 = vmatpush1.bf16.msra.mxu1 %v3709_v29 }
 0x4ef   : > { %v3770_v32 = vsel %vm1170_vm10, %v7296_v5, %v7297_v46  ;;  %v3769_v47 = vsel %vm1170_vm10, %v9457_v36, %v7296_v5  ;;  %v3829_v36 = vsel %vm1321_vm12, %v9467_v18, %v7301_v40  ;;  %v3949_v18 = vsel %vm3385_vm8, %v9485_v35, %v7311_v55 }
 0x4f0   : > { %v7305_v22 = vpop.permute.xlu0 %7304  ;;  %4858 = vmatmul.mubr.bf16.vlgmr.msra.gmra.mrb[16].mxu0 %v9202_v50  ;;  %4908 = vmatprep.subr.bf16.mxu1 %v3770_v32 }
 0x4f1   : > { %v7307_v61 = vunpack.i.h.bf16 %v7305_v22  ;;  %v7306_v42 = vunpack.i.l.bf16 %v7305_v22  ;;  %4909 = vmatpush1.bf16.msra.mxu1 %v3769_v47  ;;  %6801 = vmatprep.mubr.msk.bf16.mxu0 %vm4553_vm6, %v9214_v13 }
 0x4f2   : > { %4931 = vmatprep.subr.bf16.mxu1 %v3830_v38 }
 0x4f3   : > { %v3890_v3 = vsel %vm10335_vm4, %v7306_v42, %v7307_v61  ;;  %v3889_v53 = vsel %vm10347_vm15, %v9475_v25, %v7306_v42 }
 0x4f4   : > { %4911 = vmatmul.mubr.bf16.vlgmr.msra.gmra.mrb[16].mxu1 %v9007_v4  ;;  %v7315_v51 = vpop.permute.xlu0 %7314 }
 0x4f5   : > { %4932 = vmatpush1.bf16.msra.mxu1 %v3829_v36  ;;  %4920 = vmatprep.mubr.bf16.mxu1 %v9014_v44  ;;  %v7317_v41 = vunpack.i.h.bf16 %v7315_v51  ;;  %v7316_v19 = vunpack.i.l.bf16 %v7315_v51  ;;  %v7320_v44 = vpop.permute.xlu1 %7319 }
 0x4f6   : > { %4933 = vmatprep.subr.bf16.mxu1 %v3890_v3  ;;  %v7322_v54 = vunpack.i.h.bf16 %v7320_v44  ;;  %v7321_v58 = vunpack.i.l.bf16 %v7320_v44 }
 0x4f7   : > { %v4010_v4 = vsel %vm3446_vm11, %v7316_v19, %v7317_v41  ;;  %v4009_v25 = vsel %vm3446_vm11, %v9494_v10, %v7316_v19 }
 0x4f8   : > { %4868 = vmatmul.mubr.bf16.gmra.mrb[20].mxu0 %v9237_v27  ;;  %v7325_v62 = vpop.permute.xlu0 %7324  ;;  %v4086_v35 = vsel %vm566_vm1, %v7321_v58, %v7322_v54  ;;  %v4085_v10 = vsel %vm566_vm1, %v7276_v16, %v7321_v58 }
 0x4f9   : > { %4934 = vmatpush1.bf16.msra.mxu1 %v3889_v53  ;;  %v7327_v37 = vunpack.i.h.bf16 %v7325_v62  ;;  %v7326_v43 = vunpack.i.l.bf16 %v7325_v62 }
 0x4fa   : > { %4935 = vmatprep.subr.bf16.mxu1 %v3950_v45 }
 0x4fb   : > { %v4146_v9 = vsel %vm717_vm3, %v7326_v43, %v7327_v37 }
 0x4fc   : > { %4921 = vmatmul.mubr.bf16.gmra.mrb[20].mxu1 %v9052_v6  ;;  %v7330_v6 = vpop.permute.xlu1 %7329  ;;  %v7335_v20 = vpop.permute.xlu0 %7334 }
 0x4fd   : > { %4936 = vmatpush1.bf16.msra.mxu1 %v3949_v18  ;;  %6802 = vmatprep.mubr.msk.bf16.mxu1 %vm4553_vm6, %v9064_v12  ;;  %v7332_v12 = vunpack.i.h.bf16 %v7330_v6  ;;  %v7331_v30 = vunpack.i.l.bf16 %v7330_v6  ;;  %v7337_v0 = vunpack.i.h.bf16 %v7335_v20  ;;  %v7336_v34 = vunpack.i.l.bf16 %v7335_v20 }
 0x4fe   : > { %4937 = vmatprep.subr.bf16.mxu1 %v4010_v4 }
 0x4ff   : > { %v4206_v8 = vsel %vm3083_vm7, %v7331_v30, %v7332_v12  ;;  %v4266_v31 = vsel %vm3144_vm2, %v7336_v34, %v7337_v0  ;;  %v4205_v7 = vsel %vm3083_vm7, %v7286_v63, %v7331_v30  ;;  %v4265_v16 = vsel %vm3144_vm2, %v7291_v52, %v7336_v34 }
 0x500   : > { %v9610_v23 = vpop.permute.xlu1 %4497 }
 0x501   : > { %4938 = vmatpush1.bf16.msra.mxu1 %v4009_v25 }
 0x502   : > { %4939 = vmatprep.subr.bf16.mxu1 %v7484_v24 }
 0x504   : > { %v9623_v26 = vpop.permute.xlu1 %4507 }
 0x505   : > { %4940 = vmatpush1.bf16.msra.mxu1 %v7484_v24  ;;  %v4145_v24 = vsel %vm717_vm3, %v7281_v49, %v7326_v43  ;;  %vm5326_vm3 = vcmask 7168  }
 0x506   : > { %4941 = vmatprep.subr.bf16.mxu1 %v4086_v35 }
 0x509   : > { %4942 = vmatpush1.bf16.msra.mxu1 %v4085_v10 }
 0x50a   : > { %4943 = vmatprep.subr.bf16.mxu1 %v4146_v9 }
 0x50d   : > { %4944 = vmatpush1.bf16.msra.mxu1 %v4145_v24  ;;  %v9613_v60 = vpop.permute.xlu0 %4502 }
 0x50e   : > { %4945 = vmatprep.subr.bf16.mxu1 %v4206_v8 }
 0x511   : > { %4946 = vmatpush1.bf16.msra.mxu1 %v4205_v7 }
 0x512   : > { %4947 = vmatprep.subr.bf16.mxu1 %v4266_v31 }
 0x515   : > { %4948 = vmatpush1.bf16.msra.mxu1 %v4265_v16 }
 0x516   : > { %v4647_v59 = vpop.f32.mrb[8].mxu0 }
 0x517   : > { %v7172_v49 = vadd.f32 %v4647_v59, %v9610_v23  ;;  %v4649_v14 = vpop.f32.mrb[9].mxu0 }
 0x518   : > { %v7173_v28 = vadd.f32 %v4649_v14, %v9610_v23  ;;  %v4651_v57 = vpop.f32.mrb[10].mxu0  ;;  %4964 = vmatmul.mubr.bf16.vlgmr.msra.gmra.mrb[16].mxu1 %v9202_v50 }
 0x519   : > { %v7174_v63 = vadd.f32 %v4651_v57, %v9613_v60  ;;  %v4653_v2 = vpop.f32.mrb[11].mxu0  ;;  %6803 = vmatprep.mubr.msk.bf16.mxu1 %vm4553_vm6, %v9214_v13  ;;  %v4984_v15 = vmax.f32 %v7172_v49, 0.0  ;;  %v9630_v13 = vpop.permute.xlu0 %4512 }
 0x51a   : > { %v7175_v1 = vadd.f32 %v4653_v2, %v9613_v60  ;;  %v4985_v33 = vmax.f32 %v7173_v28, 0.0 }
 0x51b   : > { %v4992_v52 = vmax.f32 %v7174_v63, 0.0 }
 0x51c   : > { %v4993_v21 = vmax.f32 %v7175_v1, 0.0 }
 0x51d   : > { %v9621_v48 = vpack.c.bf16 %v4992_v52, %v4984_v15 }
 0x51e   : > { %v9625_v29 = vpack.c.bf16 %v4993_v21, %v4985_v33  ;;  %v4657_v39 = vpop.f32.mrb[12].mxu0 }
 0x51f   : > { %v7176_v50 = vadd.f32 %v4657_v39, %v9623_v26  ;;  %v4659_v17 = vpop.f32.mrb[13].mxu0  ;;  %5102 = vrot.lane.b32.xlu1 %v9621_v48, %s7465_s23 }
 0x520   : > { %v7177_v40 = vadd.f32 %v4659_v17, %v9623_v26  ;;  %v4661_v46 = vpop.f32.mrb[14].mxu0  ;;  %5104 = vrot.lane.b32.xlu0 %v9625_v29, %s7465_s23  ;;  %4974 = vmatmul.mubr.bf16.gmra.mrb[20].mxu1 %v9237_v27 }
 0x521   : > { %v7178_v5 = vadd.f32 %v4661_v46, %v9630_v13  ;;  %v4663_v32 = vpop.f32.mrb[15].mxu0  ;;  %v5000_v38 = vmax.f32 %v7176_v50, 0.0 }
 0x522   : > { %v7179_v47 = vadd.f32 %v4663_v32, %v9630_v13  ;;  %v5001_v61 = vmax.f32 %v7177_v40, 0.0 }
 0x523   : > { %v5008_v22 = vmax.f32 %v7178_v5, 0.0 }
 0x524   : > { %v5009_v42 = vmax.f32 %v7179_v47, 0.0 }
 0x525   : > { %v9638_v11 = vpack.c.bf16 %v5008_v22, %v5000_v38 }
 0x526   : > { %v9640_v56 = vpack.c.bf16 %v5009_v42, %v5001_v61 }
 0x527   : > { %5120 = vrot.lane.b32.xlu0 %v9638_v11, %s7465_s23 }
 0x561   : > { %v4753_v3 = vpop.f32.mrb[8].mxu1 }
 0x562   : > { %v7180_v36 = vadd.f32 %v4753_v3, %v9610_v23  ;;  %v4755_v27 = vpop.f32.mrb[9].mxu1 }
 0x563   : > { %v7181_v55 = vadd.f32 %v4755_v27, %v9610_v23  ;;  %v4757_v51 = vpop.f32.mrb[10].mxu1 }
 0x564   : > { %v7182_v41 = vadd.f32 %v4757_v51, %v9613_v60  ;;  %v4759_v45 = vpop.f32.mrb[11].mxu1  ;;  %v4986_v19 = vmax.f32 %v7180_v36, 0.0 }
 0x565   : > { %v7183_v53 = vadd.f32 %v4759_v45, %v9613_v60  ;;  %v4987_v18 = vmax.f32 %v7181_v55, 0.0 }
 0x566   : > { %v4994_v4 = vmax.f32 %v7182_v41, 0.0 }
 0x567   : > { %v4995_v44 = vmax.f32 %v7183_v53, 0.0 }
 0x568   : > { %v9648_v54 = vpack.c.bf16 %v4994_v4, %v4986_v19 }
 0x569   : > { %v9650_v25 = vpack.c.bf16 %v4995_v44, %v4987_v18  ;;  %v4763_v58 = vpop.f32.mrb[12].mxu1 }
 0x56a   : > { %v7184_v62 = vadd.f32 %v4763_v58, %v9623_v26  ;;  %v4765_v37 = vpop.f32.mrb[13].mxu1  ;;  %5106 = vrot.lane.b32.xlu1 %v9648_v54, %s7465_s23 }
 0x56b   : > { %v7185_v35 = vadd.f32 %v4765_v37, %v9623_v26  ;;  %v4767_v43 = vpop.f32.mrb[14].mxu1 }
 0x56c   : > { %v7186_v6 = vadd.f32 %v4767_v43, %v9630_v13  ;;  %v4769_v12 = vpop.f32.mrb[15].mxu1  ;;  %v5002_v10 = vmax.f32 %v7184_v62, 0.0 }
 0x56d   : > { %v7187_v9 = vadd.f32 %v4769_v12, %v9630_v13  ;;  %v5003_v20 = vmax.f32 %v7185_v35, 0.0 }
 0x56e   : > { %v5010_v30 = vmax.f32 %v7186_v6, 0.0  ;;  %5122 = vrot.lane.b32.xlu1 %v9640_v56, %s7465_s23 }
 0x56f   : > { %v5011_v0 = vmax.f32 %v7187_v9, 0.0 }
 0x570   : > { %v9660_v8 = vpack.c.bf16 %v5010_v30, %v5002_v10 }
 0x571   : > { %v9662_v24 = vpack.c.bf16 %v5011_v0, %v5003_v20 }
 0x572   : > { %5108 = vrot.lane.b32.xlu1 %v9650_v25, %s7465_s23  ;;  %5124 = vrot.lane.b32.xlu0 %v9660_v8, %s7465_s23 }
 0x576   : > { %5126 = vrot.lane.b32.xlu0 %v9662_v24, %s7465_s23 }
 0x591   : > { %v5103_v52 = vpop.permute.xlu1 %5102 }
 0x592   : > { %v5105_v39 = vpop.permute.xlu0 %5104 }
 0x593   : > { %v5138_v47 = vsel %vm566_vm1, %v5103_v52, %v5105_v39 }
 0x594   : > { %v9688_v36 = vmax.bf16 %v5138_v47, %v9621_v48 }
 0x599   : > { %v5121_v53 = vpop.permute.xlu0 %5120 }
 0x5c3   : > { %v4859_v34 = vpop.f32.mrb[16].mxu0 }
 0x5c4   : > { %v7188_v31 = vadd.f32 %v4859_v34, %v9610_v23  ;;  %v4861_v7 = vpop.f32.mrb[17].mxu0 }
 0x5c5   : > { %v7189_v16 = vadd.f32 %v4861_v7, %v9610_v23  ;;  %v4863_v59 = vpop.f32.mrb[18].mxu0 }
 0x5c6   : > { %v7190_v49 = vadd.f32 %v4863_v59, %v9613_v60  ;;  %v4865_v14 = vpop.f32.mrb[19].mxu0  ;;  %v4988_v57 = vmax.f32 %v7188_v31, 0.0 }
 0x5c7   : > { %v7191_v28 = vadd.f32 %v4865_v14, %v9613_v60  ;;  %v4989_v2 = vmax.f32 %v7189_v16, 0.0 }
 0x5c8   : > { %v4996_v63 = vmax.f32 %v7190_v49, 0.0 }
 0x5c9   : > { %v4997_v1 = vmax.f32 %v7191_v28, 0.0 }
 0x5ca   : > { %v9674_v15 = vpack.c.bf16 %v4996_v63, %v4988_v57 }
 0x5cb   : > { %v9676_v33 = vpack.c.bf16 %v4997_v1, %v4989_v2  ;;  %v4869_v21 = vpop.f32.mrb[20].mxu0 }
 0x5cc   : > { %v7192_v50 = vadd.f32 %v4869_v21, %v9623_v26  ;;  %v4871_v17 = vpop.f32.mrb[21].mxu0  ;;  %5110 = vrot.lane.b32.xlu1 %v9674_v15, %s7465_s23 }
 0x5cd   : > { %v7193_v40 = vadd.f32 %v4871_v17, %v9623_v26  ;;  %v4873_v46 = vpop.f32.mrb[22].mxu0 }
 0x5ce   : > { %v7194_v5 = vadd.f32 %v4873_v46, %v9630_v13  ;;  %v4875_v32 = vpop.f32.mrb[23].mxu0  ;;  %v5004_v22 = vmax.f32 %v7192_v50, 0.0 }
 0x5cf   : > { %v7195_v38 = vadd.f32 %v4875_v32, %v9630_v13  ;;  %v5005_v42 = vmax.f32 %v7193_v40, 0.0 }
 0x5d0   : > { %v5012_v61 = vmax.f32 %v7194_v5, 0.0  ;;  %5112 = vrot.lane.b32.xlu1 %v9676_v33, %s7465_s23 }
 0x5d1   : > { %v5013_v3 = vmax.f32 %v7195_v38, 0.0 }
 0x5d2   : > { %v9690_v27 = vpack.c.bf16 %v5012_v61, %v5004_v22 }
 0x5d3   : > { %v9692_v55 = vpack.c.bf16 %v5013_v3, %v5005_v42 }
 0x5d4   : > { %5128 = vrot.lane.b32.xlu0 %v9690_v27, %s7465_s23  ;;  %5224 = vrot.lane.b32.xlu1 %v9688_v36, %s10302_s28 }
 0x5dc   : > { %v5107_v51 = vpop.permute.xlu1 %5106 }
 0x5dd   : > { %v5139_v41 = vsel %vm566_vm1, %v5105_v39, %v5107_v51 }
 0x5de   : > { %v9700_v45 = vmax.bf16 %v5139_v41, %v9625_v29 }
 0x5e0   : > { %v5123_v19 = vpop.permute.xlu1 %5122  ;;  %5226 = vrot.lane.b32.xlu0 %v9700_v45, %s10302_s28 }
 0x5e1   : > { %v5146_v48 = vsel %vm566_vm1, %v5121_v53, %v5123_v19 }
 0x5e2   : > { %v5178_v4 = vmax.bf16 %v5146_v48, %v9638_v11 }
 0x5e4   : > { %v5125_v18 = vpop.permute.xlu0 %5124  ;;  %5242 = vrot.lane.b32.xlu0 %v5178_v4, %s10302_s28  ;;  %v5109_v6 = vpop.permute.xlu1 %5108 }
 0x5e5   : > { %v5147_v44 = vsel %vm566_vm1, %v5123_v19, %v5125_v18 }
 0x5e6   : > { %v9709_v58 = vmax.bf16 %v5147_v44, %v9640_v56  ;;  %v5140_v56 = vsel %vm566_vm1, %v5107_v51, %v5109_v6 }
 0x5e8   : > { %5130 = vrot.lane.b32.xlu0 %v9692_v55, %s7465_s23  ;;  %5244 = vrot.lane.b32.xlu1 %v9709_v58, %s10302_s28  ;;  %v5127_v7 = vpop.permute.xlu0 %5126 }
 0x5e9   : > { %v5148_v14 = vsel %vm566_vm1, %v5125_v18, %v5127_v7 }
 0x5eb   : > { %v4965_v29 = vpop.f32.mrb[16].mxu1 }
 0x5ec   : > { %v7196_v62 = vadd.f32 %v4965_v29, %v9610_v23  ;;  %v4967_v37 = vpop.f32.mrb[17].mxu1  ;;  %v9721_v23 = vmax.bf16 %v5140_v56, %v9648_v54  ;;  %v7391_v56 = vld [vmem:[%s10272_s5 + $0xc] ss:$28 sps:$4 sm:$0xff]  }
 0x5ed   : > { %v4969_v35 = vpop.f32.mrb[18].mxu1  ;;  %6132 = vmatprep.mubr.bf16.mxu1 %v7391_v56  ;;  %v7410_v56 = vld [vmem:[%s10272_s5 + $0x14] ss:$28 sps:$4 sm:$0xff]  }
 0x5ee   : > { %v7197_v11 = vadd.f32 %v4969_v35, %v9613_v60  ;;  %v4971_v43 = vpop.f32.mrb[19].mxu1  ;;  %v4990_v12 = vmax.f32 %v7196_v62, 0.0 }
 0x5f0   : > { %v4998_v9 = vmax.f32 %v7197_v11, 0.0 }
 0x5f2   : > { %v5022_v10 = vpack.c.bf16 %v4998_v9, %v4990_v12 }
 0x5f3   : > { %v4975_v30 = vpop.f32.mrb[20].mxu1 }
 0x5f4   : > { %v7198_v20 = vadd.f32 %v4975_v30, %v9623_v26  ;;  %v4977_v0 = vpop.f32.mrb[21].mxu1  ;;  %5114 = vrot.lane.b32.xlu1 %v5022_v10, %s7465_s23  ;;  %v9729_v26 = vmax.bf16 %v5148_v14, %v9660_v8 }
 0x5f5   : > { %v4979_v34 = vpop.f32.mrb[22].mxu1 }
 0x5f6   : > { %v7199_v31 = vadd.f32 %v4979_v34, %v9630_v13  ;;  %v4981_v60 = vpop.f32.mrb[23].mxu1  ;;  %v5006_v16 = vmax.f32 %v7198_v20, 0.0 }
 0x5f8   : > { %v5014_v59 = vmax.f32 %v7199_v31, 0.0  ;;  %5228 = vrot.lane.b32.xlu1 %v9721_v23, %s10302_s28 }
 0x5fa   : > { %v5030_v49 = vpack.c.bf16 %v5014_v59, %v5006_v16 }
 0x5fc   : > { %5132 = vrot.lane.b32.xlu0 %v5030_v49, %s7465_s23  ;;  %s7489_s23 = smov 112  }
 0x600   : > { %5246 = vrot.lane.b32.xlu0 %v9729_v26, %s10302_s28 }
 0x63e   : > { %v5111_v54 = vpop.permute.xlu1 %5110 }
 0x63f   : > { %v5141_v13 = vsel %vm566_vm1, %v5109_v6, %v5111_v54 }
 0x640   : > { %v9735_v28 = vmax.bf16 %v5141_v13, %v9650_v25 }
 0x642   : > { %5230 = vrot.lane.b32.xlu1 %v9735_v28, %s10302_s28  ;;  %v5113_v57 = vpop.permute.xlu1 %5112 }
 0x643   : > { %v5142_v8 = vsel %vm566_vm1, %v5111_v54, %v5113_v57 }
 0x644   : > { %v9747_v52 = vmax.bf16 %v5142_v8, %v9674_v15 }
 0x646   : > { %v5129_v63 = vpop.permute.xlu0 %5128  ;;  %v5225_v25 = vpop.permute.xlu1 %5224 }
 0x647   : > { %v5149_v2 = vsel %vm566_vm1, %v5127_v7, %v5129_v63 }
 0x648   : > { %v9741_v1 = vmax.bf16 %v5149_v2, %v9662_v24 }
 0x64a   : > { %5248 = vrot.lane.b32.xlu0 %v9741_v1, %s10302_s28 }
 0x64e   : > { %5232 = vrot.lane.b32.xlu0 %v9747_v52, %s10302_s28 }
 0x652   : > { %v5227_v21 = vpop.permute.xlu0 %5226 }
 0x653   : > { %v5260_v39 = vsel %vm1170_vm10, %v5225_v25, %v5227_v21 }
 0x654   : > { %v5292_v50 = vmax.bf16 %v5260_v39, %v9688_v36 }
 0x656   : > { %5327 = vst.msk [vmem:[#allocation8] sm:$0xff] %vm5326_vm3, %v5292_v50  ;;  %v5243_v24 = vpop.permute.xlu0 %5242  ;;  %5369 = vrot.lane.b32.xlu1 %v5292_v50, %s7489_s23 }
 0x65a   : > { %v5131_v17 = vpop.permute.xlu0 %5130  ;;  %v5245_v40 = vpop.permute.xlu1 %5244 }
 0x65b   : > { %v5150_v15 = vsel %vm566_vm1, %v5129_v63, %v5131_v17  ;;  %v5268_v46 = vsel %vm1170_vm10, %v5243_v24, %v5245_v40 }
 0x65c   : > { %v9758_v5 = vmax.bf16 %v5150_v15, %v9690_v27  ;;  %v5300_v32 = vmax.bf16 %v5268_v46, %v5178_v4 }
 0x65d   : > { %v5645_v12 = vld [vmem:[#allocation8] sm:$0xff] }
 0x65e   : > { %5328 = vst.msk [vmem:[#allocation8 + $0x8] sm:$0xff] %vm5326_vm3, %v5300_v32  ;;  %5250 = vrot.lane.b32.xlu0 %v9758_v5, %s10302_s28  ;;  %5371 = vrot.lane.b32.xlu1 %v5300_v32, %s7489_s23 }
 0x662   : > { %5333 = vrot.lane.b32.xlu1 %v5292_v50, %s7468_s26 }
 0x665   : > { %v5646_v0 = vld [vmem:[#allocation8 + $0x8] sm:$0xff] }
 0x666   : > { %5335 = vrot.lane.b32.xlu1 %v5300_v32, %s7468_s26  ;;  %v5115_v47 = vpop.permute.xlu1 %5114 }
 0x667   : > { %v5143_v38 = vsel %vm566_vm1, %v5113_v57, %v5115_v47  ;;  %v7382_v47 = vld [vmem:[%s10272_s5 + $0x3c] ss:$28 sps:$4 sm:$0xff]  }
 0x668   : > { %v5175_v22 = vmax.bf16 %v5143_v38, %v9676_v33 }
 0x66a   : > { %5234 = vrot.lane.b32.xlu0 %v5175_v22, %s10302_s28  ;;  %v5229_v61 = vpop.permute.xlu1 %5228  ;;  %v5593_v22 = vld [vmem:[%s10272_s5 + $0x38] sm:$0xff] }
 0x66b   : > { %v5261_v42 = vsel %vm1170_vm10, %v5227_v21, %v5229_v61 }
 0x66c   : > { %v5293_v3 = vmax.bf16 %v5261_v42, %v9700_v45  ;;  %v7381_v45 = vld [vmem:[%s10272_s5 + $0x4] ss:$28 sps:$4 sm:$0xff]  }
 0x66d   : > { %6036 = vmatprep.mubr.bf16.mxu0 %v7381_v45  ;;  %v7394_v45 = vld [vmem:[%s10272_s5 + $0xe0] ss:$28 sps:$4 sm:$0xff]  }
 0x66e   : > { %5379 = vst.msk [vmem:[#allocation8 + $0x50] sm:$0xff] %vm5326_vm3, %v5293_v3  ;;  %v5133_v36 = vpop.permute.xlu0 %5132  ;;  %5385 = vrot.lane.b32.xlu1 %v5293_v3, %s7468_s26 }
 0x66f   : > { %v5151_v27 = vsel %vm566_vm1, %v5131_v17, %v5133_v36  ;;  %v7384_v36 = vld [vmem:[%s10272_s5 + $0x74] ss:$28 sps:$4 sm:$0xff]   ;;  %vm10348_vm1 = vcmask 261120  }
 0x670   : > { %v5183_v51 = vmax.bf16 %v5151_v27, %v9692_v55  ;;  %v5601_v27 = vld [vmem:[%s10272_s5 + $0x70] sm:$0xff]  ;;  %vm10350_vm12 = vmmov %vm10348_vm1 }
 0x671   : > { %vm10351_vm7 = vmmov %vm10348_vm1 }
 0x672   : > { %v5247_v41 = vpop.permute.xlu0 %5246  ;;  %5252 = vrot.lane.b32.xlu0 %v5183_v51, %s10302_s28  ;;  %v5605_v51 = vld [vmem:[%s10272_s5 + $0x8c] sm:$0xff]  ;;  %vm10352_vm8 = vmmov %vm10348_vm1 }
 0x673   : > { %v5269_v33 = vsel %vm1170_vm10, %v5245_v40, %v5247_v41  ;;  %vm10353_vm11 = vmmov %vm10348_vm1 }
 0x674   : > { %v5301_v53 = vmax.bf16 %v5269_v33, %v9709_v58  ;;  %v7386_v33 = vld [vmem:[%s10272_s5 + $0xac] ss:$28 sps:$4 sm:$0xff]   ;;  %vm10354_vm6 = vmmov %vm10348_vm1 }
 0x675   : > { %v5655_v34 = vld [vmem:[#allocation8 + $0x50] sm:$0xff]  ;;  %vm10355_vm5 = vmmov %vm10348_vm1 }
 0x676   : > { %5380 = vst.msk [vmem:[#allocation8 + $0x58] sm:$0xff] %vm5326_vm3, %v5301_v53  ;;  %5345 = vrot.lane.b32.xlu0 %v5292_v50, %s7486_s21  ;;  %5387 = vrot.lane.b32.xlu1 %v5301_v53, %s7468_s26 }
 0x67a   : > { %5347 = vrot.lane.b32.xlu0 %v5300_v32, %s7486_s21  ;;  %5397 = vrot.lane.b32.xlu1 %v5293_v3, %s7486_s21 }
 0x67d   : > { %v5656_v16 = vld [vmem:[#allocation8 + $0x58] sm:$0xff] }
 0x67e   : > { %5357 = vrot.lane.b32.xlu0 %v5292_v50, %s7490_s25  ;;  %5399 = vrot.lane.b32.xlu1 %v5301_v53, %s7486_s21 }
 0x682   : > { %5359 = vrot.lane.b32.xlu0 %v5300_v32, %s7490_s25 }
 0x686   : > { %5409 = vrot.lane.b32.xlu0 %v5293_v3, %s7490_s25 }
 0x68a   : > { %5411 = vrot.lane.b32.xlu0 %v5301_v53, %s7490_s25 }
 0x68e   : > { %5421 = vrot.lane.b32.xlu0 %v5293_v3, %s7489_s23 }
 0x692   : > { %5423 = vrot.lane.b32.xlu0 %v5301_v53, %s7489_s23  ;;  %v7388_v53 = vld [vmem:[%s10272_s5 + $0xa8] ss:$28 sps:$4 sm:$0xff]  }
 0x6b4   : > { %v5231_v55 = vpop.permute.xlu1 %5230 }
 0x6b5   : > { %v5262_v19 = vsel %vm1170_vm10, %v5229_v61, %v5231_v55  ;;  %v5597_v61 = vld [vmem:[%s10272_s5 + $0x54] sm:$0xff] }
 0x6b6   : > { %v5294_v48 = vmax.bf16 %v5262_v19, %v9721_v23  ;;  %v6811_v3 = vcombine.low %v5593_v22, %v5597_v61  ;;  %v7395_v19 = vld [vmem:[%s10272_s5 + $0x11c] ss:$28 sps:$4 sm:$0xff]  }
 0x6b8   : > { %5431 = vst.msk [vmem:[#allocation8 + $0xa0] sm:$0xff] %vm5326_vm3, %v5294_v48  ;;  %5449 = vrot.lane.b32.xlu1 %v5294_v48, %s7486_s21 }
 0x6bc   : > { %v5249_v4 = vpop.permute.xlu0 %5248 }
 0x6bd   : > { %v5270_v18 = vsel %vm1170_vm10, %v5247_v41, %v5249_v4  ;;  %v6818_v41 = vcombine.low %v5601_v27, %v5605_v51  ;;  %v5602_v51 = vld [vmem:[%s10272_s5 + $0x78] sm:$0xff] }
 0x6be   : > { %v5302_v44 = vmax.bf16 %v5270_v18, %v9729_v26 }
 0x6c0   : > { %5432 = vst.msk [vmem:[#allocation8 + $0xa8] sm:$0xff] %vm5326_vm3, %v5302_v44  ;;  %v5233_v58 = vpop.permute.xlu0 %5232  ;;  %5475 = vrot.lane.b32.xlu0 %v5302_v44, %s7489_s23  ;;  %5451 = vrot.lane.b32.xlu1 %v5302_v44, %s7486_s21 }
 0x6c1   : > { %v5263_v29 = vsel %vm1170_vm10, %v5231_v55, %v5233_v58  ;;  %v7392_v55 = vld [vmem:[%s10272_s5 + $0xe4] ss:$28 sps:$4 sm:$0xff]  }
 0x6c2   : > { %v5295_v62 = vmax.bf16 %v5263_v29, %v9735_v28  ;;  %v5637_v29 = vld [vmem:[%s10272_s5 + $0x16c] sm:$0xff] }
 0x6c4   : > { %5483 = vst.msk [vmem:[#allocation8 + $0xf0] sm:$0xff] %vm5326_vm3, %v5295_v62  ;;  %5439 = vrot.lane.b32.xlu0 %v5302_v44, %s7468_s26  ;;  %5461 = vrot.lane.b32.xlu1 %v5294_v48, %s7490_s25 }
 0x6c8   : > { %5463 = vrot.lane.b32.xlu1 %v5302_v44, %s7490_s25  ;;  %v5370_v37 = vpop.permute.xlu1 %5369  ;;  %v7399_v44 = vld [vmem:[%s10272_s5 + $0x154] ss:$28 sps:$4 sm:$0xff]  }
 0x6c9   : > { %5375 = vst.msk [vmem:[#allocation8 + $0x40] sm:$0xff] %vm5326_vm3, %v5370_v37  ;;  %v5641_v37 = vld [vmem:[%s10272_s5 + $0x188] sm:$0xff] }
 0x6cc   : > { %5473 = vrot.lane.b32.xlu1 %v5294_v48, %s7489_s23 }
 0x6d0   : > { %v5251_v35 = vpop.permute.xlu0 %5250  ;;  %5437 = vrot.lane.b32.xlu1 %v5294_v48, %s7468_s26  ;;  %v5372_v11 = vpop.permute.xlu1 %5371  ;;  %v5653_v43 = vld [vmem:[#allocation8 + $0x40] sm:$0xff]  ;;  %v5625_v48 = vld [vmem:[%s10272_s5 + $0x118] sm:$0xff] }
 0x6d1   : > { %v5271_v6 = vsel %vm1170_vm10, %v5249_v4, %v5251_v35  ;;  %5376 = vst.msk [vmem:[#allocation8 + $0x48] sm:$0xff] %vm5326_vm3, %v5372_v11  ;;  %6885 = vmatprep.subr.bf16.mxu0 %v5653_v43  ;;  %v5629_v4 = vld [vmem:[%s10272_s5 + $0x134] sm:$0xff]  ;;  %v6854_v11 = vcombine.high %v5641_v37, %v5641_v37 }
 0x6d2   : > { %v5303_v9 = vmax.bf16 %v5271_v6, %v9741_v1  ;;  %6886 = vmatpush3.bf16.msra.mxu0 %v5645_v12  ;;  %v6839_v18 = vcombine.low %v5625_v48, %v5629_v4  ;;  %v7404_v48 = vld [vmem:[%s10272_s5 + $0xb4] ss:$28 sps:$4 sm:$0xff]  }
 0x6d4   : > { %5484 = vst.msk [vmem:[#allocation8 + $0xf8] sm:$0xff] %vm5326_vm3, %v5303_v9  ;;  %5491 = vrot.lane.b32.xlu0 %v5303_v9, %s7468_s26  ;;  %5489 = vrot.lane.b32.xlu1 %v5295_v62, %s7468_s26  ;;  %v5334_v10 = vpop.permute.xlu1 %5333 }
 0x6d5   : > { %5339 = vst.msk [vmem:[#allocation8 + $0x10] sm:$0xff] %vm5326_vm3, %v5334_v10  ;;  %v6853_v10 = vcombine.low %v5641_v37, %v5641_v37 }
 0x6d8   : > { %5501 = vrot.lane.b32.xlu0 %v5295_v62, %s7486_s21  ;;  %v5336_v30 = vpop.permute.xlu1 %5335  ;;  %v5654_v20 = vld [vmem:[#allocation8 + $0x48] sm:$0xff] }
 0x6d9   : > { %5340 = vst.msk [vmem:[#allocation8 + $0x18] sm:$0xff] %vm5326_vm3, %v5336_v30  ;;  %6887 = vmatprep.subr.bf16.mxu0 %v5654_v20 }
 0x6da   : > { %6888 = vmatpush3.bf16.msra.mxu0 %v5646_v0 }
 0x6db   : > { %6889 = vmatprep.subr.bf16.mxu0 %v5655_v34 }
 0x6dc   : > { %v5235_v23 = vpop.permute.xlu0 %5234  ;;  %5503 = vrot.lane.b32.xlu0 %v5303_v9, %s7486_s21  ;;  %v5647_v31 = vld [vmem:[#allocation8 + $0x10] sm:$0xff] }
 0x6dd   : > { %v5264_v60 = vsel %vm1170_vm10, %v5233_v58, %v5235_v23  ;;  %v5633_v58 = vld [vmem:[%s10272_s5 + $0x150] sm:$0xff] }
 0x6de   : > { %v5296_v7 = vmax.bf16 %v5264_v60, %v9747_v52  ;;  %6890 = vmatpush3.bf16.msra.mxu0 %v5647_v31 }
 0x6df   : > { %6891 = vmatprep.subr.bf16.mxu0 %v5656_v16 }
 0x6e0   : > { %5535 = vst.msk [vmem:[#allocation8 + $0x140] sm:$0xff] %vm5326_vm3, %v5296_v7  ;;  %5513 = vrot.lane.b32.xlu0 %v5295_v62, %s7490_s25  ;;  %5541 = vrot.lane.b32.xlu1 %v5296_v7, %s7468_s26  ;;  %v5386_v59 = vpop.permute.xlu1 %5385  ;;  %v5648_v49 = vld [vmem:[#allocation8 + $0x18] sm:$0xff] }
 0x6e1   : > { %5391 = vst.msk [vmem:[#allocation8 + $0x60] sm:$0xff] %vm5326_vm3, %v5386_v59 }
 0x6e2   : > { %6892 = vmatpush3.bf16.msra.mxu0 %v5648_v49 }
 0x6e4   : > { %v5253_v14 = vpop.permute.xlu0 %5252  ;;  %5515 = vrot.lane.b32.xlu0 %v5303_v9, %s7490_s25 }
 0x6e5   : > { %v5272_v26 = vsel %vm1170_vm10, %v5251_v35, %v5253_v14  ;;  %v6846_v35 = vcombine.low %v5633_v58, %v5637_v29  ;;  %v5610_v58 = vld [vmem:[%s10272_s5 + $0xb0] sm:$0xff]  ;;  %vm10349_vm10 = vmmov %vm10348_vm1 }
 0x6e6   : > { %v5304_v54 = vmax.bf16 %v5272_v26, %v9758_v5  ;;  %v7379_v5 = vld [vmem:[%s10272_s5] ss:$28 sps:$4 sm:$0xff]   ;;  %v5614_v29 = vld [vmem:[%s10272_s5 + $0xcc] sm:$0xff] }
 0x6e7   : > { %v5685_v32 = vld [vmem:[#allocation8 + $0x140] sm:$0xff] }
 0x6e8   : > { %5536 = vst.msk [vmem:[#allocation8 + $0x148] sm:$0xff] %vm5326_vm3, %v5304_v54  ;;  %v5346_v13 = vpop.permute.xlu0 %5345  ;;  %5525 = vrot.lane.b32.xlu0 %v5295_v62, %s7489_s23  ;;  %5543 = vrot.lane.b32.xlu1 %v5304_v54, %s7468_s26  ;;  %v5388_v28 = vpop.permute.xlu1 %5387  ;;  %v5657_v57 = vld [vmem:[#allocation8 + $0x60] sm:$0xff] }
 0x6e9   : > { %5351 = vst.msk [vmem:[#allocation8 + $0x20] sm:$0xff] %vm5326_vm3, %v5346_v13  ;;  %5392 = vst.msk [vmem:[#allocation8 + $0x68] sm:$0xff] %vm5326_vm3, %v5388_v28  ;;  %6893 = vmatprep.subr.bf16.mxu0 %v5657_v57  ;;  %v5665_v13 = vld [vmem:[#allocation8 + $0xa0] sm:$0xff] }
 0x6ec   : > { %v5348_v63 = vpop.permute.xlu0 %5347  ;;  %5527 = vrot.lane.b32.xlu0 %v5303_v9, %s7489_s23  ;;  %5553 = vrot.lane.b32.xlu1 %v5296_v7, %s7486_s21  ;;  %v5398_v2 = vpop.permute.xlu1 %5397 }
 0x6ed   : > { %5352 = vst.msk [vmem:[#allocation8 + $0x28] sm:$0xff] %vm5326_vm3, %v5348_v63  ;;  %5403 = vst.msk [vmem:[#allocation8 + $0x70] sm:$0xff] %vm5326_vm3, %v5398_v2  ;;  %v5666_v63 = vld [vmem:[#allocation8 + $0xa8] sm:$0xff]  ;;  %v5675_v2 = vld [vmem:[#allocation8 + $0xf0] sm:$0xff] }
 0x6f0   : > { %v5358_v1 = vpop.permute.xlu0 %5357  ;;  %5579 = vrot.lane.b32.xlu0 %v5304_v54, %s7489_s23  ;;  %5555 = vrot.lane.b32.xlu1 %v5304_v54, %s7486_s21  ;;  %v5400_v8 = vpop.permute.xlu1 %5399  ;;  %v5649_v52 = vld [vmem:[#allocation8 + $0x20] sm:$0xff]  ;;  %v5658_v25 = vld [vmem:[#allocation8 + $0x68] sm:$0xff] }
 0x6f1   : > { %5363 = vst.msk [vmem:[#allocation8 + $0x30] sm:$0xff] %vm5326_vm3, %v5358_v1  ;;  %5404 = vst.msk [vmem:[#allocation8 + $0x78] sm:$0xff] %vm5326_vm3, %v5400_v8  ;;  %6894 = vmatpush3.bf16.msra.mxu0 %v5649_v52 }
 0x6f2   : > { %6895 = vmatprep.subr.bf16.mxu0 %v5658_v25  ;;  %v5686_v25 = vld [vmem:[#allocation8 + $0x148] sm:$0xff] }
 0x6f4   : > { %v5360_v21 = vpop.permute.xlu0 %5359  ;;  %5565 = vrot.lane.b32.xlu1 %v5296_v7, %s7490_s25  ;;  %v5650_v39 = vld [vmem:[#allocation8 + $0x28] sm:$0xff]  ;;  %v5659_v50 = vld [vmem:[#allocation8 + $0x70] sm:$0xff] }
 0x6f5   : > { %5364 = vst.msk [vmem:[#allocation8 + $0x38] sm:$0xff] %vm5326_vm3, %v5360_v21  ;;  %6896 = vmatpush3.bf16.msra.mxu0 %v5650_v39  ;;  %v5676_v21 = vld [vmem:[#allocation8 + $0xf8] sm:$0xff] }
 0x6f6   : > { %6897 = vmatprep.subr.bf16.mxu0 %v5659_v50 }
 0x6f8   : > { %v5410_v24 = vpop.permute.xlu0 %5409  ;;  %5567 = vrot.lane.b32.xlu1 %v5304_v54, %s7490_s25  ;;  %v5651_v17 = vld [vmem:[#allocation8 + $0x30] sm:$0xff]  ;;  %v5660_v40 = vld [vmem:[#allocation8 + $0x78] sm:$0xff]  ;;  %s6884_s25 = sshll.u32 %s10357_s18, 4 }
 0x6f9   : > { %5415 = vst.msk [vmem:[#allocation8 + $0x80] sm:$0xff] %vm5326_vm3, %v5410_v24  ;;  %6898 = vmatpush3.bf16.msra.mxu0 %v5651_v17  ;;  %s386_s26 = scalar_lea.vmem %s10278_s11, %s6884_s25 }
 0x6fa   : > { %6899 = vmatprep.subr.bf16.mxu0 %v5660_v40  ;;  %v7389_v40 = vld [vmem:[%s10272_s5 + $0x8] ss:$28 sps:$4 sm:$0xff]  }
 0x6fc   : > { %v5412_v15 = vpop.permute.xlu0 %5411  ;;  %5577 = vrot.lane.b32.xlu1 %v5296_v7, %s7489_s23  ;;  %v5652_v46 = vld [vmem:[#allocation8 + $0x38] sm:$0xff] }
 0x6fd   : > { %5416 = vst.msk [vmem:[#allocation8 + $0x88] sm:$0xff] %vm5326_vm3, %v5412_v15  ;;  %6900 = vmatpush3.bf16.msra.mxu0 %v5652_v46  ;;  %v7397_v15 = vld [vmem:[%s10272_s5 + $0x44] ss:$28 sps:$4 sm:$0xff]  }
 0x6fe   : > { %7013 = vmatprep.subr.bf16.mxu0 %v5685_v32  ;;  %v5598_v32 = vld [vmem:[%s10272_s5 + $0x5c] sm:$0xff] }
 0x700   : > { %v5422_v38 = vpop.permute.xlu0 %5421  ;;  %6037 = vmatmul.mubr.bf16.vlgmr.msra.gmra.mrb[24].mxu0 %v7379_v5  ;;  %v5661_v9 = vld [vmem:[#allocation8 + $0x80] sm:$0xff] }
 0x701   : > { %5427 = vst.msk [vmem:[#allocation8 + $0x90] sm:$0xff] %vm5326_vm3, %v5422_v38  ;;  %6044 = vmatprep.mubr.bf16.mxu0 %v7382_v47  ;;  %v5594_v5 = vld [vmem:[%s10272_s5 + $0x40] sm:$0xff] }
 0x704   : > { %v5424_v42 = vpop.permute.xlu0 %5423  ;;  %v5662_v23 = vld [vmem:[#allocation8 + $0x88] sm:$0xff] }
 0x705   : > { %5428 = vst.msk [vmem:[#allocation8 + $0x98] sm:$0xff] %vm5326_vm3, %v5424_v42  ;;  %v6813_v42 = vcombine.low %v5594_v5, %v5598_v32  ;;  %v7445_v5 = vld [vmem:[%s10272_s5 + $0x168] ss:$28 sps:$4 sm:$0xff]  }
 0x708   : > { %6045 = vmatmul.mubr.bf16.gmra.mrb[28].mxu0 %v6811_v3  ;;  %v5663_v7 = vld [vmem:[#allocation8 + $0x90] sm:$0xff]  ;;  %v7401_v3 = vld [vmem:[%s10272_s5 + $0x7c] ss:$28 sps:$4 sm:$0xff]  }
 0x709   : > { %6052 = vmatprep.mubr.bf16.mxu0 %v7384_v36 }
 0x70c   : > { %v5664_v49 = vld [vmem:[#allocation8 + $0x98] sm:$0xff] }
 0x710   : > { %6053 = vmatmul.mubr.bf16.gmra.mrb[32].mxu0 %v6818_v41  ;;  %v5606_v41 = vld [vmem:[%s10272_s5 + $0x94] sm:$0xff] }
 0x711   : > { %6060 = vmatprep.mubr.bf16.mxu0 %v7386_v33 }
 0x718   : > { %6061 = vmatmul.mubr.bf16.gmra.mrb[36].mxu0 %v7388_v53 }
 0x719   : > { %6068 = vmatprep.mubr.bf16.mxu0 %v7392_v55 }
 0x720   : > { %6069 = vmatmul.mubr.bf16.gmra.mrb[40].mxu0 %v7394_v45 }
 0x721   : > { %6076 = vmatprep.mubr.bf16.mxu0 %v7395_v19  ;;  %v6820_v19 = vcombine.low %v5602_v51, %v5606_v41 }
 0x728   : > { %6077 = vmatmul.mubr.bf16.gmra.mrb[44].mxu0 %v6839_v18 }
 0x729   : > { %6084 = vmatprep.mubr.bf16.mxu0 %v7399_v44 }
 0x72a   : > { %v5450_v62 = vpop.permute.xlu1 %5449 }
 0x72b   : > { %5455 = vst.msk [vmem:[#allocation8 + $0xc0] sm:$0xff] %vm5326_vm3, %v5450_v62 }
 0x730   : > { %6085 = vmatmul.mubr.bf16.gmra.mrb[48].mxu0 %v6846_v35 }
 0x731   : > { %6092 = vmatprep.mubr.bf16.mxu0 %v6854_v11  ;;  %v6827_v11 = vcombine.low %v5610_v58, %v5614_v29 }
 0x732   : > { %v5476_v43 = vpop.permute.xlu0 %5475  ;;  %v5452_v6 = vpop.permute.xlu1 %5451  ;;  %v5669_v12 = vld [vmem:[#allocation8 + $0xc0] sm:$0xff] }
 0x733   : > { %5480 = vst.msk [vmem:[#allocation8 + $0xe8] sm:$0xff] %vm5326_vm3, %v5476_v43  ;;  %5456 = vst.msk [vmem:[#allocation8 + $0xc8] sm:$0xff] %vm5326_vm3, %v5452_v6  ;;  %6949 = vmatprep.subr.bf16.mxu1 %v5669_v12  ;;  %v7406_v43 = vld [vmem:[%s10272_s5 + $0xec] ss:$28 sps:$4 sm:$0xff]  }
 0x734   : > { %6950 = vmatpush3.bf16.msra.mxu1 %v5661_v9 }
 0x736   : > { %v5440_v30 = vpop.permute.xlu0 %5439  ;;  %v5462_v20 = vpop.permute.xlu1 %5461 }
 0x737   : > { %5444 = vst.msk [vmem:[#allocation8 + $0xb8] sm:$0xff] %vm5326_vm3, %v5440_v30  ;;  %5467 = vst.msk [vmem:[#allocation8 + $0xd0] sm:$0xff] %vm5326_vm3, %v5462_v20  ;;  %v7408_v30 = vld [vmem:[%s10272_s5 + $0x10] ss:$28 sps:$4 sm:$0xff]   ;;  %v7411_v20 = vld [vmem:[%s10272_s5 + $0xe8] ss:$28 sps:$4 sm:$0xff]  }
 0x738   : > { %6093 = vmatmul.mubr.bf16.gmra.mrb[52].mxu0 %v6853_v10 }
 0x739   : > { %6228 = vmatprep.mubr.bf16.mxu0 %v7410_v56 }
 0x73a   : > { %v5464_v0 = vpop.permute.xlu1 %5463  ;;  %v5670_v34 = vld [vmem:[#allocation8 + $0xc8] sm:$0xff] }
 0x73b   : > { %5468 = vst.msk [vmem:[#allocation8 + $0xd8] sm:$0xff] %vm5326_vm3, %v5464_v0  ;;  %6951 = vmatprep.subr.bf16.mxu1 %v5670_v34  ;;  %v5674_v28 = vld [vmem:[#allocation8 + $0xe8] sm:$0xff]  ;;  %v7412_v0 = vld [vmem:[%s10272_s5 + $0x124] ss:$28 sps:$4 sm:$0xff]  }
 0x73c   : > { %6952 = vmatpush3.bf16.msra.mxu1 %v5662_v23  ;;  %v7414_v34 = vld [vmem:[%s10272_s5 + $0x4c] ss:$28 sps:$4 sm:$0xff]  }
 0x73e   : > { %v5474_v31 = vpop.permute.xlu1 %5473  ;;  %v5671_v60 = vld [vmem:[#allocation8 + $0xd0] sm:$0xff]  ;;  %v5668_v17 = vld [vmem:[#allocation8 + $0xb8] sm:$0xff] }
 0x73f   : > { %5479 = vst.msk [vmem:[#allocation8 + $0xe0] sm:$0xff] %vm5326_vm3, %v5474_v31  ;;  %6953 = vmatprep.subr.bf16.mxu1 %v5671_v60  ;;  %v7416_v60 = vld [vmem:[%s10272_s5 + $0x120] ss:$28 sps:$4 sm:$0xff]  }
 0x740   : > { %6954 = vmatpush3.bf16.msra.mxu1 %v5663_v7  ;;  %v7417_v7 = vld [vmem:[%s10272_s5 + $0x48] ss:$28 sps:$4 sm:$0xff]  }
 0x742   : > { %v5438_v16 = vpop.permute.xlu1 %5437  ;;  %v5672_v59 = vld [vmem:[#allocation8 + $0xd8] sm:$0xff] }
 0x743   : > { %5443 = vst.msk [vmem:[#allocation8 + $0xb0] sm:$0xff] %vm5326_vm3, %v5438_v16  ;;  %6955 = vmatprep.subr.bf16.mxu1 %v5672_v59  ;;  %v7418_v16 = vld [vmem:[%s10272_s5 + $0x15c] ss:$28 sps:$4 sm:$0xff]   ;;  %v7420_v59 = vld [vmem:[%s10272_s5 + $0x84] ss:$28 sps:$4 sm:$0xff]  }
 0x744   : > { %6956 = vmatpush3.bf16.msra.mxu1 %v5664_v49  ;;  %v5642_v49 = vld [vmem:[%s10272_s5 + $0x190] sm:$0xff] }
 0x746   : > { %v5492_v14 = vpop.permute.xlu0 %5491  ;;  %v5490_v26 = vpop.permute.xlu1 %5489  ;;  %v5673_v54 = vld [vmem:[#allocation8 + $0xe0] sm:$0xff] }
 0x747   : > { %5496 = vst.msk [vmem:[#allocation8 + $0x108] sm:$0xff] %vm5326_vm3, %v5492_v14  ;;  %5495 = vst.msk [vmem:[#allocation8 + $0x100] sm:$0xff] %vm5326_vm3, %v5490_v26  ;;  %6957 = vmatprep.subr.bf16.mxu1 %v5673_v54  ;;  %v7422_v14 = vld [vmem:[%s10272_s5 + $0x158] ss:$28 sps:$4 sm:$0xff]   ;;  %v7423_v26 = vld [vmem:[%s10272_s5 + $0x80] ss:$28 sps:$4 sm:$0xff]   ;;  %v6856_v54 = vcombine.high %v5642_v49, %v5642_v49 }
 0x748   : > { %6958 = vmatpush3.bf16.msra.mxu1 %v5665_v13  ;;  %v7425_v13 = vld [vmem:[%s10272_s5 + $0xbc] ss:$28 sps:$4 sm:$0xff]  }
 0x749   : > { %6959 = vmatprep.subr.bf16.mxu1 %v5674_v28  ;;  %v6855_v28 = vcombine.low %v5642_v49, %v5642_v49 }
 0x74a   : > { %v5502_v57 = vpop.permute.xlu0 %5501  ;;  %v5667_v52 = vld [vmem:[#allocation8 + $0xb0] sm:$0xff] }
 0x74b   : > { %5507 = vst.msk [vmem:[#allocation8 + $0x110] sm:$0xff] %vm5326_vm3, %v5502_v57  ;;  %v7428_v57 = vld [vmem:[%s10272_s5 + $0xb8] ss:$28 sps:$4 sm:$0xff]  }
 0x74c   : > { %6960 = vmatpush3.bf16.msra.mxu1 %v5666_v63  ;;  %v7429_v63 = vld [vmem:[%s10272_s5 + $0xf4] ss:$28 sps:$4 sm:$0xff]  }
 0x74d   : > { %6961 = vmatprep.subr.bf16.mxu1 %v5675_v2  ;;  %v7431_v2 = vld [vmem:[%s10272_s5 + $0x18] ss:$28 sps:$4 sm:$0xff]  }
 0x74e   : > { %v5504_v1 = vpop.permute.xlu0 %5503  ;;  %v5677_v8 = vld [vmem:[#allocation8 + $0x100] sm:$0xff]  ;;  %v5678_v24 = vld [vmem:[#allocation8 + $0x108] sm:$0xff] }
 0x74f   : > { %5508 = vst.msk [vmem:[#allocation8 + $0x118] sm:$0xff] %vm5326_vm3, %v5504_v1  ;;  %7014 = vmatpush3.bf16.msra.mxu0 %v5677_v8  ;;  %v7432_v1 = vld [vmem:[%s10272_s5 + $0xf0] ss:$28 sps:$4 sm:$0xff]  }
 0x750   : > { %6962 = vmatpush3.bf16.msra.mxu1 %v5667_v52  ;;  %7015 = vmatprep.subr.bf16.mxu0 %v5686_v25  ;;  %v7433_v8 = vld [vmem:[%s10272_s5 + $0x50] ss:$28 sps:$4 sm:$0xff]   ;;  %v7436_v25 = vld [vmem:[%s10272_s5 + $0x88] ss:$28 sps:$4 sm:$0xff]  }
 0x751   : > { %6963 = vmatprep.subr.bf16.mxu1 %v5676_v21  ;;  %v7434_v52 = vld [vmem:[%s10272_s5 + $0x12c] ss:$28 sps:$4 sm:$0xff]  }
 0x752   : > { %v5514_v39 = vpop.permute.xlu0 %5513  ;;  %v5542_v50 = vpop.permute.xlu1 %5541  ;;  %v5679_v61 = vld [vmem:[#allocation8 + $0x110] sm:$0xff]  ;;  %v7437_v21 = vld [vmem:[%s10272_s5 + $0x128] ss:$28 sps:$4 sm:$0xff]  }
 0x753   : > { %5519 = vst.msk [vmem:[#allocation8 + $0x120] sm:$0xff] %vm5326_vm3, %v5514_v39  ;;  %5547 = vst.msk [vmem:[#allocation8 + $0x150] sm:$0xff] %vm5326_vm3, %v5542_v50  ;;  %7016 = vmatpush3.bf16.msra.mxu0 %v5678_v24  ;;  %v7438_v39 = vld [vmem:[%s10272_s5 + $0xc0] ss:$28 sps:$4 sm:$0xff]   ;;  %v7441_v24 = vld [vmem:[%s10272_s5 + $0xf8] ss:$28 sps:$4 sm:$0xff]  }
 0x754   : > { %6964 = vmatpush3.bf16.msra.mxu1 %v5668_v17  ;;  %v7439_v50 = vld [vmem:[%s10272_s5 + $0x164] ss:$28 sps:$4 sm:$0xff]   ;;  %v5643_v17 = vld [vmem:[%s10272_s5 + $0x198] sm:$0xff] }
 0x755   : > { %v6857_v32 = vcombine.low %v5643_v17, %v5643_v17 }
 0x756   : > { %v5516_v46 = vpop.permute.xlu0 %5515  ;;  %v5680_v45 = vld [vmem:[#allocation8 + $0x118] sm:$0xff] }
 0x757   : > { %5520 = vst.msk [vmem:[#allocation8 + $0x128] sm:$0xff] %vm5326_vm3, %v5516_v46  ;;  %6133 = vmatmul.mubr.bf16.vlgmr.msra.gmra.mrb[24].mxu1 %v7389_v40  ;;  %v7442_v40 = vld [vmem:[%s10272_s5 + $0x160] ss:$28 sps:$4 sm:$0xff]   ;;  %v6858_v46 = vcombine.high %v5643_v17, %v5643_v17 }
 0x758   : > { %6140 = vmatprep.mubr.bf16.mxu1 %v7397_v15  ;;  %v7443_v15 = vld [vmem:[%s10272_s5 + $0x130] ss:$28 sps:$4 sm:$0xff]  }
 0x75a   : > { %v5526_v47 = vpop.permute.xlu0 %5525  ;;  %v5544_v38 = vpop.permute.xlu1 %5543  ;;  %v5687_v22 = vld [vmem:[#allocation8 + $0x150] sm:$0xff]  ;;  %v5681_v44 = vld [vmem:[#allocation8 + $0x120] sm:$0xff] }
 0x75b   : > { %5531 = vst.msk [vmem:[#allocation8 + $0x130] sm:$0xff] %vm5326_vm3, %v5526_v47  ;;  %5548 = vst.msk [vmem:[#allocation8 + $0x158] sm:$0xff] %vm5326_vm3, %v5544_v38  ;;  %7017 = vmatprep.subr.bf16.mxu0 %v5687_v22  ;;  %v7447_v47 = vld [vmem:[%s10272_s5 + $0x1a0] ss:$0 sps:$4 sm:$0xff]  }
 0x75c   : > { %7018 = vmatpush3.bf16.msra.mxu0 %v5679_v61 }
 0x75e   : > { %v5528_v36 = vpop.permute.xlu0 %5527  ;;  %v5554_v27 = vpop.permute.xlu1 %5553  ;;  %v5682_v35 = vld [vmem:[#allocation8 + $0x128] sm:$0xff] }
 0x75f   : > { %5532 = vst.msk [vmem:[#allocation8 + $0x138] sm:$0xff] %vm5326_vm3, %v5528_v36  ;;  %5559 = vst.msk [vmem:[#allocation8 + $0x160] sm:$0xff] %vm5326_vm3, %v5554_v27  ;;  %6141 = vmatmul.mubr.bf16.gmra.mrb[28].mxu1 %v6813_v42 }
 0x760   : > { %6148 = vmatprep.mubr.bf16.mxu1 %v7401_v3 }
 0x762   : > { %v5580_v33 = vpop.permute.xlu0 %5579  ;;  %v5556_v53 = vpop.permute.xlu1 %5555  ;;  %v5688_v55 = vld [vmem:[#allocation8 + $0x158] sm:$0xff]  ;;  %v5683_v9 = vld [vmem:[#allocation8 + $0x130] sm:$0xff] }
 0x763   : > { %5584 = vst.msk [vmem:[#allocation8 + $0x188] sm:$0xff] %vm5326_vm3, %v5580_v33  ;;  %5560 = vst.msk [vmem:[#allocation8 + $0x168] sm:$0xff] %vm5326_vm3, %v5556_v53  ;;  %7019 = vmatprep.subr.bf16.mxu0 %v5688_v55 }
 0x764   : > { %7020 = vmatpush3.bf16.msra.mxu0 %v5680_v45 }
 0x766   : > { %v5566_v4 = vpop.permute.xlu1 %5565  ;;  %v5689_v18 = vld [vmem:[#allocation8 + $0x160] sm:$0xff]  ;;  %v5684_v56 = vld [vmem:[#allocation8 + $0x138] sm:$0xff] }
 0x767   : > { %5571 = vst.msk [vmem:[#allocation8 + $0x170] sm:$0xff] %vm5326_vm3, %v5566_v4  ;;  %6149 = vmatmul.mubr.bf16.gmra.mrb[32].mxu1 %v6820_v19  ;;  %7021 = vmatprep.subr.bf16.mxu0 %v5689_v18 }
 0x768   : > { %7022 = vmatpush3.bf16.msra.mxu0 %v5681_v44  ;;  %6156 = vmatprep.mubr.bf16.mxu1 %v7404_v48 }
 0x76a   : > { %v5568_v62 = vpop.permute.xlu1 %5567  ;;  %v5690_v37 = vld [vmem:[#allocation8 + $0x168] sm:$0xff] }
 0x76b   : > { %5572 = vst.msk [vmem:[#allocation8 + $0x178] sm:$0xff] %vm5326_vm3, %v5568_v62  ;;  %7023 = vmatprep.subr.bf16.mxu0 %v5690_v37  ;;  %v5694_v31 = vld [vmem:[#allocation8 + $0x188] sm:$0xff] }
 0x76c   : > { %7024 = vmatpush3.bf16.msra.mxu0 %v5682_v35 }
 0x76e   : > { %v5578_v6 = vpop.permute.xlu1 %5577  ;;  %v5691_v12 = vld [vmem:[#allocation8 + $0x170] sm:$0xff] }
 0x76f   : > { %5583 = vst.msk [vmem:[#allocation8 + $0x180] sm:$0xff] %vm5326_vm3, %v5578_v6  ;;  %6157 = vmatmul.mubr.bf16.gmra.mrb[36].mxu1 %v6827_v11  ;;  %7025 = vmatprep.subr.bf16.mxu0 %v5691_v12 }
 0x770   : > { %7026 = vmatpush3.bf16.msra.mxu0 %v5683_v9  ;;  %6164 = vmatprep.mubr.bf16.mxu1 %v7406_v43 }
 0x772   : > { %v5692_v10 = vld [vmem:[#allocation8 + $0x178] sm:$0xff] }
 0x773   : > { %7027 = vmatprep.subr.bf16.mxu0 %v5692_v10 }
 0x774   : > { %7028 = vmatpush3.bf16.msra.mxu0 %v5684_v56 }
 0x776   : > { %v5693_v23 = vld [vmem:[#allocation8 + $0x180] sm:$0xff] }
 0x777   : > { %6165 = vmatmul.mubr.bf16.gmra.mrb[40].mxu1 %v7411_v20  ;;  %6229 = vmatmul.mubr.bf16.vlgmr.msra.gmra.mrb[56].mxu0 %v7408_v30 }
 0x778   : > { %7108 = vmatprep.subr.bf16.mxu1 %v5693_v23  ;;  %6172 = vmatprep.mubr.bf16.mxu1 %v7412_v0 }
 0x779   : > { %7109 = vmatpush3.bf16.msra.mxu1 %v5693_v23  ;;  %6236 = vmatprep.mubr.bf16.mxu0 %v7414_v34 }
 0x77a   : > { %7110 = vmatprep.subr.bf16.mxu1 %v5694_v31 }
 0x77d   : > { %7111 = vmatpush3.bf16.msra.mxu1 %v5694_v31 }
 0x77f   : > { %6173 = vmatmul.mubr.bf16.gmra.mrb[44].mxu1 %v7416_v60  ;;  %6237 = vmatmul.mubr.bf16.gmra.mrb[60].mxu0 %v7417_v7 }
 0x780   : > { %6180 = vmatprep.mubr.bf16.mxu1 %v7418_v16  ;;  %6244 = vmatprep.mubr.bf16.mxu0 %v7420_v59 }
 0x787   : > { %6181 = vmatmul.mubr.bf16.gmra.mrb[48].mxu1 %v7422_v14  ;;  %6245 = vmatmul.mubr.bf16.gmra.mrb[64].mxu0 %v7423_v26 }
 0x788   : > { %6188 = vmatprep.mubr.bf16.mxu1 %v6856_v54  ;;  %6252 = vmatprep.mubr.bf16.mxu0 %v7425_v13 }
 0x78f   : > { %6189 = vmatmul.mubr.bf16.gmra.mrb[52].mxu1 %v6855_v28  ;;  %6253 = vmatmul.mubr.bf16.gmra.mrb[68].mxu0 %v7428_v57 }
 0x790   : > { %6260 = vmatprep.mubr.bf16.mxu0 %v7429_v63  ;;  %7112 = vmatprep.mubr.msk.bf16.mxu1 %vm10348_vm1, %v7431_v2  ;;  %v7448_v63 = vld [vmem:[%s10274_s7] sm:$0xff]  }
 0x791   : > { %v5695_v2 = vld [vmem:[%s10273_s6] sm:$0xff] }
 0x797   : > { %6261 = vmatmul.mubr.bf16.gmra.mrb[72].mxu0 %v7432_v1  ;;  %7113 = vmatmul.mubr.msk.bf16.vlgmr.msra.gmra.mrb[56].mxu1 %vm10349_vm10, %v7433_v8  ;;  %v5696_v8 = vld [vmem:[%s10273_s6 + $0x8] sm:$0xff] }
 0x798   : > { %6268 = vmatprep.mubr.bf16.mxu0 %v7434_v52  ;;  %7116 = vmatprep.mubr.msk.bf16.mxu1 %vm10350_vm12, %v7436_v25 }
 0x79f   : > { %6269 = vmatmul.mubr.bf16.gmra.mrb[76].mxu0 %v7437_v21  ;;  %7117 = vmatmul.mubr.msk.bf16.gmra.mrb[60].mxu1 %vm10351_vm7, %v7438_v39 }
 0x7a0   : > { %6276 = vmatprep.mubr.bf16.mxu0 %v7439_v50  ;;  %7120 = vmatprep.mubr.msk.bf16.mxu1 %vm10352_vm8, %v7441_v24 }
 0x7a7   : > { %6277 = vmatmul.mubr.bf16.gmra.mrb[80].mxu0 %v7442_v40  ;;  %7121 = vmatmul.mubr.msk.bf16.gmra.mrb[64].mxu1 %vm10353_vm11, %v7443_v15 }
 0x7a8   : > { %6284 = vmatprep.mubr.bf16.mxu0 %v6858_v46  ;;  %7124 = vmatprep.mubr.msk.bf16.mxu1 %vm10354_vm6, %v7445_v5  ;;  %v5697_v46 = vld [vmem:[%s10273_s6 + $0x10] sm:$0xff] }
 0x7af   : > { %6285 = vmatmul.mubr.bf16.gmra.mrb[84].mxu0 %v6857_v32  ;;  %7125 = vmatmul.mubr.msk.bf16.gmra.mrb[68].mxu1 %vm10355_vm5, %v7447_v47  ;;  %v5698_v32 = vld [vmem:[%s10273_s6 + $0x18] sm:$0xff] }
 0x7b0   : > { %7144 = vmatprep.mubr.msk.bf16.mxu1 %vm3144_vm2, %v7448_v63 }
 0x7d3   : > { %v6901_v38 = vpop.f32.mrb[24].mxu0 }
 0x7d4   : > { %v6902_v22 = vpop.f32.mrb[25].mxu0 }
 0x7d5   : > { %v6903_v61 = vadd.f32 %v6902_v22, %v6901_v38  ;;  %v6904_v42 = vpop.f32.mrb[26].mxu0 }
 0x7d6   : > { %v6905_v3 = vpop.f32.mrb[27].mxu0 }
 0x7d7   : > { %v6906_v36 = vadd.f32 %v6905_v3, %v6904_v42  ;;  %v6039_v25 = vadd.f32 %v6903_v61, %v5695_v2 }
 0x7d9   : > { %v6042_v24 = vadd.f32 %v6906_v36, %v5696_v8 }
 0x7db   : > { %v6907_v27 = vpop.f32.mrb[28].mxu0 }
 0x7dc   : > { %v6908_v51 = vpop.f32.mrb[29].mxu0 }
 0x7dd   : > { %v6909_v41 = vadd.f32 %v6908_v51, %v6907_v27  ;;  %v6910_v33 = vpop.f32.mrb[30].mxu0 }
 0x7de   : > { %v6911_v53 = vpop.f32.mrb[31].mxu0 }
 0x7df   : > { %v6912_v55 = vadd.f32 %v6911_v53, %v6910_v33  ;;  %v6047_v38 = vadd.f32 %v6909_v41, %v5697_v46  ;;  %v5699_v33 = vld [vmem:[%s10273_s6 + $0x20] sm:$0xff] }
 0x7e1   : > { %v6050_v3 = vadd.f32 %v6912_v55, %v5698_v32 }
 0x7e3   : > { %v6913_v45 = vpop.f32.mrb[32].mxu0 }
 0x7e4   : > { %v6914_v19 = vpop.f32.mrb[33].mxu0 }
 0x7e5   : > { %v10060_v48 = vadd.f32 %v6914_v19, %v6913_v45  ;;  %v6916_v4 = vpop.f32.mrb[34].mxu0  ;;  %v5700_v45 = vld [vmem:[%s10273_s6 + $0x28] sm:$0xff] }
 0x7e6   : > { %v6917_v18 = vpop.f32.mrb[35].mxu0 }
 0x7e7   : > { %v10062_v44 = vadd.f32 %v6917_v18, %v6916_v4  ;;  %v6055_v41 = vadd.f32 %v10060_v48, %v5699_v33 }
 0x7eb   : > { %v6919_v58 = vpop.f32.mrb[36].mxu0 }
 0x7ec   : > { %v6920_v29 = vpop.f32.mrb[37].mxu0 }
 0x7ed   : > { %v10064_v62 = vadd.f32 %v6920_v29, %v6919_v58  ;;  %v6922_v37 = vpop.f32.mrb[38].mxu0  ;;  %v6058_v58 = vadd.f32 %v10062_v44, %v5700_v45 }
 0x7ee   : > { %v6923_v35 = vpop.f32.mrb[39].mxu0 }
 0x7ef   : > { %v10066_v11 = vadd.f32 %v6923_v35, %v6922_v37 }
 0x7f3   : > { %v6925_v43 = vpop.f32.mrb[40].mxu0 }
 0x7f4   : > { %v6926_v6 = vpop.f32.mrb[41].mxu0 }
 0x7f5   : > { %v10068_v12 = vadd.f32 %v6926_v6, %v6925_v43  ;;  %v6928_v9 = vpop.f32.mrb[42].mxu0  ;;  %v5701_v43 = vld [vmem:[%s10273_s6 + $0x30] sm:$0xff] }
 0x7f6   : > { %v6929_v10 = vpop.f32.mrb[43].mxu0 }
 0x7f7   : > { %v10070_v56 = vadd.f32 %v6929_v10, %v6928_v9  ;;  %v5702_v9 = vld [vmem:[%s10273_s6 + $0x38] sm:$0xff]  ;;  %v6063_v10 = vadd.f32 %v10064_v62, %v5701_v43 }
 0x7fb   : > { %v6931_v30 = vpop.f32.mrb[44].mxu0 }
 0x7fc   : > { %v6932_v20 = vpop.f32.mrb[45].mxu0 }
 0x7fd   : > { %v10072_v0 = vadd.f32 %v6932_v20, %v6931_v30  ;;  %v6934_v34 = vpop.f32.mrb[46].mxu0 }
 0x7fe   : > { %v6935_v23 = vpop.f32.mrb[47].mxu0 }
 0x7ff   : > { %v10074_v31 = vadd.f32 %v6935_v23, %v6934_v34  ;;  %v6066_v34 = vadd.f32 %v10066_v11, %v5702_v9 }
 0x803   : > { %v6937_v60 = vpop.f32.mrb[48].mxu0 }
 0x804   : > { %v6938_v7 = vpop.f32.mrb[49].mxu0 }
 0x805   : > { %v10076_v16 = vadd.f32 %v6938_v7, %v6937_v60  ;;  %v6940_v59 = vpop.f32.mrb[50].mxu0 }
 0x806   : > { %v6941_v49 = vpop.f32.mrb[51].mxu0 }
 0x807   : > { %v10078_v14 = vadd.f32 %v6941_v49, %v6940_v59  ;;  %v5703_v59 = vld [vmem:[%s10273_s6 + $0x40] sm:$0xff]  ;;  %v5704_v49 = vld [vmem:[%s10273_s6 + $0x48] sm:$0xff] }
 0x808   : > { %v6074_v8 = vadd.f32 %v10070_v56, %v5704_v49  ;;  %v5706_v56 = vld [vmem:[%s10273_s6 + $0x58] sm:$0xff] }
 0x80b   : > { %v6943_v26 = vpop.f32.mrb[52].mxu0 }
 0x80c   : > { %v6944_v54 = vpop.f32.mrb[53].mxu0 }
 0x80d   : > { %v10080_v13 = vadd.f32 %v6944_v54, %v6943_v26  ;;  %v6946_v28 = vpop.f32.mrb[54].mxu0 }
 0x80e   : > { %v6947_v57 = vpop.f32.mrb[55].mxu0 }
 0x80f   : > { %v6071_v57 = vadd.f32 %v10068_v12, %v5703_v59  ;;  %v5705_v12 = vld [vmem:[%s10273_s6 + $0x50] sm:$0xff] }
 0x82a   : > { %v6965_v1 = vpop.f32.mrb[24].mxu1 }
 0x82b   : > { %v6966_v52 = vpop.f32.mrb[25].mxu1 }
 0x82c   : > { %v6967_v21 = vadd.f32 %v6966_v52, %v6965_v1  ;;  %v6968_v39 = vpop.f32.mrb[26].mxu1 }
 0x82d   : > { %v6969_v50 = vpop.f32.mrb[27].mxu1 }
 0x82e   : > { %v6135_v17 = vadd.f32 %v6967_v21, %v6039_v25  ;;  %v6970_v40 = vadd.f32 %v6969_v50, %v6968_v39 }
 0x830   : > { %v6138_v15 = vadd.f32 %v6970_v40, %v6042_v24 }
 0x832   : > { %v6971_v5 = vpop.f32.mrb[28].mxu1 }
 0x833   : > { %v6972_v47 = vpop.f32.mrb[29].mxu1 }
 0x834   : > { %v6973_v22 = vadd.f32 %v6972_v47, %v6971_v5  ;;  %v6974_v61 = vpop.f32.mrb[30].mxu1 }
 0x835   : > { %v6975_v42 = vpop.f32.mrb[31].mxu1 }
 0x836   : > { %v10098_v27 = vadd.f32 %v6973_v22, %v6047_v38  ;;  %v6976_v36 = vadd.f32 %v6975_v42, %v6974_v61  ;;  %v6079_v22 = vadd.f32 %v10072_v0, %v5705_v12  ;;  %v5707_v0 = vld [vmem:[%s10273_s6 + $0x60] sm:$0xff] }
 0x838   : > { %v10100_v51 = vadd.f32 %v6976_v36, %v6050_v3 }
 0x83a   : > { %v6977_v53 = vpop.f32.mrb[32].mxu1 }
 0x83b   : > { %v6978_v19 = vpop.f32.mrb[33].mxu1 }
 0x83c   : > { %v6979_v4 = vadd.f32 %v6978_v19, %v6977_v53  ;;  %v6980_v18 = vpop.f32.mrb[34].mxu1 }
 0x83d   : > { %v6981_v55 = vpop.f32.mrb[35].mxu1 }
 0x83e   : > { %v10110_v29 = vadd.f32 %v6979_v4, %v6055_v41  ;;  %v6982_v37 = vadd.f32 %v6981_v55, %v6980_v18 }
 0x840   : > { %v10112_v35 = vadd.f32 %v6982_v37, %v6058_v58 }
 0x842   : > { %v6983_v6 = vpop.f32.mrb[36].mxu1 }
 0x843   : > { %v6984_v48 = vpop.f32.mrb[37].mxu1 }
 0x844   : > { %v6985_v30 = vadd.f32 %v6984_v48, %v6983_v6  ;;  %v6986_v20 = vpop.f32.mrb[38].mxu1  ;;  %v6087_v6 = vadd.f32 %v10076_v16, %v5707_v0  ;;  %v5709_v16 = vld [vmem:[%s10273_s6 + $0x70] sm:$0xff] }
 0x845   : > { %v6987_v44 = vpop.f32.mrb[39].mxu1 }
 0x846   : > { %v10122_v23 = vadd.f32 %v6985_v30, %v6063_v10  ;;  %v6988_v60 = vadd.f32 %v6987_v44, %v6986_v20 }
 0x848   : > { %v10124_v7 = vadd.f32 %v6988_v60, %v6066_v34 }
 0x84a   : > { %v7029_v26 = vpop.f32.mrb[56].mxu0  ;;  %v6989_v62 = vpop.f32.mrb[40].mxu1 }
 0x84b   : > { %v7030_v54 = vpop.f32.mrb[57].mxu0  ;;  %v6990_v28 = vpop.f32.mrb[41].mxu1 }
 0x84c   : > { %v7031_v11 = vadd.f32 %v7030_v54, %v7029_v26  ;;  %v6991_v63 = vadd.f32 %v6990_v28, %v6989_v62  ;;  %v7032_v2 = vpop.f32.mrb[58].mxu0  ;;  %v6992_v1 = vpop.f32.mrb[42].mxu1 }
 0x84d   : > { %v7033_v52 = vpop.f32.mrb[59].mxu0  ;;  %v6993_v25 = vpop.f32.mrb[43].mxu1 }
 0x84e   : > { %v10134_v21 = vadd.f32 %v6991_v63, %v6071_v57  ;;  %v7034_v39 = vadd.f32 %v7033_v52, %v7032_v2  ;;  %v6994_v50 = vadd.f32 %v6993_v25, %v6992_v1  ;;  %v10136_v24 = vadd.f32 %v7031_v11, %v6135_v17 }
 0x84f   : > { %v6095_v57 = vadd.f32 %v10080_v13, %v5709_v16 }
 0x850   : > { %v10138_v40 = vadd.f32 %v6994_v50, %v6074_v8  ;;  %v10140_v46 = vadd.f32 %v7034_v39, %v6138_v15  ;;  %v6082_v15 = vadd.f32 %v10074_v31, %v5706_v56  ;;  %v5708_v31 = vld [vmem:[%s10273_s6 + $0x68] sm:$0xff] }
 0x852   : > { %v7035_v5 = vpop.f32.mrb[60].mxu0  ;;  %v6995_v32 = vpop.f32.mrb[44].mxu1 }
 0x853   : > { %v7036_v47 = vpop.f32.mrb[61].mxu0  ;;  %v6996_v38 = vpop.f32.mrb[45].mxu1 }
 0x854   : > { %v7037_v17 = vadd.f32 %v7036_v47, %v7035_v5  ;;  %v6997_v61 = vadd.f32 %v6996_v38, %v6995_v32  ;;  %v7038_v42 = vpop.f32.mrb[62].mxu0  ;;  %v6998_v3 = vpop.f32.mrb[46].mxu1 }
 0x855   : > { %v7039_v36 = vpop.f32.mrb[63].mxu0  ;;  %v6999_v33 = vpop.f32.mrb[47].mxu1 }
 0x856   : > { %v10150_v53 = vadd.f32 %v6997_v61, %v6079_v22  ;;  %v7040_v45 = vadd.f32 %v7039_v36, %v7038_v42  ;;  %v7000_v19 = vadd.f32 %v6999_v33, %v6998_v3  ;;  %v6239_v41 = vadd.f32 %v7037_v17, %v10098_v27 }
 0x858   : > { %v10153_v4 = vadd.f32 %v7000_v19, %v6082_v15  ;;  %v6242_v18 = vadd.f32 %v7040_v45, %v10100_v51  ;;  %v6090_v51 = vadd.f32 %v10078_v14, %v5708_v31 }
 0x85a   : > { %v7041_v55 = vpop.f32.mrb[64].mxu0  ;;  %v7001_v58 = vpop.f32.mrb[48].mxu1 }
 0x85b   : > { %v7042_v37 = vpop.f32.mrb[65].mxu0  ;;  %v7002_v43 = vpop.f32.mrb[49].mxu1 }
 0x85c   : > { %v7043_v9 = vadd.f32 %v7042_v37, %v7041_v55  ;;  %v7003_v27 = vadd.f32 %v7002_v43, %v7001_v58  ;;  %v7044_v48 = vpop.f32.mrb[66].mxu0  ;;  %v7004_v10 = vpop.f32.mrb[50].mxu1 }
 0x85d   : > { %v7045_v30 = vpop.f32.mrb[67].mxu0  ;;  %v7005_v20 = vpop.f32.mrb[51].mxu1 }
 0x85e   : > { %v10164_v44 = vadd.f32 %v7003_v27, %v6087_v6  ;;  %v7046_v34 = vadd.f32 %v7045_v30, %v7044_v48  ;;  %v7006_v60 = vadd.f32 %v7005_v20, %v7004_v10  ;;  %v6247_v59 = vadd.f32 %v7043_v9, %v10110_v29 }
 0x860   : > { %v10167_v49 = vadd.f32 %v7006_v60, %v6090_v51  ;;  %v6250_v26 = vadd.f32 %v7046_v34, %v10112_v35 }
 0x862   : > { %v7047_v62 = vpop.f32.mrb[68].mxu0  ;;  %v7007_v54 = vpop.f32.mrb[52].mxu1 }
 0x863   : > { %v7048_v28 = vpop.f32.mrb[69].mxu0  ;;  %v7008_v14 = vpop.f32.mrb[53].mxu1 }
 0x864   : > { %v7049_v11 = vadd.f32 %v7048_v28, %v7047_v62  ;;  %v7050_v63 = vpop.f32.mrb[70].mxu0  ;;  %v7009_v2 = vadd.f32 %v7008_v14, %v7007_v54  ;;  %v7010_v1 = vpop.f32.mrb[54].mxu1 }
 0x865   : > { %v7051_v8 = vpop.f32.mrb[71].mxu0  ;;  %v7011_v29 = vpop.f32.mrb[55].mxu1 }
 0x866   : > { %v7052_v52 = vadd.f32 %v7051_v8, %v7050_v63  ;;  %v10174_v25 = vadd.f32 %v7009_v2, %v6095_v57  ;;  %v6255_v35 = vadd.f32 %v7049_v11, %v10122_v23 }
 0x868   : > { %v6258_v39 = vadd.f32 %v7052_v52, %v10124_v7 }
 0x86a   : > { %v7053_v50 = vpop.f32.mrb[72].mxu0  ;;  %v7114_v12 = vpop.f32.mrb[56].mxu1 }
 0x86b   : > { %v6335_v56 = vadd.f32 %v7114_v12, %v6239_v41  ;;  %v7054_v5 = vpop.f32.mrb[73].mxu0  ;;  %v6326_v32 = vpop.f32.mrb[57].mxu1 }
 0x86c   : > { %v7055_v47 = vadd.f32 %v7054_v5, %v7053_v50  ;;  %v6327_v13 = vadd.f32 %v6326_v32, %v10136_v24  ;;  %v7056_v38 = vpop.f32.mrb[74].mxu0  ;;  %v7115_v22 = vpop.f32.mrb[58].mxu1 }
 0x86d   : > { %v6338_v17 = vadd.f32 %v7115_v22, %v6242_v18  ;;  %v7057_v61 = vpop.f32.mrb[75].mxu0  ;;  %v6329_v42 = vpop.f32.mrb[59].mxu1  ;;  %v6390_v36 = vmax.f32 %v6335_v56, 0.0 }
 0x86e   : > { %v7058_v3 = vadd.f32 %v7057_v61, %v7056_v38  ;;  %v6330_v15 = vadd.f32 %v6329_v42, %v10140_v46  ;;  %v6263_v23 = vadd.f32 %v7055_v47, %v10134_v21  ;;  %v6388_v33 = vmax.f32 %v6327_v13, 0.0 }
 0x86f   : > { %v6391_v7 = vmax.f32 %v6338_v17, 0.0 }
 0x870   : > { %v6389_v45 = vmax.f32 %v6330_v15, 0.0  ;;  %v6266_v19 = vadd.f32 %v7058_v3, %v10138_v40 }
 0x871   : > { %v6404_v41 = vpack.c.bf16 %v6391_v7, %v6390_v36 }
 0x872   : > { %v6403_v0 = vpack.c.bf16 %v6389_v45, %v6388_v33  ;;  %v7059_v31 = vpop.f32.mrb[76].mxu0  ;;  %v7118_v24 = vpop.f32.mrb[60].mxu1 }
 0x873   : > { %v6351_v55 = vadd.f32 %v7118_v24, %v6255_v35  ;;  %v7060_v58 = vpop.f32.mrb[77].mxu0  ;;  %v6342_v18 = vpop.f32.mrb[61].mxu1  ;;  %v7451_v24 = vld [vmem:[%s10274_s7 + $0x18] sm:$0xff]  }
 0x874   : > { %v7061_v37 = vadd.f32 %v7060_v58, %v7059_v31  ;;  %v6343_v43 = vadd.f32 %v6342_v18, %v6247_v59  ;;  %v7062_v6 = vpop.f32.mrb[78].mxu0  ;;  %v7119_v9 = vpop.f32.mrb[62].mxu1  ;;  %7128 = vmatprep.subr.bf16.mxu1 %v6403_v0  ;;  %v7449_v31 = vld [vmem:[%s10274_s7 + $0x8] sm:$0xff]   ;;  %v7491_v18 = vmov 0.0  }
 0x875   : > { %v6354_v46 = vadd.f32 %v7119_v9, %v6258_v39  ;;  %v7063_v21 = vpop.f32.mrb[79].mxu0  ;;  %v6345_v27 = vpop.f32.mrb[63].mxu1  ;;  %7129 = vmatpush3.bf16.msra.mxu1 %v6403_v0  ;;  %v6394_v51 = vmax.f32 %v6351_v55, 0.0  ;;  %v7452_v55 = vld [vmem:[%s10274_s7 + $0x20] sm:$0xff]   ;;  %v6425_v9 = vld [vmem:[%s10275_s8 + $0x18] sm:$0xff] }
 0x876   : > { %v7064_v48 = vadd.f32 %v7063_v21, %v7062_v6  ;;  %v6346_v10 = vadd.f32 %v6345_v27, %v6250_v26  ;;  %7130 = vmatprep.subr.bf16.mxu1 %v6404_v41  ;;  %v6271_v40 = vadd.f32 %v7061_v37, %v10150_v53  ;;  %v6392_v20 = vmax.f32 %v6343_v43, 0.0  ;;  %v7453_v58 = vld [vmem:[%s10274_s7 + $0x28] ss:$0 sps:$4 sm:$0x33]   ;;  %v6424_v37 = vld [vmem:[%s10275_s8 + $0x10] sm:$0xff]  ;;  %v6422_v43 = vld [vmem:[%s10275_s8] sm:$0xff] }
 0x877   : > { %v6395_v30 = vmax.f32 %v6354_v46, 0.0  ;;  %v6423_v27 = vld [vmem:[%s10275_s8 + $0x8] sm:$0xff] }
 0x878   : > { %v6393_v34 = vmax.f32 %v6346_v10, 0.0  ;;  %v6274_v60 = vadd.f32 %v7064_v48, %v10153_v4 }
 0x879   : > { %v6406_v16 = vpack.c.bf16 %v6395_v30, %v6394_v51  ;;  %7131 = vmatpush3.bf16.msra.mxu1 %v6404_v41 }
 0x87a   : > { %v6405_v59 = vpack.c.bf16 %v6393_v34, %v6392_v20  ;;  %v7065_v62 = vpop.f32.mrb[80].mxu0  ;;  %v7122_v54 = vpop.f32.mrb[64].mxu1 }
 0x87b   : > { %v6367_v28 = vadd.f32 %v7122_v54, %v6271_v40  ;;  %v7066_v14 = vpop.f32.mrb[81].mxu0  ;;  %v6358_v57 = vpop.f32.mrb[65].mxu1  ;;  %v6426_v54 = vld [vmem:[%s10275_s8 + $0x20] sm:$0xff] }
 0x87c   : > { %v7067_v11 = vadd.f32 %v7066_v14, %v7065_v62  ;;  %v6359_v63 = vadd.f32 %v6358_v57, %v6263_v23  ;;  %v7068_v26 = vpop.f32.mrb[82].mxu0  ;;  %v7123_v2 = vpop.f32.mrb[66].mxu1  ;;  %7132 = vmatprep.subr.bf16.mxu1 %v6405_v59  ;;  %v6429_v57 = vld [vmem:[%s10275_s8 + $0x38] sm:$0xff] }
 0x87d   : > { %v6370_v53 = vadd.f32 %v7123_v2, %v6274_v60  ;;  %v7069_v1 = vpop.f32.mrb[83].mxu0  ;;  %v6361_v8 = vpop.f32.mrb[67].mxu1  ;;  %7133 = vmatpush3.bf16.msra.mxu1 %v6405_v59  ;;  %v6398_v35 = vmax.f32 %v6367_v28, 0.0  ;;  %v6428_v59 = vld [vmem:[%s10275_s8 + $0x30] sm:$0xff] }
 0x87e   : > { %v7070_v29 = vadd.f32 %v7069_v1, %v7068_v26  ;;  %v6362_v52 = vadd.f32 %v6361_v8, %v6266_v19  ;;  %7134 = vmatprep.subr.bf16.mxu1 %v6406_v16  ;;  %v6279_v4 = vadd.f32 %v7067_v11, %v10164_v44  ;;  %v6396_v50 = vmax.f32 %v6359_v63, 0.0  ;;  %v6427_v26 = vld [vmem:[%s10275_s8 + $0x28] sm:$0xff] }
 0x87f   : > { %v6399_v39 = vmax.f32 %v6370_v53, 0.0 }
 0x880   : > { %v6397_v12 = vmax.f32 %v6362_v52, 0.0  ;;  %v6282_v56 = vadd.f32 %v7070_v29, %v10167_v49 }
 0x881   : > { %v6408_v5 = vpack.c.bf16 %v6399_v39, %v6398_v35  ;;  %7135 = vmatpush3.bf16.msra.mxu1 %v6406_v16 }
 0x882   : > { %v6407_v32 = vpack.c.bf16 %v6397_v12, %v6396_v50  ;;  %v7071_v47 = vpop.f32.mrb[84].mxu0  ;;  %v7126_v13 = vpop.f32.mrb[68].mxu1  ;;  %v6432_v50 = vld [vmem:[%s10275_s8 + $0x50] sm:$0xf] }
 0x883   : > { %v7072_v38 = vpop.f32.mrb[85].mxu0  ;;  %v6374_v22 = vpop.f32.mrb[69].mxu1 }
 0x884   : > { %v7073_v17 = vadd.f32 %v7072_v38, %v7071_v47  ;;  %v6375_v61 = vadd.f32 %v6374_v22, %v6279_v4  ;;  %v7127_v42 = vpop.f32.mrb[70].mxu1  ;;  %7136 = vmatprep.subr.bf16.mxu1 %v6407_v32  ;;  %v7074_v3 = vpop.f32.mrb[86].mxu0  ;;  %v6431_v38 = vld [vmem:[%s10275_s8 + $0x48] sm:$0xff] }
 0x885   : > { %v6377_v15 = vpop.f32.mrb[71].mxu1  ;;  %7137 = vmatpush3.bf16.msra.mxu1 %v6407_v32  ;;  %v7075_v44 = vpop.f32.mrb[87].mxu0 }
 0x886   : > { %v6287_v23 = vadd.f32 %v7073_v17, %v10174_v25  ;;  %v6378_v36 = vadd.f32 %v6377_v15, %v6282_v56  ;;  %7138 = vmatprep.subr.bf16.mxu1 %v6408_v5  ;;  %v6400_v7 = vmax.f32 %v6375_v61, 0.0  ;;  %v7450_v25 = vld [vmem:[%s10274_s7 + $0x10] sm:$0xff]   ;;  %v6430_v56 = vld [vmem:[%s10275_s8 + $0x40] sm:$0xff] }
 0x888   : > { %v6383_v49 = vadd.f32 %v7126_v13, %v6287_v23  ;;  %v6401_v33 = vmax.f32 %v6378_v36, 0.0 }
 0x889   : > { %7139 = vmatpush3.bf16.msra.mxu1 %v6408_v5 }
 0x88a   : > { %v6402_v45 = vmax.f32 %v6383_v49, 0.0  ;;  %v6409_v19 = vpack.c.bf16 %v6401_v33, %v6400_v7  ;;  %v7454_v7 = vld [vmem:[%s10276_s9] sm:$0x1f]  }
 0x88b   : > { %v6583_v33 = vld [vmem:[%s10277_s10] sm:$0xff] }
 0x88c   : > { %v6410_v41 = vpack.c.bf16 %v6402_v45, %v6402_v45  ;;  %7140 = vmatprep.subr.bf16.mxu1 %v6409_v19 }
 0x88d   : > { %7141 = vmatpush3.bf16.msra.mxu1 %v6409_v19  ;;  %v6584_v19 = vld [vmem:[%s10277_s10 + $0x8] sm:$0x3] }
 0x88e   : > { %7232 = vmatprep.subr.msk.bf16.mxu1 %vm489_vm0, %v6410_v41  ;;  %v6482_v0 = vsel %vm489_vm0, %v6410_v41, 0  ;;  %vm7492_vm0 = vmmov 0  }
 0x891   : > { %7143 = vmatpush3.bf16.msra.mxu1 %v6482_v0 }
 0x892   : > { %7156 = vmatprep.subr.bf16.mxu1 %v7491_v18 }
 0x894   : > { %7145 = vmatmul.mubr.msk.bf16.vlgmr.msra.gmra.mrb[72].mxu1 %vm3144_vm2, %v7449_v31 }
 0x895   : > { %7148 = vmatprep.mubr.msk.bf16.mxu1 %vm3144_vm2, %v7450_v25 }
 0x89c   : > { %7149 = vmatmul.mubr.msk.bf16.gmra.mrb[76].mxu1 %vm3144_vm2, %v7451_v24 }
 0x89d   : > { %7152 = vmatprep.mubr.msk.bf16.mxu1 %vm3144_vm2, %v7452_v55 }
 0x8a4   : > { %7153 = vmatmul.mubr.msk.bf16.gmra.mrb[80].mxu1 %vm3144_vm2, %v7453_v58  ;;  %vm6590_vm2 = vcmask 687104  }
 0x8a5   : > { %7168 = vmatprep.mubr.msk.bf16.mxu1 %vm7492_vm0, %v7491_v18 }
 0x967   : > { %v7146_v6 = vpop.f32.mrb[72].mxu1 }
 0x968   : > { %v6527_v46 = vadd.f32 %v7146_v6, %v6424_v37  ;;  %v6518_v21 = vpop.f32.mrb[73].mxu1 }
 0x969   : > { %v6519_v48 = vadd.f32 %v6518_v21, %v6422_v43  ;;  %v7147_v10 = vpop.f32.mrb[74].mxu1 }
 0x96a   : > { %v6530_v40 = vadd.f32 %v7147_v10, %v6425_v9  ;;  %v6521_v51 = vpop.f32.mrb[75].mxu1  ;;  %v6566_v20 = vmax.f32 %v6527_v46, 0.0 }
 0x96b   : > { %v6522_v30 = vadd.f32 %v6521_v51, %v6423_v27  ;;  %v6564_v60 = vmax.f32 %v6519_v48, 0.0 }
 0x96c   : > { %v6567_v34 = vmax.f32 %v6530_v40, 0.0 }
 0x96d   : > { %v6565_v16 = vmax.f32 %v6522_v30, 0.0 }
 0x96e   : > { %v6576_v62 = vpack.c.bf16 %v6567_v34, %v6566_v20 }
 0x96f   : > { %v6575_v28 = vpack.c.bf16 %v6565_v16, %v6564_v60  ;;  %v7150_v14 = vpop.f32.mrb[76].mxu1 }
 0x970   : > { %v6543_v11 = vadd.f32 %v7150_v14, %v6428_v59  ;;  %v6534_v63 = vpop.f32.mrb[77].mxu1 }
 0x971   : > { %v6535_v2 = vadd.f32 %v6534_v63, %v6426_v54  ;;  %v7151_v53 = vpop.f32.mrb[78].mxu1  ;;  %7157 = vmatpush3.bf16.msra.mxu1 %v6575_v28 }
 0x972   : > { %v6546_v1 = vadd.f32 %v7151_v53, %v6429_v57  ;;  %v6537_v8 = vpop.f32.mrb[79].mxu1  ;;  %7158 = vmatprep.subr.bf16.mxu1 %v7491_v18  ;;  %v6570_v52 = vmax.f32 %v6543_v11, 0.0 }
 0x973   : > { %v6538_v29 = vadd.f32 %v6537_v8, %v6427_v26  ;;  %v6568_v35 = vmax.f32 %v6535_v2, 0.0 }
 0x974   : > { %v6571_v4 = vmax.f32 %v6546_v1, 0.0 }
 0x975   : > { %v6569_v39 = vmax.f32 %v6538_v29, 0.0  ;;  %7159 = vmatpush3.bf16.msra.mxu1 %v6576_v62 }
 0x976   : > { %v6578_v12 = vpack.c.bf16 %v6571_v4, %v6570_v52  ;;  %7160 = vmatprep.subr.bf16.mxu1 %v7491_v18 }
 0x977   : > { %v6577_v5 = vpack.c.bf16 %v6569_v39, %v6568_v35  ;;  %v7154_v32 = vpop.f32.mrb[80].mxu1 }
 0x978   : > { %v6559_v47 = vadd.f32 %v7154_v32, %v6432_v50  ;;  %v6550_v13 = vpop.f32.mrb[81].mxu1 }
 0x979   : > { %v6551_v22 = vadd.f32 %v6550_v13, %v6430_v56  ;;  %7161 = vmatpush3.bf16.msra.mxu1 %v6577_v5  ;;  %v7155_v17 = vpop.f32.mrb[82].mxu1 }
 0x97a   : > { %v6553_v61 = vpop.f32.mrb[83].mxu1  ;;  %7162 = vmatprep.subr.bf16.mxu1 %v7491_v18  ;;  %v6574_v3 = vmax.f32 %v6559_v47, 0.0 }
 0x97b   : > { %v6554_v42 = vadd.f32 %v6553_v61, %v6431_v38  ;;  %v6572_v15 = vmax.f32 %v6551_v22, 0.0 }
 0x97c   : > { %v6580_v36 = vpack.c.bf16 %v6574_v3, %v6574_v3 }
 0x97d   : > { %v6573_v44 = vmax.f32 %v6554_v42, 0.0  ;;  %7163 = vmatpush3.bf16.msra.mxu1 %v6578_v12 }
 0x97e   : > { %7164 = vmatprep.subr.bf16.mxu1 %v7491_v18  ;;  %v6595_v49 = vsel %vm2541_vm14, %v6580_v36, 0  ;;  %vm6639_vm14 = vcmask 1024  }
 0x97f   : > { %v6579_v23 = vpack.c.bf16 %v6573_v44, %v6572_v15 }
 0x981   : > { %7165 = vmatpush3.bf16.msra.mxu1 %v6579_v23 }
 0x982   : > { %7166 = vmatprep.subr.bf16.mxu1 %v7491_v18 }
 0x985   : > { %7167 = vmatpush3.bf16.msra.mxu1 %v6595_v49 }
 0x988   : > { %7169 = vmatmul.mubr.msk.bf16.vlgmr.msra.gmra.mrb[84].mxu1 %vm6590_vm2, %v7454_v7 }
 0xa5b   : > { %v6631_v45 = vpop.f32.mrb[84].mxu1 }
 0xa5c   : > { %v6632_v41 = vadd.f32 %v6631_v45, %v6583_v33  ;;  %v7170_v0 = vpop.f32.mrb[85].mxu1 }
 0xa5d   : > { %v6634_v31 = vpop.f32.mrb[86].mxu1 }
 0xa5e   : > { %6638 = vst.msk [vmem:[%s386_s26] sm:$0xff] %vm5326_vm3, %v6632_v41  ;;  %v6635_v25 = vadd.f32 %v6634_v31, %v6584_v19  ;;  %v7171_v24 = vpop.f32.mrb[87].mxu1 }
 0xa60   : > { %6640 = vst.msk [vmem:[%s386_s26 + $0x8] sm:$0x3] %vm6639_vm14, %v6635_v25 }
 0xa61 PF: > { %s21_s17 = sadd.s32 1, %s7462_s17  }
 0xa62   : > { %p18_p4 = scmp.ge.s32.totalorder %s21_s17, 4  }
 0xa64   :  { %20 = sbr.rel (!%p18_p4) target bundleno = 1 (0x1), region = 94 }

</bundles_post_ra>
